<compile_context>
chip_gen: v7x
topology: tpu7x:2x2x1
jax: 0.10.0
libtpu: 0.0.40
codegen_flags: <defaults>
</compile_context>

<pallas_src>
import jax
import jax.numpy as jnp
from jax import lax
from jax.experimental import pallas as pl
from jax.experimental.pallas import tpu as pltpu

_INV_SQRT8 = 0.3535533905932738
_NEG_SLOPE = 0.01
_EPS = 1e-5

_PARALLEL = pltpu.CompilerParams(dimension_semantics=("parallel",))


def _round_up(v, m):
    return ((v + m - 1) // m) * m


# ----------------------------- Pallas kernels --------------------------------

def _conv_in_lrelu_kernel(p_ref, w_ref, g_ref, b_ref, o_ref):
    """Per-batch fused: conv (W(C,K)@P(K,S)) -> InstanceNorm3d(affine) -> LeakyReLU.
    Lane-dense: S on lanes, C on sublanes."""
    x = jnp.dot(w_ref[...], p_ref[0], preferred_element_type=jnp.float32)   # (C, S)
    mean = jnp.mean(x, axis=1, keepdims=True)
    var = jnp.mean((x - mean) ** 2, axis=1, keepdims=True)                  # biased var
    y = (x - mean) * lax.rsqrt(var + _EPS) * g_ref[...] + b_ref[...]
    o_ref[0] = jnp.where(y >= 0.0, y, _NEG_SLOPE * y)


def _dec_fused_kernel(pu_ref, ps_ref, wu_ref, ws_ref, g_ref, b_ref,
                      wseg_ref, bseg_ref, o_ref):
    """Decoder: conv with K-split (avoids concat) -> IN -> LReLU -> 1x1 seg head."""
    x = jnp.dot(wu_ref[...], pu_ref[0], preferred_element_type=jnp.float32)
    x = x + jnp.dot(ws_ref[...], ps_ref[0], preferred_element_type=jnp.float32)
    mean = jnp.mean(x, axis=1, keepdims=True)
    var = jnp.mean((x - mean) ** 2, axis=1, keepdims=True)
    y = (x - mean) * lax.rsqrt(var + _EPS) * g_ref[...] + b_ref[...]
    y = jnp.where(y >= 0.0, y, _NEG_SLOPE * y)                              # (Cd, S)
    o_ref[0] = jnp.dot(wseg_ref[...], y,
                       preferred_element_type=jnp.float32) + bseg_ref[...]  # (Nc, S)


def _bmm_kernel(w_ref, x_ref, o_ref):
    """ConvTranspose3d(k=2,s=2,bias=False) as a channel matmul, lane-dense."""
    o_ref[0] = jnp.dot(w_ref[...], x_ref[0], preferred_element_type=jnp.float32)


def _wavelet_kernel(x_ref, w1_ref, w2_ref, wf_ref, shift_ref, o_ref):
    """Fused wavelet branch: 3-D Haar butterfly (VPU) -> joint low/high channel
    attention (two small block-diagonal dots) -> ONE K=8C fuse dot (+ folded
    bias / eval-BN) -> ReLU.  One batch element per grid step, (C, S2) layout."""
    subs = [x_ref[0, c] for c in range(8)]          # 8 x (C, S2); c = 4*di + 2*hj + wk

    # 3-D Haar butterfly (pywt 'haar': detail = even - odd, scale 1/sqrt(2) per dim)
    wa = [subs[2 * t] + subs[2 * t + 1] for t in range(4)]   # W approx, t = 2*di + hj
    wd = [subs[2 * t] - subs[2 * t + 1] for t in range(4)]   # W detail
    aw_a = [wa[0] + wa[1], wa[2] + wa[3]]                    # H approx of W approx
    aw_d = [wa[0] - wa[1], wa[2] - wa[3]]
    dw_a = [wd[0] + wd[1], wd[2] + wd[3]]
    dw_d = [wd[0] - wd[1], wd[2] - wd[3]]
    low = (aw_a[0] + aw_a[1]) * _INV_SQRT8                   # 'aaa'
    bands = [(dw_a[0] + dw_a[1]) * _INV_SQRT8,               # 'aad'
             (aw_d[0] + aw_d[1]) * _INV_SQRT8,               # 'ada'
             (dw_d[0] + dw_d[1]) * _INV_SQRT8,               # 'add'
             (aw_a[0] - aw_a[1]) * _INV_SQRT8,               # 'daa'
             (dw_a[0] - dw_a[1]) * _INV_SQRT8,               # 'dad'
             (aw_d[0] - aw_d[1]) * _INV_SQRT8,               # 'dda'
             (dw_d[0] - dw_d[1]) * _INV_SQRT8]               # 'ddd'

    # stack order: [low (C) | band-major high (n*C + c)] on sublanes -> (8C, S2)
    stack = jnp.concatenate([low] + bands, axis=0)

    # joint low/high channel attention (block-diagonal FCs, f32, N=1 columns)
    y = jnp.mean(stack, axis=1, keepdims=True)                               # (8C, 1)
    hid = jnp.maximum(jnp.dot(w1_ref[...], y,
                              preferred_element_type=jnp.float32), 0.0)      # (R, 1)
    z = jnp.dot(w2_ref[...], hid, preferred_element_type=jnp.float32)        # (8C, 1)
    gates = pl.reciprocal(1.0 + jnp.exp(-z), approx=True)                    # sigmoid

    # FeatureFusion 1x1 conv as ONE K=8C dot; bias + eval-BN folded into wf/shift
    p = (stack * gates).astype(jnp.bfloat16)                                 # (8C, S2)
    out = jnp.dot(wf_ref[...], p, preferred_element_type=jnp.float32) + shift_ref[...]
    o_ref[0] = jnp.maximum(out, 0.0)


# ----------------------------- kernel wrappers --------------------------------

def conv_in_lrelu(patches, wmat, gamma, beta):
    """patches:(B,K,S) , wmat:(C,K) -> (B,C,S); fused conv+IN+LReLU, grid over B."""
    B, K, S = patches.shape
    C = wmat.shape[0]
    return pl.pallas_call(
        _conv_in_lrelu_kernel,
        out_shape=jax.ShapeDtypeStruct((B, C, S), jnp.float32),
        grid=(B,),
        in_specs=[
            pl.BlockSpec((1, K, S), lambda b: (b, 0, 0)),
            pl.BlockSpec((C, K), lambda b: (0, 0)),
            pl.BlockSpec((C, 1), lambda b: (0, 0)),
            pl.BlockSpec((C, 1), lambda b: (0, 0)),
        ],
        out_specs=pl.BlockSpec((1, C, S), lambda b: (b, 0, 0)),
        compiler_params=_PARALLEL,
    )(patches, wmat, gamma.reshape(C, 1), beta.reshape(C, 1))


def dec_fused_seg(p_up, p_skip, w_up, w_skip, gamma, beta, w_seg, b_seg):
    """Decoder conv (K-split concat) + IN + LReLU + seg head, fused, grid over B."""
    B, Ku, S = p_up.shape
    Ks = p_skip.shape[1]
    C = w_up.shape[0]
    Nc = w_seg.shape[0]
    return pl.pallas_call(
        _dec_fused_kernel,
        out_shape=jax.ShapeDtypeStruct((B, Nc, S), jnp.float32),
        grid=(B,),
        in_specs=[
            pl.BlockSpec((1, Ku, S), lambda b: (b, 0, 0)),
            pl.BlockSpec((1, Ks, S), lambda b: (b, 0, 0)),
            pl.BlockSpec((C, Ku), lambda b: (0, 0)),
            pl.BlockSpec((C, Ks), lambda b: (0, 0)),
            pl.BlockSpec((C, 1), lambda b: (0, 0)),
            pl.BlockSpec((C, 1), lambda b: (0, 0)),
            pl.BlockSpec((Nc, C), lambda b: (0, 0)),
            pl.BlockSpec((Nc, 1), lambda b: (0, 0)),
        ],
        out_specs=pl.BlockSpec((1, Nc, S), lambda b: (b, 0, 0)),
        compiler_params=_PARALLEL,
    )(p_up, p_skip, w_up, w_skip,
      gamma.reshape(C, 1), beta.reshape(C, 1), w_seg, b_seg.reshape(Nc, 1))


def batched_matmul(w, x):
    """(B,N,S) = W(N,K) @ x(B,K,S), grid over B."""
    B, K, S = x.shape
    N = w.shape[0]
    return pl.pallas_call(
        _bmm_kernel,
        out_shape=jax.ShapeDtypeStruct((B, N, S), jnp.float32),
        grid=(B,),
        in_specs=[
            pl.BlockSpec((N, K), lambda b: (0, 0)),
            pl.BlockSpec((1, K, S), lambda b: (b, 0, 0)),
        ],
        out_specs=pl.BlockSpec((1, N, S), lambda b: (b, 0, 0)),
        compiler_params=_PARALLEL,
    )(w, x)


def wavelet_branch(skip_vol, wk):
    """WaveletChannelAttention(skip) -> (B, C, D/2, H/2, W/2), one fused kernel."""
    B, C, D, H, W = skip_vol.shape
    D2, H2, W2 = D // 2, H // 2, W // 2
    S2 = D2 * H2 * W2

    # 2x2x2 sub-samplings to a leading axis: index = 4*di + 2*hj + wk
    xsub = skip_vol.reshape(B, C, D2, 2, H2, 2, W2, 2)
    xsub = jnp.transpose(xsub, (0, 3, 5, 7, 1, 2, 4, 6)).reshape(B, 8, C, S2)

    out = pl.pallas_call(
        _wavelet_kernel,
        out_shape=jax.ShapeDtypeStruct((B, C, S2), jnp.float32),
        grid=(B,),
        in_specs=[
            pl.BlockSpec((1, 8, C, S2), lambda b: (b, 0, 0, 0)),
            pl.BlockSpec(wk["w1"].shape, lambda b: (0, 0)),
            pl.BlockSpec(wk["w2"].shape, lambda b: (0, 0)),
            pl.BlockSpec(wk["wf"].shape, lambda b: (0, 0)),
            pl.BlockSpec((C, 1), lambda b: (0, 0)),
        ],
        out_specs=pl.BlockSpec((1, C, S2), lambda b: (b, 0, 0)),
        compiler_params=_PARALLEL,
    )(xsub, wk["w1"], wk["w2"], wk["wf"], wk["shift"])
    return out.reshape(B, C, D2, H2, W2)


# ----------------------------- JAX glue (layout only) --------------------------

def _pad_k(m, k_round):
    K = m.shape[1]
    Kp = _round_up(K, k_round)
    if Kp != K:
        m = jnp.pad(m, ((0, 0), (0, Kp - K)))
    return m.astype(jnp.bfloat16)


def im2col3d(x, k=3, stride=1, k_round=128):
    """NCDHW -> (B, K, S) patches (K order: kd, kh, kw, cin), K padded to k_round,
    bf16 for the MXU; padding=(k-1)//2."""
    B, Cin, D, H, W = x.shape
    pad = (k - 1) // 2
    xp = jnp.pad(x, ((0, 0), (0, 0), (pad, pad), (pad, pad), (pad, pad)))
    Do = (D + 2 * pad - k) // stride + 1
    Ho = (H + 2 * pad - k) // stride + 1
    Wo = (W + 2 * pad - k) // stride + 1
    cols = []
    for kd in range(k):
        for kh in range(k):
            for kw in range(k):
                cols.append(xp[:, :,
                               kd:kd + (Do - 1) * stride + 1:stride,
                               kh:kh + (Ho - 1) * stride + 1:stride,
                               kw:kw + (Wo - 1) * stride + 1:stride])
    patches = jnp.stack(cols, axis=1).reshape(B, k * k * k * Cin, Do * Ho * Wo)
    return _pad_k(patches.reshape(B * patches.shape[1] // patches.shape[1], *patches.shape[1:])
                  if False else patches.transpose(1, 0, 2).reshape(patches.shape[1], -1).T.reshape(B, patches.shape[1], -1)
                  if False else patches, k_round) if False else (_pad_batched(patches, k_round), (Do, Ho, Wo))


def _pad_batched(patches, k_round):
    B, K, S = patches.shape
    Kp = _round_up(K, k_round)
    if Kp != K:
        patches = jnp.pad(patches, ((0, 0), (0, Kp - K), (0, 0)))
    return patches.astype(jnp.bfloat16)


def conv_weight_to_mat(w, k_round=128):
    """PyTorch (Cout, Cin, k, k, k) -> (Cout, k^3*Cin) bf16, K order (kd, kh, kw, cin)."""
    Cout, Cin, k = w.shape[0], w.shape[1], w.shape[2]
    wm = jnp.transpose(w, (0, 2, 3, 4, 1)).reshape(Cout, k * k * k * Cin)
    return _pad_k(wm, k_round)


def dec_conv_split(w, c_up, k_round=128):
    """Decoder 3x3x3 conv over concat(up, skip) split into two K-blocks."""
    Cd, Ci, k = w.shape[0], w.shape[1], w.shape[2]
    wm = jnp.transpose(w, (0, 2, 3, 4, 1))                      # (Cd, k, k, k, Ci)
    w_up = wm[..., :c_up].reshape(Cd, k * k * k * c_up)
    w_sk = wm[..., c_up:].reshape(Cd, k * k * k * (Ci - c_up))
    return _pad_k(w_up, k_round), _pad_k(w_sk, k_round)


def _prep_wavelet(wp, C):
    """Host-side weight prep: band-major reorder, block-diagonal SE FCs,
    FeatureFusion bias + eval-mode BatchNorm folded into the 1x1 weights."""
    Cr = wp["low_fc1_w"].shape[0]
    Hr = wp["high_fc1_w"].shape[0]
    # torch high-channel order is c*7 + n; reorder to band-major n*C + c
    hf1 = wp["high_fc1_w"].reshape(Hr, C, 7).transpose(0, 2, 1).reshape(Hr, 7 * C)
    hf2 = wp["high_fc2_w"].reshape(C, 7, Hr).transpose(1, 0, 2).reshape(7 * C, Hr)
    w1 = jnp.zeros((Cr + Hr, 8 * C), jnp.float32)
    w1 = w1.at[:Cr, :C].set(wp["low_fc1_w"]).at[Cr:, C:].set(hf1)
    w2 = jnp.zeros((8 * C, Cr + Hr), jnp.float32)
    w2 = w2.at[:C, :Cr].set(wp["low_fc2_w"]).at[C:, Cr:].set(hf2)
    bn_scale = wp["bn_g"] * lax.rsqrt(wp["bn_rv"] + _EPS)
    wf = wp["fuse_w"].reshape(C, 8 * C)
    wf_high = wf[:, C:].reshape(C, C, 7).transpose(0, 2, 1).reshape(C, 7 * C)
    wf_bm = jnp.concatenate([wf[:, :C], wf_high], axis=1) * bn_scale[:, None]
    shift = ((wp["fuse_b"] - wp["bn_rm"]) * bn_scale + wp["bn_b"]).reshape(C, 1)
    return {"w1": w1, "w2": w2, "wf": wf_bm.astype(jnp.bfloat16), "shift": shift}


def trilinear_up2(x):
    """F.interpolate(scale_factor=2, mode='trilinear', align_corners=False), NCDHW."""
    def up_axis(v, axis):
        n = v.shape[axis]
        first = lax.slice_in_dim(v, 0, 1, axis=axis)
        last = lax.slice_in_dim(v, n - 1, n, axis=axis)
        prev = jnp.concatenate([first, lax.slice_in_dim(v, 0, n - 1, axis=axis)], axis=axis)
        nxt = jnp.concatenate([lax.slice_in_dim(v, 1, n, axis=axis), last], axis=axis)
        even = 0.75 * v + 0.25 * prev        # out[2i]   = 0.75 x[i] + 0.25 x[i-1]
        odd = 0.75 * v + 0.25 * nxt          # out[2i+1] = 0.75 x[i] + 0.25 x[i+1]
        stacked = jnp.stack([even, odd], axis=axis + 1)
        return stacked.reshape(v.shape[:axis] + (2 * n,) + v.shape[axis + 1:])
    for ax in (2, 3, 4):                     # D, H, W of (B, C, D, H, W)
        x = up_axis(x, ax)
    return x


# ----------------------------- full forward pass -------------------------------

def forward(x, params):
    x = x.astype(jnp.float32)                                  # NCDHW, stays NCDHW
    B = x.shape[0]
    C0 = params["enc0_w"].shape[0]
    C1 = params["enc1_w"].shape[0]

    # PlainConvEncoder (2 stages, 1 conv each): conv -> InstanceNorm -> LeakyReLU
    p0, sp0 = im2col3d(x, 3, 1)
    s0 = conv_in_lrelu(p0, conv_weight_to_mat(params["enc0_w"]),
                       params["enc0_g"], params["enc0_b"])
    s0_vol = s0.reshape(B, C0, *sp0)
    p1, sp1 = im2col3d(s0_vol, 3, 2)
    s1 = conv_in_lrelu(p1, conv_weight_to_mat(params["enc1_w"]),
                       params["enc1_g"], params["enc1_b"])
    s1_vol = s1.reshape(B, C1, *sp1)

    # wavelet channel attention on every skip; upsample x2 + residual add (XLA glue)
    enhanced = []
    for skip_vol, wp in zip([s0_vol, s1_vol], params["wavelet"]):
        C = skip_vol.shape[1]
        ll = wavelet_branch(skip_vol, _prep_wavelet(wp, C))
        enhanced.append(trilinear_up2(ll) + skip_vol)

    # UNetDecoder (1 stage): transpconv -> (K-split concat) conv -> IN -> LReLU -> seg
    e1 = enhanced[1]
    _, Cin, d, h, w = e1.shape
    Cup = params["dec_transp_w"].shape[1]
    wt = jnp.transpose(params["dec_transp_w"], (1, 2, 3, 4, 0)).reshape(Cup * 8, Cin)
    up = batched_matmul(wt.astype(jnp.bfloat16),
                        e1.reshape(B, Cin, d * h * w).astype(jnp.bfloat16))
    up = up.reshape(B, Cup, 2, 2, 2, d, h, w)
    up = jnp.transpose(up, (0, 1, 5, 2, 6, 3, 7, 4)).reshape(B, Cup, 2 * d, 2 * h, 2 * w)

    w_up, w_sk = dec_conv_split(params["dec_conv_w"], Cup)
    pu, spd = im2col3d(up, 3, 1)
    ps, _ = im2col3d(enhanced[0], 3, 1)
    wseg = params["seg_w"].reshape(params["seg_w"].shape[0], -1)        # (Nc, Cd)
    seg = dec_fused_seg(pu, ps, w_up, w_sk, params["dec_g"], params["dec_b"],
                        wseg, params["seg_b"])                          # (B, Nc, S)
    return seg.reshape(B, wseg.shape[0], *spd)                          # NCDHW already


# ----------------------------- deterministic params ----------------------------

def init_params(key):
    keys = iter(jax.random.split(key, 64))

    def rnd(shape, scale=0.1):
        return scale * jax.random.normal(next(keys), shape, dtype=jnp.float32)

    params = {
        "enc0_w": rnd((16, 4, 3, 3, 3)),
        "enc0_g": jnp.ones((16,), jnp.float32) + rnd((16,), 0.05),
        "enc0_b": rnd((16,), 0.05),
        "enc1_w": rnd((32, 16, 3, 3, 3)),
        "enc1_g": jnp.ones((32,), jnp.float32) + rnd((32,), 0.05),
        "enc1_b": rnd((32,), 0.05),
        "dec_transp_w": rnd((32, 16, 2, 2, 2)),
        "dec_conv_w": rnd((16, 32, 3, 3, 3)),
        "dec_g": jnp.ones((16,), jnp.float32) + rnd((16,), 0.05),
        "dec_b": rnd((16,), 0.05),
        "seg_w": rnd((3, 16, 1, 1, 1)),
        "seg_b": rnd((3,), 0.05),
        "wavelet": [],
    }
    for c in (16, 32):                       # encoder.output_channels
        cr = max(c // 16, 1)
        hc = 7 * c
        hcr = max(hc // 16, 1)
        params["wavelet"].append({
            "low_fc1_w": rnd((cr, c)),       # nn.Linear(C, C//16, bias=False).weight
            "low_fc2_w": rnd((c, cr)),
            "high_fc1_w": rnd((hcr, hc)),
            "high_fc2_w": rnd((hc, hcr)),
            "fuse_w": rnd((c, 8 * c, 1, 1, 1)),
            "fuse_b": rnd((c,), 0.05),
            "bn_g": jnp.ones((c,), jnp.float32) + rnd((c,), 0.05),
            "bn_b": rnd((c,), 0.05),
            "bn_rm": rnd((c,), 0.05),
            "bn_rv": jnp.ones((c,), jnp.float32) + jnp.abs(rnd((c,), 0.05)),
        })
    return params


if __name__ == "__main__":
    key = jax.random.PRNGKey(0)
    pkey, xkey = jax.random.split(key)
    params = init_params(pkey)
    x = jax.random.normal(xkey, (2, 4, 8, 8, 8), dtype=jnp.float32)   # NCDHW
    out = jax.jit(forward)(x, params)
    out = jax.block_until_ready(out)
    assert out.shape == (2, 3, 8, 8, 8), out.shape
    assert bool(jnp.all(jnp.isfinite(out)))
    print("KERNEL_OK")
</pallas_src>

<mosaic_0001>
module attributes {stable_mosaic.version = 11 : i64} {
  func.func @_conv_in_lrelu_kernel(%arg0: i32, %arg1: memref<1x128x512xbf16, #tpu.memory_space<vmem>>, %arg2: memref<16x128xbf16, #tpu.memory_space<vmem>>, %arg3: memref<16x1xf32, #tpu.memory_space<vmem>>, %arg4: memref<16x1xf32, #tpu.memory_space<vmem>>, %arg5: memref<1x16x512xf32, #tpu.memory_space<vmem>>) attributes {dimension_semantics = [#tpu.dimension_semantics<parallel>], iteration_bounds = array<i64: 2>, scalar_prefetch = 0 : i64, scratch_operands = 0 : i64, tpu.core_type = #tpu.core_type<tc>, window_params = [{transform_indices = @transform_0, window_bounds = array<i64: 1, 128, 512>}, {pipeline_mode = #tpu.pipeline_mode<synchronous>, transform_indices = @transform_1, window_bounds = array<i64: 16, 128>}, {pipeline_mode = #tpu.pipeline_mode<synchronous>, transform_indices = @transform_2, window_bounds = array<i64: 16, 1>}, {pipeline_mode = #tpu.pipeline_mode<synchronous>, transform_indices = @transform_3, window_bounds = array<i64: 16, 1>}, {transform_indices = @transform_4, window_bounds = array<i64: 1, 16, 512>}]} {
    %c0 = arith.constant 0 : index
    %c0_0 = arith.constant 0 : index
    %0 = vector.load %arg2[%c0, %c0_0] : memref<16x128xbf16, #tpu.memory_space<vmem>>, vector<16x128xbf16>
    %c0_1 = arith.constant 0 : index
    %c0_2 = arith.constant 0 : index
    %c0_3 = arith.constant 0 : index
    %1 = vector.load %arg1[%c0_1, %c0_2, %c0_3] : memref<1x128x512xbf16, #tpu.memory_space<vmem>>, vector<1x128x512xbf16>
    %2 = vector.shape_cast %1 : vector<1x128x512xbf16> to vector<128x512xbf16>
    %cst = arith.constant dense<0.000000e+00> : vector<16x512xf32>
    %3 = tpu.matmul %0, %2, %cst {dimension_numbers = #tpu.dot_dimension_numbers<[1], [0], [0], [1], [0, 0, 1, 1], [], []>} : vector<16x128xbf16>, vector<128x512xbf16>, vector<16x512xf32> -> vector<16x512xf32>
    %cst_4 = arith.constant dense<0.000000e+00> : vector<16xf32>
    %4 = vector.multi_reduction <add>, %3, %cst_4 [1] : vector<16x512xf32> to vector<16xf32>
    %5 = vector.shape_cast %4 : vector<16xf32> to vector<16x1xf32>
    %cst_5 = arith.constant 5.120000e+02 : f32
    %6 = vector.broadcast %cst_5 : f32 to vector<16x1xf32>
    %7 = arith.divf %5, %6 : vector<16x1xf32>
    %8 = vector.broadcast %7 : vector<16x1xf32> to vector<16x512xf32>
    %9 = arith.subf %3, %8 : vector<16x512xf32>
    %10 = arith.mulf %9, %9 : vector<16x512xf32>
    %cst_6 = arith.constant dense<0.000000e+00> : vector<16xf32>
    %11 = vector.multi_reduction <add>, %10, %cst_6 [1] : vector<16x512xf32> to vector<16xf32>
    %12 = vector.shape_cast %11 : vector<16xf32> to vector<16x1xf32>
    %cst_7 = arith.constant 5.120000e+02 : f32
    %13 = vector.broadcast %cst_7 : f32 to vector<16x1xf32>
    %14 = arith.divf %12, %13 : vector<16x1xf32>
    %15 = vector.broadcast %7 : vector<16x1xf32> to vector<16x512xf32>
    %16 = arith.subf %3, %15 : vector<16x512xf32>
    %cst_8 = arith.constant 9.99999974E-6 : f32
    %17 = vector.broadcast %cst_8 : f32 to vector<16x1xf32>
    %18 = arith.addf %14, %17 : vector<16x1xf32>
    %19 = math.rsqrt %18 : vector<16x1xf32>
    %20 = vector.broadcast %19 : vector<16x1xf32> to vector<16x512xf32>
    %21 = arith.mulf %16, %20 : vector<16x512xf32>
    %c0_9 = arith.constant 0 : index
    %c0_10 = arith.constant 0 : index
    %22 = vector.load %arg3[%c0_9, %c0_10] : memref<16x1xf32, #tpu.memory_space<vmem>>, vector<16x1xf32>
    %23 = vector.broadcast %22 : vector<16x1xf32> to vector<16x512xf32>
    %24 = arith.mulf %21, %23 : vector<16x512xf32>
    %c0_11 = arith.constant 0 : index
    %c0_12 = arith.constant 0 : index
    %25 = vector.load %arg4[%c0_11, %c0_12] : memref<16x1xf32, #tpu.memory_space<vmem>>, vector<16x1xf32>
    %26 = vector.broadcast %25 : vector<16x1xf32> to vector<16x512xf32>
    %27 = arith.addf %24, %26 : vector<16x512xf32>
    %cst_13 = arith.constant 0.000000e+00 : f32
    %28 = vector.broadcast %cst_13 : f32 to vector<16x512xf32>
    %29 = arith.cmpf oge, %27, %28 : vector<16x512xf32>
    %cst_14 = arith.constant 0.00999999977 : f32
    %30 = vector.broadcast %cst_14 : f32 to vector<16x512xf32>
    %31 = arith.mulf %30, %27 : vector<16x512xf32>
    %32 = arith.select %29, %27, %31 : vector<16x512xi1>, vector<16x512xf32>
    %c0_15 = arith.constant 0 : index
    %c0_16 = arith.constant 0 : index
    %c0_17 = arith.constant 0 : index
    %33 = vector.load %arg5[%c0_15, %c0_16, %c0_17] : memref<1x16x512xf32, #tpu.memory_space<vmem>>, vector<1x16x512xf32>
    %34 = vector.shape_cast %33 : vector<1x16x512xf32> to vector<16x512xf32>
    %35 = vector.shape_cast %32 : vector<16x512xf32> to vector<1x16x512xf32>
    tpu.vector_store %arg5[%c0_15, %c0_16, %c0_17], %35 {strides = array<i32>} : memref<1x16x512xf32, #tpu.memory_space<vmem>>, vector<1x16x512xf32>,
    return
  }
  func.func @transform_0(%arg0: i32) -> (i32, i32, i32) {
    %c0_i32 = arith.constant 0 : i32
    %c0_i32_0 = arith.constant 0 : i32
    %c0_i32_1 = arith.constant 0 : i32
    return %arg0, %c0_i32, %c0_i32_0 : i32, i32, i32
  }
  func.func @transform_1(%arg0: i32) -> (i32, i32) {
    %c0_i32 = arith.constant 0 : i32
    %c0_i32_0 = arith.constant 0 : i32
    %c0_i32_1 = arith.constant 0 : i32
    return %c0_i32, %c0_i32_0 : i32, i32
  }
  func.func @transform_2(%arg0: i32) -> (i32, i32) {
    %c0_i32 = arith.constant 0 : i32
    %c0_i32_0 = arith.constant 0 : i32
    %c0_i32_1 = arith.constant 0 : i32
    return %c0_i32, %c0_i32_0 : i32, i32
  }
  func.func @transform_3(%arg0: i32) -> (i32, i32) {
    %c0_i32 = arith.constant 0 : i32
    %c0_i32_0 = arith.constant 0 : i32
    %c0_i32_1 = arith.constant 0 : i32
    return %c0_i32, %c0_i32_0 : i32, i32
  }
  func.func @transform_4(%arg0: i32) -> (i32, i32, i32) {
    %c0_i32 = arith.constant 0 : i32
    %c0_i32_0 = arith.constant 0 : i32
    %c0_i32_1 = arith.constant 0 : i32
    return %arg0, %c0_i32, %c0_i32_0 : i32, i32, i32
  }
}

module attributes {stable_mosaic.version = 11 : i64} {
  func.func @_wavelet_kernel(%arg0: i32, %arg1: memref<1x8x16x64xf32, #tpu.memory_space<vmem>>, %arg2: memref<8x128xf32, #tpu.memory_space<vmem>>, %arg3: memref<128x8xf32, #tpu.memory_space<vmem>>, %arg4: memref<16x128xbf16, #tpu.memory_space<vmem>>, %arg5: memref<16x1xf32, #tpu.memory_space<vmem>>, %arg6: memref<1x16x64xf32, #tpu.memory_space<vmem>>) attributes {dimension_semantics = [#tpu.dimension_semantics<parallel>], iteration_bounds = array<i64: 2>, scalar_prefetch = 0 : i64, scratch_operands = 0 : i64, tpu.core_type = #tpu.core_type<tc>, window_params = [{transform_indices = @transform_0, window_bounds = array<i64: 1, 8, 16, 64>}, {pipeline_mode = #tpu.pipeline_mode<synchronous>, transform_indices = @transform_1, window_bounds = array<i64: 8, 128>}, {pipeline_mode = #tpu.pipeline_mode<synchronous>, transform_indices = @transform_2, window_bounds = array<i64: 128, 8>}, {pipeline_mode = #tpu.pipeline_mode<synchronous>, transform_indices = @transform_3, window_bounds = array<i64: 16, 128>}, {pipeline_mode = #tpu.pipeline_mode<synchronous>, transform_indices = @transform_4, window_bounds = array<i64: 16, 1>}, {transform_indices = @transform_5, window_bounds = array<i64: 1, 16, 64>}]} {
    %c0 = arith.constant 0 : index
    %c0_0 = arith.constant 0 : index
    %c0_1 = arith.constant 0 : index
    %c0_2 = arith.constant 0 : index
    %0 = vector.load %arg1[%c0, %c0_0, %c0_1, %c0_2] : memref<1x8x16x64xf32, #tpu.memory_space<vmem>>, vector<1x1x16x64xf32>
    %1 = vector.shape_cast %0 : vector<1x1x16x64xf32> to vector<16x64xf32>
    %c0_3 = arith.constant 0 : index
    %c1 = arith.constant 1 : index
    %c0_4 = arith.constant 0 : index
    %c0_5 = arith.constant 0 : index
    %2 = vector.load %arg1[%c0_3, %c1, %c0_4, %c0_5] : memref<1x8x16x64xf32, #tpu.memory_space<vmem>>, vector<1x1x16x64xf32>
    %3 = vector.shape_cast %2 : vector<1x1x16x64xf32> to vector<16x64xf32>
    %c0_6 = arith.constant 0 : index
    %c2 = arith.constant 2 : index
    %c0_7 = arith.constant 0 : index
    %c0_8 = arith.constant 0 : index
    %4 = vector.load %arg1[%c0_6, %c2, %c0_7, %c0_8] : memref<1x8x16x64xf32, #tpu.memory_space<vmem>>, vector<1x1x16x64xf32>
    %5 = vector.shape_cast %4 : vector<1x1x16x64xf32> to vector<16x64xf32>
    %c0_9 = arith.constant 0 : index
    %c3 = arith.constant 3 : index
    %c0_10 = arith.constant 0 : index
    %c0_11 = arith.constant 0 : index
    %6 = vector.load %arg1[%c0_9, %c3, %c0_10, %c0_11] : memref<1x8x16x64xf32, #tpu.memory_space<vmem>>, vector<1x1x16x64xf32>
    %7 = vector.shape_cast %6 : vector<1x1x16x64xf32> to vector<16x64xf32>
    %c0_12 = arith.constant 0 : index
    %c4 = arith.constant 4 : index
    %c0_13 = arith.constant 0 : index
    %c0_14 = arith.constant 0 : index
    %8 = vector.load %arg1[%c0_12, %c4, %c0_13, %c0_14] : memref<1x8x16x64xf32, #tpu.memory_space<vmem>>, vector<1x1x16x64xf32>
    %9 = vector.shape_cast %8 : vector<1x1x16x64xf32> to vector<16x64xf32>
    %c0_15 = arith.constant 0 : index
    %c5 = arith.constant 5 : index
    %c0_16 = arith.constant 0 : index
    %c0_17 = arith.constant 0 : index
    %10 = vector.load %arg1[%c0_15, %c5, %c0_16, %c0_17] : memref<1x8x16x64xf32, #tpu.memory_space<vmem>>, vector<1x1x16x64xf32>
    %11 = vector.shape_cast %10 : vector<1x1x16x64xf32> to vector<16x64xf32>
    %c0_18 = arith.constant 0 : index
    %c6 = arith.constant 6 : index
    %c0_19 = arith.constant 0 : index
    %c0_20 = arith.constant 0 : index
    %12 = vector.load %arg1[%c0_18, %c6, %c0_19, %c0_20] : memref<1x8x16x64xf32, #tpu.memory_space<vmem>>, vector<1x1x16x64xf32>
    %13 = vector.shape_cast %12 : vector<1x1x16x64xf32> to vector<16x64xf32>
    %c0_21 = arith.constant 0 : index
    %c7 = arith.constant 7 : index
    %c0_22 = arith.constant 0 : index
    %c0_23 = arith.constant 0 : index
    %14 = vector.load %arg1[%c0_21, %c7, %c0_22, %c0_23] : memref<1x8x16x64xf32, #tpu.memory_space<vmem>>, vector<1x1x16x64xf32>
    %15 = vector.shape_cast %14 : vector<1x1x16x64xf32> to vector<16x64xf32>
    %16 = arith.addf %1, %3 : vector<16x64xf32>
    %17 = arith.addf %5, %7 : vector<16x64xf32>
    %18 = arith.addf %9, %11 : vector<16x64xf32>
    %19 = arith.addf %13, %15 : vector<16x64xf32>
    %20 = arith.subf %1, %3 : vector<16x64xf32>
    %21 = arith.subf %5, %7 : vector<16x64xf32>
    %22 = arith.subf %9, %11 : vector<16x64xf32>
    %23 = arith.subf %13, %15 : vector<16x64xf32>
    %24 = arith.addf %16, %17 : vector<16x64xf32>
    %25 = arith.addf %18, %19 : vector<16x64xf32>
    %26 = arith.subf %16, %17 : vector<16x64xf32>
    %27 = arith.subf %18, %19 : vector<16x64xf32>
    %28 = arith.addf %20, %21 : vector<16x64xf32>
    %29 = arith.addf %22, %23 : vector<16x64xf32>
    %30 = arith.subf %20, %21 : vector<16x64xf32>
    %31 = arith.subf %22, %23 : vector<16x64xf32>
    %32 = arith.addf %24, %25 : vector<16x64xf32>
    %cst = arith.constant 0.353553385 : f32
    %33 = vector.broadcast %cst : f32 to vector<16x64xf32>
    %34 = arith.mulf %32, %33 : vector<16x64xf32>
    %35 = arith.addf %28, %29 : vector<16x64xf32>
    %cst_24 = arith.constant 0.353553385 : f32
    %36 = vector.broadcast %cst_24 : f32 to vector<16x64xf32>
    %37 = arith.mulf %35, %36 : vector<16x64xf32>
    %38 = arith.addf %26, %27 : vector<16x64xf32>
    %cst_25 = arith.constant 0.353553385 : f32
    %39 = vector.broadcast %cst_25 : f32 to vector<16x64xf32>
    %40 = arith.mulf %38, %39 : vector<16x64xf32>
    %41 = arith.addf %30, %31 : vector<16x64xf32>
    %cst_26 = arith.constant 0.353553385 : f32
    %42 = vector.broadcast %cst_26 : f32 to vector<16x64xf32>
    %43 = arith.mulf %41, %42 : vector<16x64xf32>
    %44 = arith.subf %24, %25 : vector<16x64xf32>
    %cst_27 = arith.constant 0.353553385 : f32
    %45 = vector.broadcast %cst_27 : f32 to vector<16x64xf32>
    %46 = arith.mulf %44, %45 : vector<16x64xf32>
    %47 = arith.subf %28, %29 : vector<16x64xf32>
    %cst_28 = arith.constant 0.353553385 : f32
    %48 = vector.broadcast %cst_28 : f32 to vector<16x64xf32>
    %49 = arith.mulf %47, %48 : vector<16x64xf32>
    %50 = arith.subf %26, %27 : vector<16x64xf32>
    %cst_29 = arith.constant 0.353553385 : f32
    %51 = vector.broadcast %cst_29 : f32 to vector<16x64xf32>
    %52 = arith.mulf %50, %51 : vector<16x64xf32>
    %53 = arith.subf %30, %31 : vector<16x64xf32>
    %cst_30 = arith.constant 0.353553385 : f32
    %54 = vector.broadcast %cst_30 : f32 to vector<16x64xf32>
    %55 = arith.mulf %53, %54 : vector<16x64xf32>
    %56 = tpu.concatenate %34, %37, %40, %43, %46, %49, %52, %55 in 0 : vector<16x64xf32>, vector<16x64xf32>, vector<16x64xf32>, vector<16x64xf32>, vector<16x64xf32>, vector<16x64xf32>, vector<16x64xf32>, vector<16x64xf32> -> vector<128x64xf32>
    %cst_31 = arith.constant dense<0.000000e+00> : vector<128xf32>
    %57 = vector.multi_reduction <add>, %56, %cst_31 [1] : vector<128x64xf32> to vector<128xf32>
    %58 = vector.shape_cast %57 : vector<128xf32> to vector<128x1xf32>
    %cst_32 = arith.constant 6.400000e+01 : f32
    %59 = vector.broadcast %cst_32 : f32 to vector<128x1xf32>
    %60 = arith.divf %58, %59 : vector<128x1xf32>
    %c0_33 = arith.constant 0 : index
    %c0_34 = arith.constant 0 : index
    %61 = vector.load %arg2[%c0_33, %c0_34] : memref<8x128xf32, #tpu.memory_space<vmem>>, vector<8x128xf32>
    %cst_35 = arith.constant dense<0.000000e+00> : vector<8x1xf32>
    %62 = tpu.matmul %61, %60, %cst_35 {dimension_numbers = #tpu.dot_dimension_numbers<[1], [0], [0], [1], [0, 0, 1, 1], [], []>} : vector<8x128xf32>, vector<128x1xf32>, vector<8x1xf32> -> vector<8x1xf32>
    %cst_36 = arith.constant 0.000000e+00 : f32
    %63 = vector.broadcast %cst_36 : f32 to vector<8x1xf32>
    %64 = arith.maximumf %62, %63 : vector<8x1xf32>
    %c0_37 = arith.constant 0 : index
    %c0_38 = arith.constant 0 : index
    %65 = vector.load %arg3[%c0_37, %c0_38] : memref<128x8xf32, #tpu.memory_space<vmem>>, vector<128x8xf32>
    %cst_39 = arith.constant dense<0.000000e+00> : vector<128x1xf32>
    %66 = tpu.matmul %65, %64, %cst_39 {dimension_numbers = #tpu.dot_dimension_numbers<[1], [0], [0], [1], [0, 0, 1, 1], [], []>} : vector<128x8xf32>, vector<8x1xf32>, vector<128x1xf32> -> vector<128x1xf32>
    %cst_40 = arith.constant 0.000000e+00 : f32
    %67 = vector.broadcast %cst_40 : f32 to vector<128x1xf32>
    %68 = arith.subf %67, %66 : vector<128x1xf32>
    %69 = math.exp %68 : vector<128x1xf32>
    %cst_41 = arith.constant 1.000000e+00 : f32
    %70 = vector.broadcast %cst_41 : f32 to vector<128x1xf32>
    %71 = arith.addf %70, %69 : vector<128x1xf32>
    %72 = tpu.reciprocal %71 {approx = true} : vector<128x1xf32> -> vector<128x1xf32>
    %73 = vector.broadcast %72 : vector<128x1xf32> to vector<128x64xf32>
    %74 = arith.mulf %56, %73 : vector<128x64xf32>
    %75 = arith.truncf %74 : vector<128x64xf32> to vector<128x64xbf16>
    %c0_42 = arith.constant 0 : index
    %c0_43 = arith.constant 0 : index
    %76 = vector.load %arg4[%c0_42, %c0_43] : memref<16x128xbf16, #tpu.memory_space<vmem>>, vector<16x128xbf16>
    %cst_44 = arith.constant dense<0.000000e+00> : vector<16x64xf32>
    %77 = tpu.matmul %76, %75, %cst_44 {dimension_numbers = #tpu.dot_dimension_numbers<[1], [0], [0], [1], [0, 0, 1, 1], [], []>} : vector<16x128xbf16>, vector<128x64xbf16>, vector<16x64xf32> -> vector<16x64xf32>
    %c0_45 = arith.constant 0 : index
    %c0_46 = arith.constant 0 : index
    %78 = vector.load %arg5[%c0_45, %c0_46] : memref<16x1xf32, #tpu.memory_space<vmem>>, vector<16x1xf32>
    %79 = vector.broadcast %78 : vector<16x1xf32> to vector<16x64xf32>
    %80 = arith.addf %77, %79 : vector<16x64xf32>
    %cst_47 = arith.constant 0.000000e+00 : f32
    %81 = vector.broadcast %cst_47 : f32 to vector<16x64xf32>
    %82 = arith.maximumf %80, %81 : vector<16x64xf32>
    %c0_48 = arith.constant 0 : index
    %c0_49 = arith.constant 0 : index
    %c0_50 = arith.constant 0 : index
    %83 = vector.load %arg6[%c0_48, %c0_49, %c0_50] : memref<1x16x64xf32, #tpu.memory_space<vmem>>, vector<1x16x64xf32>
    %84 = vector.shape_cast %83 : vector<1x16x64xf32> to vector<16x64xf32>
    %85 = vector.shape_cast %82 : vector<16x64xf32> to vector<1x16x64xf32>
    tpu.vector_store %arg6[%c0_48, %c0_49, %c0_50], %85 {strides = array<i32>} : memref<1x16x64xf32, #tpu.memory_space<vmem>>, vector<1x16x64xf32>,
    return
  }
  func.func @transform_0(%arg0: i32) -> (i32, i32, i32, i32) {
    %c0_i32 = arith.constant 0 : i32
    %c0_i32_0 = arith.constant 0 : i32
    %c0_i32_1 = arith.constant 0 : i32
    %c0_i32_2 = arith.constant 0 : i32
    return %arg0, %c0_i32, %c0_i32_0, %c0_i32_1 : i32, i32, i32, i32
  }
  func.func @transform_1(%arg0: i32) -> (i32, i32) {
    %c0_i32 = arith.constant 0 : i32
    %c0_i32_0 = arith.constant 0 : i32
    %c0_i32_1 = arith.constant 0 : i32
    return %c0_i32, %c0_i32_0 : i32, i32
  }
  func.func @transform_2(%arg0: i32) -> (i32, i32) {
    %c0_i32 = arith.constant 0 : i32
    %c0_i32_0 = arith.constant 0 : i32
    %c0_i32_1 = arith.constant 0 : i32
    return %c0_i32, %c0_i32_0 : i32, i32
  }
  func.func @transform_3(%arg0: i32) -> (i32, i32) {
    %c0_i32 = arith.constant 0 : i32
    %c0_i32_0 = arith.constant 0 : i32
    %c0_i32_1 = arith.constant 0 : i32
    return %c0_i32, %c0_i32_0 : i32, i32
  }
  func.func @transform_4(%arg0: i32) -> (i32, i32) {
    %c0_i32 = arith.constant 0 : i32
    %c0_i32_0 = arith.constant 0 : i32
    %c0_i32_1 = arith.constant 0 : i32
    return %c0_i32, %c0_i32_0 : i32, i32
  }
  func.func @transform_5(%arg0: i32) -> (i32, i32, i32) {
    %c0_i32 = arith.constant 0 : i32
    %c0_i32_0 = arith.constant 0 : i32
    %c0_i32_1 = arith.constant 0 : i32
    return %arg0, %c0_i32, %c0_i32_0 : i32, i32, i32
  }
}

module attributes {stable_mosaic.version = 11 : i64} {
  func.func @_conv_in_lrelu_kernel(%arg0: i32, %arg1: memref<1x512x64xbf16, #tpu.memory_space<vmem>>, %arg2: memref<32x512xbf16, #tpu.memory_space<vmem>>, %arg3: memref<32x1xf32, #tpu.memory_space<vmem>>, %arg4: memref<32x1xf32, #tpu.memory_space<vmem>>, %arg5: memref<1x32x64xf32, #tpu.memory_space<vmem>>) attributes {dimension_semantics = [#tpu.dimension_semantics<parallel>], iteration_bounds = array<i64: 2>, scalar_prefetch = 0 : i64, scratch_operands = 0 : i64, tpu.core_type = #tpu.core_type<tc>, window_params = [{transform_indices = @transform_0, window_bounds = array<i64: 1, 512, 64>}, {pipeline_mode = #tpu.pipeline_mode<synchronous>, transform_indices = @transform_1, window_bounds = array<i64: 32, 512>}, {pipeline_mode = #tpu.pipeline_mode<synchronous>, transform_indices = @transform_2, window_bounds = array<i64: 32, 1>}, {pipeline_mode = #tpu.pipeline_mode<synchronous>, transform_indices = @transform_3, window_bounds = array<i64: 32, 1>}, {transform_indices = @transform_4, window_bounds = array<i64: 1, 32, 64>}]} {
    %c0 = arith.constant 0 : index
    %c0_0 = arith.constant 0 : index
    %0 = vector.load %arg2[%c0, %c0_0] : memref<32x512xbf16, #tpu.memory_space<vmem>>, vector<32x512xbf16>
    %c0_1 = arith.constant 0 : index
    %c0_2 = arith.constant 0 : index
    %c0_3 = arith.constant 0 : index
    %1 = vector.load %arg1[%c0_1, %c0_2, %c0_3] : memref<1x512x64xbf16, #tpu.memory_space<vmem>>, vector<1x512x64xbf16>
    %2 = vector.shape_cast %1 : vector<1x512x64xbf16> to vector<512x64xbf16>
    %cst = arith.constant dense<0.000000e+00> : vector<32x64xf32>
    %3 = tpu.matmul %0, %2, %cst {dimension_numbers = #tpu.dot_dimension_numbers<[1], [0], [0], [1], [0, 0, 1, 1], [], []>} : vector<32x512xbf16>, vector<512x64xbf16>, vector<32x64xf32> -> vector<32x64xf32>
    %cst_4 = arith.constant dense<0.000000e+00> : vector<32xf32>
    %4 = vector.multi_reduction <add>, %3, %cst_4 [1] : vector<32x64xf32> to vector<32xf32>
    %5 = vector.shape_cast %4 : vector<32xf32> to vector<32x1xf32>
    %cst_5 = arith.constant 6.400000e+01 : f32
    %6 = vector.broadcast %cst_5 : f32 to vector<32x1xf32>
    %7 = arith.divf %5, %6 : vector<32x1xf32>
    %8 = vector.broadcast %7 : vector<32x1xf32> to vector<32x64xf32>
    %9 = arith.subf %3, %8 : vector<32x64xf32>
    %10 = arith.mulf %9, %9 : vector<32x64xf32>
    %cst_6 = arith.constant dense<0.000000e+00> : vector<32xf32>
    %11 = vector.multi_reduction <add>, %10, %cst_6 [1] : vector<32x64xf32> to vector<32xf32>
    %12 = vector.shape_cast %11 : vector<32xf32> to vector<32x1xf32>
    %cst_7 = arith.constant 6.400000e+01 : f32
    %13 = vector.broadcast %cst_7 : f32 to vector<32x1xf32>
    %14 = arith.divf %12, %13 : vector<32x1xf32>
    %15 = vector.broadcast %7 : vector<32x1xf32> to vector<32x64xf32>
    %16 = arith.subf %3, %15 : vector<32x64xf32>
    %cst_8 = arith.constant 9.99999974E-6 : f32
    %17 = vector.broadcast %cst_8 : f32 to vector<32x1xf32>
    %18 = arith.addf %14, %17 : vector<32x1xf32>
    %19 = math.rsqrt %18 : vector<32x1xf32>
    %20 = vector.broadcast %19 : vector<32x1xf32> to vector<32x64xf32>
    %21 = arith.mulf %16, %20 : vector<32x64xf32>
    %c0_9 = arith.constant 0 : index
    %c0_10 = arith.constant 0 : index
    %22 = vector.load %arg3[%c0_9, %c0_10] : memref<32x1xf32, #tpu.memory_space<vmem>>, vector<32x1xf32>
    %23 = vector.broadcast %22 : vector<32x1xf32> to vector<32x64xf32>
    %24 = arith.mulf %21, %23 : vector<32x64xf32>
    %c0_11 = arith.constant 0 : index
    %c0_12 = arith.constant 0 : index
    %25 = vector.load %arg4[%c0_11, %c0_12] : memref<32x1xf32, #tpu.memory_space<vmem>>, vector<32x1xf32>
    %26 = vector.broadcast %25 : vector<32x1xf32> to vector<32x64xf32>
    %27 = arith.addf %24, %26 : vector<32x64xf32>
    %cst_13 = arith.constant 0.000000e+00 : f32
    %28 = vector.broadcast %cst_13 : f32 to vector<32x64xf32>
    %29 = arith.cmpf oge, %27, %28 : vector<32x64xf32>
    %cst_14 = arith.constant 0.00999999977 : f32
    %30 = vector.broadcast %cst_14 : f32 to vector<32x64xf32>
    %31 = arith.mulf %30, %27 : vector<32x64xf32>
    %32 = arith.select %29, %27, %31 : vector<32x64xi1>, vector<32x64xf32>
    %c0_15 = arith.constant 0 : index
    %c0_16 = arith.constant 0 : index
    %c0_17 = arith.constant 0 : index
    %33 = vector.load %arg5[%c0_15, %c0_16, %c0_17] : memref<1x32x64xf32, #tpu.memory_space<vmem>>, vector<1x32x64xf32>
    %34 = vector.shape_cast %33 : vector<1x32x64xf32> to vector<32x64xf32>
    %35 = vector.shape_cast %32 : vector<32x64xf32> to vector<1x32x64xf32>
    tpu.vector_store %arg5[%c0_15, %c0_16, %c0_17], %35 {strides = array<i32>} : memref<1x32x64xf32, #tpu.memory_space<vmem>>, vector<1x32x64xf32>,
    return
  }
  func.func @transform_0(%arg0: i32) -> (i32, i32, i32) {
    %c0_i32 = arith.constant 0 : i32
    %c0_i32_0 = arith.constant 0 : i32
    %c0_i32_1 = arith.constant 0 : i32
    return %arg0, %c0_i32, %c0_i32_0 : i32, i32, i32
  }
  func.func @transform_1(%arg0: i32) -> (i32, i32) {
    %c0_i32 = arith.constant 0 : i32
    %c0_i32_0 = arith.constant 0 : i32
    %c0_i32_1 = arith.constant 0 : i32
    return %c0_i32, %c0_i32_0 : i32, i32
  }
  func.func @transform_2(%arg0: i32) -> (i32, i32) {
    %c0_i32 = arith.constant 0 : i32
    %c0_i32_0 = arith.constant 0 : i32
    %c0_i32_1 = arith.constant 0 : i32
    return %c0_i32, %c0_i32_0 : i32, i32
  }
  func.func @transform_3(%arg0: i32) -> (i32, i32) {
    %c0_i32 = arith.constant 0 : i32
    %c0_i32_0 = arith.constant 0 : i32
    %c0_i32_1 = arith.constant 0 : i32
    return %c0_i32, %c0_i32_0 : i32, i32
  }
  func.func @transform_4(%arg0: i32) -> (i32, i32, i32) {
    %c0_i32 = arith.constant 0 : i32
    %c0_i32_0 = arith.constant 0 : i32
    %c0_i32_1 = arith.constant 0 : i32
    return %arg0, %c0_i32, %c0_i32_0 : i32, i32, i32
  }
}

module attributes {stable_mosaic.version = 11 : i64} {
  func.func @_wavelet_kernel(%arg0: i32, %arg1: memref<1x8x32x8xf32, #tpu.memory_space<vmem>>, %arg2: memref<16x256xf32, #tpu.memory_space<vmem>>, %arg3: memref<256x16xf32, #tpu.memory_space<vmem>>, %arg4: memref<32x256xbf16, #tpu.memory_space<vmem>>, %arg5: memref<32x1xf32, #tpu.memory_space<vmem>>, %arg6: memref<1x32x8xf32, #tpu.memory_space<vmem>>) attributes {dimension_semantics = [#tpu.dimension_semantics<parallel>], iteration_bounds = array<i64: 2>, scalar_prefetch = 0 : i64, scratch_operands = 0 : i64, tpu.core_type = #tpu.core_type<tc>, window_params = [{transform_indices = @transform_0, window_bounds = array<i64: 1, 8, 32, 8>}, {pipeline_mode = #tpu.pipeline_mode<synchronous>, transform_indices = @transform_1, window_bounds = array<i64: 16, 256>}, {pipeline_mode = #tpu.pipeline_mode<synchronous>, transform_indices = @transform_2, window_bounds = array<i64: 256, 16>}, {pipeline_mode = #tpu.pipeline_mode<synchronous>, transform_indices = @transform_3, window_bounds = array<i64: 32, 256>}, {pipeline_mode = #tpu.pipeline_mode<synchronous>, transform_indices = @transform_4, window_bounds = array<i64: 32, 1>}, {transform_indices = @transform_5, window_bounds = array<i64: 1, 32, 8>}]} {
    %c0 = arith.constant 0 : index
    %c0_0 = arith.constant 0 : index
    %c0_1 = arith.constant 0 : index
    %c0_2 = arith.constant 0 : index
    %0 = vector.load %arg1[%c0, %c0_0, %c0_1, %c0_2] : memref<1x8x32x8xf32, #tpu.memory_space<vmem>>, vector<1x1x32x8xf32>
    %1 = vector.shape_cast %0 : vector<1x1x32x8xf32> to vector<32x8xf32>
    %c0_3 = arith.constant 0 : index
    %c1 = arith.constant 1 : index
    %c0_4 = arith.constant 0 : index
    %c0_5 = arith.constant 0 : index
    %2 = vector.load %arg1[%c0_3, %c1, %c0_4, %c0_5] : memref<1x8x32x8xf32, #tpu.memory_space<vmem>>, vector<1x1x32x8xf32>
    %3 = vector.shape_cast %2 : vector<1x1x32x8xf32> to vector<32x8xf32>
    %c0_6 = arith.constant 0 : index
    %c2 = arith.constant 2 : index
    %c0_7 = arith.constant 0 : index
    %c0_8 = arith.constant 0 : index
    %4 = vector.load %arg1[%c0_6, %c2, %c0_7, %c0_8] : memref<1x8x32x8xf32, #tpu.memory_space<vmem>>, vector<1x1x32x8xf32>
    %5 = vector.shape_cast %4 : vector<1x1x32x8xf32> to vector<32x8xf32>
    %c0_9 = arith.constant 0 : index
    %c3 = arith.constant 3 : index
    %c0_10 = arith.constant 0 : index
    %c0_11 = arith.constant 0 : index
    %6 = vector.load %arg1[%c0_9, %c3, %c0_10, %c0_11] : memref<1x8x32x8xf32, #tpu.memory_space<vmem>>, vector<1x1x32x8xf32>
    %7 = vector.shape_cast %6 : vector<1x1x32x8xf32> to vector<32x8xf32>
    %c0_12 = arith.constant 0 : index
    %c4 = arith.constant 4 : index
    %c0_13 = arith.constant 0 : index
    %c0_14 = arith.constant 0 : index
    %8 = vector.load %arg1[%c0_12, %c4, %c0_13, %c0_14] : memref<1x8x32x8xf32, #tpu.memory_space<vmem>>, vector<1x1x32x8xf32>
    %9 = vector.shape_cast %8 : vector<1x1x32x8xf32> to vector<32x8xf32>
    %c0_15 = arith.constant 0 : index
    %c5 = arith.constant 5 : index
    %c0_16 = arith.constant 0 : index
    %c0_17 = arith.constant 0 : index
    %10 = vector.load %arg1[%c0_15, %c5, %c0_16, %c0_17] : memref<1x8x32x8xf32, #tpu.memory_space<vmem>>, vector<1x1x32x8xf32>
    %11 = vector.shape_cast %10 : vector<1x1x32x8xf32> to vector<32x8xf32>
    %c0_18 = arith.constant 0 : index
    %c6 = arith.constant 6 : index
    %c0_19 = arith.constant 0 : index
    %c0_20 = arith.constant 0 : index
    %12 = vector.load %arg1[%c0_18, %c6, %c0_19, %c0_20] : memref<1x8x32x8xf32, #tpu.memory_space<vmem>>, vector<1x1x32x8xf32>
    %13 = vector.shape_cast %12 : vector<1x1x32x8xf32> to vector<32x8xf32>
    %c0_21 = arith.constant 0 : index
    %c7 = arith.constant 7 : index
    %c0_22 = arith.constant 0 : index
    %c0_23 = arith.constant 0 : index
    %14 = vector.load %arg1[%c0_21, %c7, %c0_22, %c0_23] : memref<1x8x32x8xf32, #tpu.memory_space<vmem>>, vector<1x1x32x8xf32>
    %15 = vector.shape_cast %14 : vector<1x1x32x8xf32> to vector<32x8xf32>
    %16 = arith.addf %1, %3 : vector<32x8xf32>
    %17 = arith.addf %5, %7 : vector<32x8xf32>
    %18 = arith.addf %9, %11 : vector<32x8xf32>
    %19 = arith.addf %13, %15 : vector<32x8xf32>
    %20 = arith.subf %1, %3 : vector<32x8xf32>
    %21 = arith.subf %5, %7 : vector<32x8xf32>
    %22 = arith.subf %9, %11 : vector<32x8xf32>
    %23 = arith.subf %13, %15 : vector<32x8xf32>
    %24 = arith.addf %16, %17 : vector<32x8xf32>
    %25 = arith.addf %18, %19 : vector<32x8xf32>
    %26 = arith.subf %16, %17 : vector<32x8xf32>
    %27 = arith.subf %18, %19 : vector<32x8xf32>
    %28 = arith.addf %20, %21 : vector<32x8xf32>
    %29 = arith.addf %22, %23 : vector<32x8xf32>
    %30 = arith.subf %20, %21 : vector<32x8xf32>
    %31 = arith.subf %22, %23 : vector<32x8xf32>
    %32 = arith.addf %24, %25 : vector<32x8xf32>
    %cst = arith.constant 0.353553385 : f32
    %33 = vector.broadcast %cst : f32 to vector<32x8xf32>
    %34 = arith.mulf %32, %33 : vector<32x8xf32>
    %35 = arith.addf %28, %29 : vector<32x8xf32>
    %cst_24 = arith.constant 0.353553385 : f32
    %36 = vector.broadcast %cst_24 : f32 to vector<32x8xf32>
    %37 = arith.mulf %35, %36 : vector<32x8xf32>
    %38 = arith.addf %26, %27 : vector<32x8xf32>
    %cst_25 = arith.constant 0.353553385 : f32
    %39 = vector.broadcast %cst_25 : f32 to vector<32x8xf32>
    %40 = arith.mulf %38, %39 : vector<32x8xf32>
    %41 = arith.addf %30, %31 : vector<32x8xf32>
    %cst_26 = arith.constant 0.353553385 : f32
    %42 = vector.broadcast %cst_26 : f32 to vector<32x8xf32>
    %43 = arith.mulf %41, %42 : vector<32x8xf32>
    %44 = arith.subf %24, %25 : vector<32x8xf32>
    %cst_27 = arith.constant 0.353553385 : f32
    %45 = vector.broadcast %cst_27 : f32 to vector<32x8xf32>
    %46 = arith.mulf %44, %45 : vector<32x8xf32>
    %47 = arith.subf %28, %29 : vector<32x8xf32>
    %cst_28 = arith.constant 0.353553385 : f32
    %48 = vector.broadcast %cst_28 : f32 to vector<32x8xf32>
    %49 = arith.mulf %47, %48 : vector<32x8xf32>
    %50 = arith.subf %26, %27 : vector<32x8xf32>
    %cst_29 = arith.constant 0.353553385 : f32
    %51 = vector.broadcast %cst_29 : f32 to vector<32x8xf32>
    %52 = arith.mulf %50, %51 : vector<32x8xf32>
    %53 = arith.subf %30, %31 : vector<32x8xf32>
    %cst_30 = arith.constant 0.353553385 : f32
    %54 = vector.broadcast %cst_30 : f32 to vector<32x8xf32>
    %55 = arith.mulf %53, %54 : vector<32x8xf32>
    %56 = tpu.concatenate %34, %37, %40, %43, %46, %49, %52, %55 in 0 : vector<32x8xf32>, vector<32x8xf32>, vector<32x8xf32>, vector<32x8xf32>, vector<32x8xf32>, vector<32x8xf32>, vector<32x8xf32>, vector<32x8xf32> -> vector<256x8xf32>
    %cst_31 = arith.constant dense<0.000000e+00> : vector<256xf32>
    %57 = vector.multi_reduction <add>, %56, %cst_31 [1] : vector<256x8xf32> to vector<256xf32>
    %58 = vector.shape_cast %57 : vector<256xf32> to vector<256x1xf32>
    %cst_32 = arith.constant 8.000000e+00 : f32
    %59 = vector.broadcast %cst_32 : f32 to vector<256x1xf32>
    %60 = arith.divf %58, %59 : vector<256x1xf32>
    %c0_33 = arith.constant 0 : index
    %c0_34 = arith.constant 0 : index
    %61 = vector.load %arg2[%c0_33, %c0_34] : memref<16x256xf32, #tpu.memory_space<vmem>>, vector<16x256xf32>
    %cst_35 = arith.constant dense<0.000000e+00> : vector<16x1xf32>
    %62 = tpu.matmul %61, %60, %cst_35 {dimension_numbers = #tpu.dot_dimension_numbers<[1], [0], [0], [1], [0, 0, 1, 1], [], []>} : vector<16x256xf32>, vector<256x1xf32>, vector<16x1xf32> -> vector<16x1xf32>
    %cst_36 = arith.constant 0.000000e+00 : f32
    %63 = vector.broadcast %cst_36 : f32 to vector<16x1xf32>
    %64 = arith.maximumf %62, %63 : vector<16x1xf32>
    %c0_37 = arith.constant 0 : index
    %c0_38 = arith.constant 0 : index
    %65 = vector.load %arg3[%c0_37, %c0_38] : memref<256x16xf32, #tpu.memory_space<vmem>>, vector<256x16xf32>
    %cst_39 = arith.constant dense<0.000000e+00> : vector<256x1xf32>
    %66 = tpu.matmul %65, %64, %cst_39 {dimension_numbers = #tpu.dot_dimension_numbers<[1], [0], [0], [1], [0, 0, 1, 1], [], []>} : vector<256x16xf32>, vector<16x1xf32>, vector<256x1xf32> -> vector<256x1xf32>
    %cst_40 = arith.constant 0.000000e+00 : f32
    %67 = vector.broadcast %cst_40 : f32 to vector<256x1xf32>
    %68 = arith.subf %67, %66 : vector<256x1xf32>
    %69 = math.exp %68 : vector<256x1xf32>
    %cst_41 = arith.constant 1.000000e+00 : f32
    %70 = vector.broadcast %cst_41 : f32 to vector<256x1xf32>
    %71 = arith.addf %70, %69 : vector<256x1xf32>
    %72 = tpu.reciprocal %71 {approx = true} : vector<256x1xf32> -> vector<256x1xf32>
    %73 = vector.broadcast %72 : vector<256x1xf32> to vector<256x8xf32>
    %74 = arith.mulf %56, %73 : vector<256x8xf32>
    %75 = arith.truncf %74 : vector<256x8xf32> to vector<256x8xbf16>
    %c0_42 = arith.constant 0 : index
    %c0_43 = arith.constant 0 : index
    %76 = vector.load %arg4[%c0_42, %c0_43] : memref<32x256xbf16, #tpu.memory_space<vmem>>, vector<32x256xbf16>
    %cst_44 = arith.constant dense<0.000000e+00> : vector<32x8xf32>
    %77 = tpu.matmul %76, %75, %cst_44 {dimension_numbers = #tpu.dot_dimension_numbers<[1], [0], [0], [1], [0, 0, 1, 1], [], []>} : vector<32x256xbf16>, vector<256x8xbf16>, vector<32x8xf32> -> vector<32x8xf32>
    %c0_45 = arith.constant 0 : index
    %c0_46 = arith.constant 0 : index
    %78 = vector.load %arg5[%c0_45, %c0_46] : memref<32x1xf32, #tpu.memory_space<vmem>>, vector<32x1xf32>
    %79 = vector.broadcast %78 : vector<32x1xf32> to vector<32x8xf32>
    %80 = arith.addf %77, %79 : vector<32x8xf32>
    %cst_47 = arith.constant 0.000000e+00 : f32
    %81 = vector.broadcast %cst_47 : f32 to vector<32x8xf32>
    %82 = arith.maximumf %80, %81 : vector<32x8xf32>
    %c0_48 = arith.constant 0 : index
    %c0_49 = arith.constant 0 : index
    %c0_50 = arith.constant 0 : index
    %83 = vector.load %arg6[%c0_48, %c0_49, %c0_50] : memref<1x32x8xf32, #tpu.memory_space<vmem>>, vector<1x32x8xf32>
    %84 = vector.shape_cast %83 : vector<1x32x8xf32> to vector<32x8xf32>
    %85 = vector.shape_cast %82 : vector<32x8xf32> to vector<1x32x8xf32>
    tpu.vector_store %arg6[%c0_48, %c0_49, %c0_50], %85 {strides = array<i32>} : memref<1x32x8xf32, #tpu.memory_space<vmem>>, vector<1x32x8xf32>,
    return
  }
  func.func @transform_0(%arg0: i32) -> (i32, i32, i32, i32) {
    %c0_i32 = arith.constant 0 : i32
    %c0_i32_0 = arith.constant 0 : i32
    %c0_i32_1 = arith.constant 0 : i32
    %c0_i32_2 = arith.constant 0 : i32
    return %arg0, %c0_i32, %c0_i32_0, %c0_i32_1 : i32, i32, i32, i32
  }
  func.func @transform_1(%arg0: i32) -> (i32, i32) {
    %c0_i32 = arith.constant 0 : i32
    %c0_i32_0 = arith.constant 0 : i32
    %c0_i32_1 = arith.constant 0 : i32
    return %c0_i32, %c0_i32_0 : i32, i32
  }
  func.func @transform_2(%arg0: i32) -> (i32, i32) {
    %c0_i32 = arith.constant 0 : i32
    %c0_i32_0 = arith.constant 0 : i32
    %c0_i32_1 = arith.constant 0 : i32
    return %c0_i32, %c0_i32_0 : i32, i32
  }
  func.func @transform_3(%arg0: i32) -> (i32, i32) {
    %c0_i32 = arith.constant 0 : i32
    %c0_i32_0 = arith.constant 0 : i32
    %c0_i32_1 = arith.constant 0 : i32
    return %c0_i32, %c0_i32_0 : i32, i32
  }
  func.func @transform_4(%arg0: i32) -> (i32, i32) {
    %c0_i32 = arith.constant 0 : i32
    %c0_i32_0 = arith.constant 0 : i32
    %c0_i32_1 = arith.constant 0 : i32
    return %c0_i32, %c0_i32_0 : i32, i32
  }
  func.func @transform_5(%arg0: i32) -> (i32, i32, i32) {
    %c0_i32 = arith.constant 0 : i32
    %c0_i32_0 = arith.constant 0 : i32
    %c0_i32_1 = arith.constant 0 : i32
    return %arg0, %c0_i32, %c0_i32_0 : i32, i32, i32
  }
}

module attributes {stable_mosaic.version = 11 : i64} {
  func.func @_bmm_kernel(%arg0: i32, %arg1: memref<128x32xbf16, #tpu.memory_space<vmem>>, %arg2: memref<1x32x64xbf16, #tpu.memory_space<vmem>>, %arg3: memref<1x128x64xf32, #tpu.memory_space<vmem>>) attributes {dimension_semantics = [#tpu.dimension_semantics<parallel>], iteration_bounds = array<i64: 2>, scalar_prefetch = 0 : i64, scratch_operands = 0 : i64, tpu.core_type = #tpu.core_type<tc>, window_params = [{pipeline_mode = #tpu.pipeline_mode<synchronous>, transform_indices = @transform_0, window_bounds = array<i64: 128, 32>}, {transform_indices = @transform_1, window_bounds = array<i64: 1, 32, 64>}, {transform_indices = @transform_2, window_bounds = array<i64: 1, 128, 64>}]} {
    %c0 = arith.constant 0 : index
    %c0_0 = arith.constant 0 : index
    %0 = vector.load %arg1[%c0, %c0_0] : memref<128x32xbf16, #tpu.memory_space<vmem>>, vector<128x32xbf16>
    %c0_1 = arith.constant 0 : index
    %c0_2 = arith.constant 0 : index
    %c0_3 = arith.constant 0 : index
    %1 = vector.load %arg2[%c0_1, %c0_2, %c0_3] : memref<1x32x64xbf16, #tpu.memory_space<vmem>>, vector<1x32x64xbf16>
    %2 = vector.shape_cast %1 : vector<1x32x64xbf16> to vector<32x64xbf16>
    %cst = arith.constant dense<0.000000e+00> : vector<128x64xf32>
    %3 = tpu.matmul %0, %2, %cst {dimension_numbers = #tpu.dot_dimension_numbers<[1], [0], [0], [1], [0, 0, 1, 1], [], []>} : vector<128x32xbf16>, vector<32x64xbf16>, vector<128x64xf32> -> vector<128x64xf32>
    %c0_4 = arith.constant 0 : index
    %c0_5 = arith.constant 0 : index
    %c0_6 = arith.constant 0 : index
    %4 = vector.load %arg3[%c0_4, %c0_5, %c0_6] : memref<1x128x64xf32, #tpu.memory_space<vmem>>, vector<1x128x64xf32>
    %5 = vector.shape_cast %4 : vector<1x128x64xf32> to vector<128x64xf32>
    %6 = vector.shape_cast %3 : vector<128x64xf32> to vector<1x128x64xf32>
    tpu.vector_store %arg3[%c0_4, %c0_5, %c0_6], %6 {strides = array<i32>} : memref<1x128x64xf32, #tpu.memory_space<vmem>>, vector<1x128x64xf32>,
    return
  }
  func.func @transform_0(%arg0: i32) -> (i32, i32) {
    %c0_i32 = arith.constant 0 : i32
    %c0_i32_0 = arith.constant 0 : i32
    %c0_i32_1 = arith.constant 0 : i32
    return %c0_i32, %c0_i32_0 : i32, i32
  }
  func.func @transform_1(%arg0: i32) -> (i32, i32, i32) {
    %c0_i32 = arith.constant 0 : i32
    %c0_i32_0 = arith.constant 0 : i32
    %c0_i32_1 = arith.constant 0 : i32
    return %arg0, %c0_i32, %c0_i32_0 : i32, i32, i32
  }
  func.func @transform_2(%arg0: i32) -> (i32, i32, i32) {
    %c0_i32 = arith.constant 0 : i32
    %c0_i32_0 = arith.constant 0 : i32
    %c0_i32_1 = arith.constant 0 : i32
    return %arg0, %c0_i32, %c0_i32_0 : i32, i32, i32
  }
}

module attributes {stable_mosaic.version = 11 : i64} {
  func.func @_dec_fused_kernel(%arg0: i32, %arg1: memref<1x512x512xbf16, #tpu.memory_space<vmem>>, %arg2: memref<1x512x512xbf16, #tpu.memory_space<vmem>>, %arg3: memref<16x512xbf16, #tpu.memory_space<vmem>>, %arg4: memref<16x512xbf16, #tpu.memory_space<vmem>>, %arg5: memref<16x1xf32, #tpu.memory_space<vmem>>, %arg6: memref<16x1xf32, #tpu.memory_space<vmem>>, %arg7: memref<3x16xf32, #tpu.memory_space<vmem>>, %arg8: memref<3x1xf32, #tpu.memory_space<vmem>>, %arg9: memref<1x3x512xf32, #tpu.memory_space<vmem>>) attributes {dimension_semantics = [#tpu.dimension_semantics<parallel>], iteration_bounds = array<i64: 2>, scalar_prefetch = 0 : i64, scratch_operands = 0 : i64, tpu.core_type = #tpu.core_type<tc>, window_params = [{transform_indices = @transform_0, window_bounds = array<i64: 1, 512, 512>}, {transform_indices = @transform_1, window_bounds = array<i64: 1, 512, 512>}, {pipeline_mode = #tpu.pipeline_mode<synchronous>, transform_indices = @transform_2, window_bounds = array<i64: 16, 512>}, {pipeline_mode = #tpu.pipeline_mode<synchronous>, transform_indices = @transform_3, window_bounds = array<i64: 16, 512>}, {pipeline_mode = #tpu.pipeline_mode<synchronous>, transform_indices = @transform_4, window_bounds = array<i64: 16, 1>}, {pipeline_mode = #tpu.pipeline_mode<synchronous>, transform_indices = @transform_5, window_bounds = array<i64: 16, 1>}, {pipeline_mode = #tpu.pipeline_mode<synchronous>, transform_indices = @transform_6, window_bounds = array<i64: 3, 16>}, {pipeline_mode = #tpu.pipeline_mode<synchronous>, transform_indices = @transform_7, window_bounds = array<i64: 3, 1>}, {transform_indices = @transform_8, window_bounds = array<i64: 1, 3, 512>}]} {
    %c0 = arith.constant 0 : index
    %c0_0 = arith.constant 0 : index
    %0 = vector.load %arg3[%c0, %c0_0] : memref<16x512xbf16, #tpu.memory_space<vmem>>, vector<16x512xbf16>
    %c0_1 = arith.constant 0 : index
    %c0_2 = arith.constant 0 : index
    %c0_3 = arith.constant 0 : index
    %1 = vector.load %arg1[%c0_1, %c0_2, %c0_3] : memref<1x512x512xbf16, #tpu.memory_space<vmem>>, vector<1x512x512xbf16>
    %2 = vector.shape_cast %1 : vector<1x512x512xbf16> to vector<512x512xbf16>
    %cst = arith.constant dense<0.000000e+00> : vector<16x512xf32>
    %3 = tpu.matmul %0, %2, %cst {dimension_numbers = #tpu.dot_dimension_numbers<[1], [0], [0], [1], [0, 0, 1, 1], [], []>} : vector<16x512xbf16>, vector<512x512xbf16>, vector<16x512xf32> -> vector<16x512xf32>
    %c0_4 = arith.constant 0 : index
    %c0_5 = arith.constant 0 : index
    %4 = vector.load %arg4[%c0_4, %c0_5] : memref<16x512xbf16, #tpu.memory_space<vmem>>, vector<16x512xbf16>
    %c0_6 = arith.constant 0 : index
    %c0_7 = arith.constant 0 : index
    %c0_8 = arith.constant 0 : index
    %5 = vector.load %arg2[%c0_6, %c0_7, %c0_8] : memref<1x512x512xbf16, #tpu.memory_space<vmem>>, vector<1x512x512xbf16>
    %6 = vector.shape_cast %5 : vector<1x512x512xbf16> to vector<512x512xbf16>
    %cst_9 = arith.constant dense<0.000000e+00> : vector<16x512xf32>
    %7 = tpu.matmul %4, %6, %cst_9 {dimension_numbers = #tpu.dot_dimension_numbers<[1], [0], [0], [1], [0, 0, 1, 1], [], []>} : vector<16x512xbf16>, vector<512x512xbf16>, vector<16x512xf32> -> vector<16x512xf32>
    %8 = arith.addf %3, %7 : vector<16x512xf32>
    %cst_10 = arith.constant dense<0.000000e+00> : vector<16xf32>
    %9 = vector.multi_reduction <add>, %8, %cst_10 [1] : vector<16x512xf32> to vector<16xf32>
    %10 = vector.shape_cast %9 : vector<16xf32> to vector<16x1xf32>
    %cst_11 = arith.constant 5.120000e+02 : f32
    %11 = vector.broadcast %cst_11 : f32 to vector<16x1xf32>
    %12 = arith.divf %10, %11 : vector<16x1xf32>
    %13 = vector.broadcast %12 : vector<16x1xf32> to vector<16x512xf32>
    %14 = arith.subf %8, %13 : vector<16x512xf32>
    %15 = arith.mulf %14, %14 : vector<16x512xf32>
    %cst_12 = arith.constant dense<0.000000e+00> : vector<16xf32>
    %16 = vector.multi_reduction <add>, %15, %cst_12 [1] : vector<16x512xf32> to vector<16xf32>
    %17 = vector.shape_cast %16 : vector<16xf32> to vector<16x1xf32>
    %cst_13 = arith.constant 5.120000e+02 : f32
    %18 = vector.broadcast %cst_13 : f32 to vector<16x1xf32>
    %19 = arith.divf %17, %18 : vector<16x1xf32>
    %20 = vector.broadcast %12 : vector<16x1xf32> to vector<16x512xf32>
    %21 = arith.subf %8, %20 : vector<16x512xf32>
    %cst_14 = arith.constant 9.99999974E-6 : f32
    %22 = vector.broadcast %cst_14 : f32 to vector<16x1xf32>
    %23 = arith.addf %19, %22 : vector<16x1xf32>
    %24 = math.rsqrt %23 : vector<16x1xf32>
    %25 = vector.broadcast %24 : vector<16x1xf32> to vector<16x512xf32>
    %26 = arith.mulf %21, %25 : vector<16x512xf32>
    %c0_15 = arith.constant 0 : index
    %c0_16 = arith.constant 0 : index
    %27 = vector.load %arg5[%c0_15, %c0_16] : memref<16x1xf32, #tpu.memory_space<vmem>>, vector<16x1xf32>
    %28 = vector.broadcast %27 : vector<16x1xf32> to vector<16x512xf32>
    %29 = arith.mulf %26, %28 : vector<16x512xf32>
    %c0_17 = arith.constant 0 : index
    %c0_18 = arith.constant 0 : index
    %30 = vector.load %arg6[%c0_17, %c0_18] : memref<16x1xf32, #tpu.memory_space<vmem>>, vector<16x1xf32>
    %31 = vector.broadcast %30 : vector<16x1xf32> to vector<16x512xf32>
    %32 = arith.addf %29, %31 : vector<16x512xf32>
    %cst_19 = arith.constant 0.000000e+00 : f32
    %33 = vector.broadcast %cst_19 : f32 to vector<16x512xf32>
    %34 = arith.cmpf oge, %32, %33 : vector<16x512xf32>
    %cst_20 = arith.constant 0.00999999977 : f32
    %35 = vector.broadcast %cst_20 : f32 to vector<16x512xf32>
    %36 = arith.mulf %35, %32 : vector<16x512xf32>
    %37 = arith.select %34, %32, %36 : vector<16x512xi1>, vector<16x512xf32>
    %c0_21 = arith.constant 0 : index
    %c0_22 = arith.constant 0 : index
    %38 = vector.load %arg7[%c0_21, %c0_22] : memref<3x16xf32, #tpu.memory_space<vmem>>, vector<3x16xf32>
    %cst_23 = arith.constant dense<0.000000e+00> : vector<3x512xf32>
    %39 = tpu.matmul %38, %37, %cst_23 {dimension_numbers = #tpu.dot_dimension_numbers<[1], [0], [0], [1], [0, 0, 1, 1], [], []>} : vector<3x16xf32>, vector<16x512xf32>, vector<3x512xf32> -> vector<3x512xf32>
    %c0_24 = arith.constant 0 : index
    %c0_25 = arith.constant 0 : index
    %40 = vector.load %arg8[%c0_24, %c0_25] : memref<3x1xf32, #tpu.memory_space<vmem>>, vector<3x1xf32>
    %41 = vector.broadcast %40 : vector<3x1xf32> to vector<3x512xf32>
    %42 = arith.addf %39, %41 : vector<3x512xf32>
    %c0_26 = arith.constant 0 : index
    %c0_27 = arith.constant 0 : index
    %c0_28 = arith.constant 0 : index
    %43 = vector.load %arg9[%c0_26, %c0_27, %c0_28] : memref<1x3x512xf32, #tpu.memory_space<vmem>>, vector<1x3x512xf32>
    %44 = vector.shape_cast %43 : vector<1x3x512xf32> to vector<3x512xf32>
    %45 = vector.shape_cast %42 : vector<3x512xf32> to vector<1x3x512xf32>
    tpu.vector_store %arg9[%c0_26, %c0_27, %c0_28], %45 {strides = array<i32>} : memref<1x3x512xf32, #tpu.memory_space<vmem>>, vector<1x3x512xf32>,
    return
  }
  func.func @transform_0(%arg0: i32) -> (i32, i32, i32) {
    %c0_i32 = arith.constant 0 : i32
    %c0_i32_0 = arith.constant 0 : i32
    %c0_i32_1 = arith.constant 0 : i32
    return %arg0, %c0_i32, %c0_i32_0 : i32, i32, i32
  }
  func.func @transform_1(%arg0: i32) -> (i32, i32, i32) {
    %c0_i32 = arith.constant 0 : i32
    %c0_i32_0 = arith.constant 0 : i32
    %c0_i32_1 = arith.constant 0 : i32
    return %arg0, %c0_i32, %c0_i32_0 : i32, i32, i32
  }
  func.func @transform_2(%arg0: i32) -> (i32, i32) {
    %c0_i32 = arith.constant 0 : i32
    %c0_i32_0 = arith.constant 0 : i32
    %c0_i32_1 = arith.constant 0 : i32
    return %c0_i32, %c0_i32_0 : i32, i32
  }
  func.func @transform_3(%arg0: i32) -> (i32, i32) {
    %c0_i32 = arith.constant 0 : i32
    %c0_i32_0 = arith.constant 0 : i32
    %c0_i32_1 = arith.constant 0 : i32
    return %c0_i32, %c0_i32_0 : i32, i32
  }
  func.func @transform_4(%arg0: i32) -> (i32, i32) {
    %c0_i32 = arith.constant 0 : i32
    %c0_i32_0 = arith.constant 0 : i32
    %c0_i32_1 = arith.constant 0 : i32
    return %c0_i32, %c0_i32_0 : i32, i32
  }
  func.func @transform_5(%arg0: i32) -> (i32, i32) {
    %c0_i32 = arith.constant 0 : i32
    %c0_i32_0 = arith.constant 0 : i32
    %c0_i32_1 = arith.constant 0 : i32
    return %c0_i32, %c0_i32_0 : i32, i32
  }
  func.func @transform_6(%arg0: i32) -> (i32, i32) {
    %c0_i32 = arith.constant 0 : i32
    %c0_i32_0 = arith.constant 0 : i32
    %c0_i32_1 = arith.constant 0 : i32
    return %c0_i32, %c0_i32_0 : i32, i32
  }
  func.func @transform_7(%arg0: i32) -> (i32, i32) {
    %c0_i32 = arith.constant 0 : i32
    %c0_i32_0 = arith.constant 0 : i32
    %c0_i32_1 = arith.constant 0 : i32
    return %c0_i32, %c0_i32_0 : i32, i32
  }
  func.func @transform_8(%arg0: i32) -> (i32, i32, i32) {
    %c0_i32 = arith.constant 0 : i32
    %c0_i32_0 = arith.constant 0 : i32
    %c0_i32_1 = arith.constant 0 : i32
    return %arg0, %c0_i32, %c0_i32_0 : i32, i32, i32
  }
}

</mosaic_0001>

<bundles_post_ra>
// kernel: forward.6
= control target key start
LH: loop header
LB: loop body
LE: loop exit
PB: predicated region body
PF: predicated region fallthrough
CT: control target
= control target key end

     0   :  { %s809_s15 = smov 0   ;;  %s883_s0 = inlined_call_operand.vmem [shape: bf16[2,128,512], index: 0, kind: input, shape index: {}]   ;;  %s884_s1 = inlined_call_operand.vmem [shape: bf16[16,128], index: 1, kind: input, shape index: {}]   ;;  %s885_s2 = inlined_call_operand.vmem [shape: f32[16,1], index: 2, kind: input, shape index: {}]   ;;  %s886_s3 = inlined_call_operand.vmem [shape: f32[16,1], index: 3, kind: input, shape index: {}]   ;;  %s887_s4 = inlined_call_operand.vmem [shape: f32[2,16,512], index: 4, kind: output, shape index: {}]  }
   0x1 LB: > { %s665_s16 = sadd.s32 4294967295, %s781_s15   ;;  %p669_p0 = scmp.ge.s32.totalorder %s781_s15, 1  ;;  %s781_s15 = sphi %s809_s15, %s14_s15  }
   0x2   : > { %p162_p1 = scmp.lt.s32.totalorder %s781_s15, 3 }
   0x4   : > { %p163_p2 = pnand %p669_p0, %p162_p1 }
   0x5   : > { %p188_p3 = scmp.lt.s32.totalorder (!%p163_p2), %s665_s16, 1  ;;  %v783_v0 = vmov (!%p163_p2), 0   ;;  %v770_v33 = vld [vmem:[%s884_s1] sm:$0xff] (!%p163_p2)   ;;  %v539_v34 = vld [vmem:[%s885_s2 + $0x8] sm:$0xff] (!%p163_p2) }
   0x6   : > { %166 = sbr.rel (%p163_p2) target bundleno = 596 (0x254), region = 36  ;;  %431 = vmatprep.mubr.bf16.mxu0 (!%p163_p2), %v783_v0  ;;  %474 = vmatprep.mubr.bf16.mxu1 (!%p163_p2), %v783_v0  ;;  %v558_v35 = vld [vmem:[%s886_s3] sm:$0xff] (!%p163_p2) }
   0x7   : > { %721 = vset.pattern.permute.xlu1 (!%p163_p2), %v783_v0  ;;  %720 = vset.pattern.permute.xlu0 (!%p163_p2), %v783_v0  ;;  %v538_v50 = vld [vmem:[%s885_s2] sm:$0xff] (!%p163_p2) }
   0x8   : > { %547 = vperm.xlu1 (!%p163_p2), %721, %v539_v34  }
   0xc   : > { %562 = vperm.xlu1 (!%p163_p2), %721, %v558_v35  }
   0xd   : > { %s889_s16 = smov (!%p188_p3, %s665_s16), 1 }
   0xe   : > { %s709_s17 = sshll.u32 %s889_s16, 8  ;;  %s710_s5 = sshll.u32 %s889_s16, 6 }
   0xf   : > { %s823_s20 = scalar_lea.vmem %s883_s0, %s709_s17  ;;  %s197_s8 = scalar_lea.vmem %s887_s4, %s710_s5 }
  0x10   : > { %v722_v1 = vld [vmem:[%s823_s20 + $0x4] ss:$16 sps:$4 sm:$0xff]   ;;  %v724_v2 = vld [vmem:[%s823_s20 + $0xc] ss:$16 sps:$4 sm:$0xff]   ;;  %v726_v3 = vld [vmem:[%s823_s20] ss:$16 sps:$4 sm:$0xff]  }
  0x11   : > { %399 = vmatprep.subr.bf16.mxu0 %v722_v1  ;;  %v727_v4 = vld [vmem:[%s823_s20 + $0x8] ss:$16 sps:$4 sm:$0xff]   ;;  %442 = vmatprep.subr.bf16.mxu1 %v724_v2  ;;  %v728_v5 = vld [vmem:[%s823_s20 + $0x24] ss:$16 sps:$4 sm:$0xff]   ;;  %v730_v6 = vld [vmem:[%s823_s20 + $0x2c] ss:$16 sps:$4 sm:$0xff]  }
  0x12   : > { %400 = vmatpush1.bf16.msra.mxu0 %v726_v3  ;;  %443 = vmatpush1.bf16.msra.mxu1 %v727_v4  ;;  %v732_v7 = vld [vmem:[%s823_s20 + $0x20] ss:$16 sps:$4 sm:$0xff]   ;;  %v733_v8 = vld [vmem:[%s823_s20 + $0x28] ss:$16 sps:$4 sm:$0xff]   ;;  %v734_v9 = vld [vmem:[%s823_s20 + $0x44] ss:$16 sps:$4 sm:$0xff]  }
  0x13   : > { %401 = vmatprep.subr.bf16.mxu0 %v728_v5  ;;  %444 = vmatprep.subr.bf16.mxu1 %v730_v6  ;;  %v736_v10 = vld [vmem:[%s823_s20 + $0x4c] ss:$16 sps:$4 sm:$0xff]   ;;  %v738_v11 = vld [vmem:[%s823_s20 + $0x40] ss:$16 sps:$4 sm:$0xff]   ;;  %v739_v12 = vld [vmem:[%s823_s20 + $0x48] ss:$16 sps:$4 sm:$0xff]  }
  0x14   : > { %v740_v13 = vld [vmem:[%s823_s20 + $0x64] ss:$16 sps:$4 sm:$0xff]   ;;  %v742_v14 = vld [vmem:[%s823_s20 + $0x6c] ss:$16 sps:$4 sm:$0xff]   ;;  %v744_v15 = vld [vmem:[%s823_s20 + $0x60] ss:$16 sps:$4 sm:$0xff]  }
  0x15   : > { %v745_v16 = vld [vmem:[%s823_s20 + $0x68] ss:$16 sps:$4 sm:$0xff]   ;;  %v746_v17 = vld [vmem:[%s823_s20 + $0x84] ss:$16 sps:$4 sm:$0xff]   ;;  %v748_v18 = vld [vmem:[%s823_s20 + $0x8c] ss:$16 sps:$4 sm:$0xff]  }
  0x16   : > { %402 = vmatpush1.bf16.msra.mxu0 %v732_v7  ;;  %445 = vmatpush1.bf16.msra.mxu1 %v733_v8  ;;  %v750_v19 = vld [vmem:[%s823_s20 + $0x80] ss:$16 sps:$4 sm:$0xff]   ;;  %v751_v20 = vld [vmem:[%s823_s20 + $0x88] ss:$16 sps:$4 sm:$0xff]   ;;  %v752_v21 = vld [vmem:[%s823_s20 + $0xa4] ss:$16 sps:$4 sm:$0xff]  }
  0x17   : > { %403 = vmatprep.subr.bf16.mxu0 %v734_v9  ;;  %446 = vmatprep.subr.bf16.mxu1 %v736_v10  ;;  %v754_v22 = vld [vmem:[%s823_s20 + $0xac] ss:$16 sps:$4 sm:$0xff]   ;;  %v756_v23 = vld [vmem:[%s823_s20 + $0xa0] ss:$16 sps:$4 sm:$0xff]   ;;  %v757_v24 = vld [vmem:[%s823_s20 + $0xa8] ss:$16 sps:$4 sm:$0xff]  }
  0x18   : > { %v758_v25 = vld [vmem:[%s823_s20 + $0xc4] ss:$16 sps:$4 sm:$0xff]   ;;  %v760_v26 = vld [vmem:[%s823_s20 + $0xcc] ss:$16 sps:$4 sm:$0xff]   ;;  %v762_v27 = vld [vmem:[%s823_s20 + $0xc0] ss:$16 sps:$4 sm:$0xff]  }
  0x19   : > { %v763_v28 = vld [vmem:[%s823_s20 + $0xc8] ss:$16 sps:$4 sm:$0xff]   ;;  %v764_v29 = vld [vmem:[%s823_s20 + $0xe4] ss:$16 sps:$4 sm:$0xff]   ;;  %v766_v30 = vld [vmem:[%s823_s20 + $0xec] ss:$16 sps:$4 sm:$0xff]  }
  0x1a   : > { %404 = vmatpush1.bf16.msra.mxu0 %v738_v11  ;;  %447 = vmatpush1.bf16.msra.mxu1 %v739_v12  ;;  %v768_v31 = vld [vmem:[%s823_s20 + $0xe0] ss:$16 sps:$4 sm:$0xff]   ;;  %v769_v32 = vld [vmem:[%s823_s20 + $0xe8] ss:$16 sps:$4 sm:$0xff]  }
  0x1b   : > { %405 = vmatprep.subr.bf16.mxu0 %v740_v13  ;;  %448 = vmatprep.subr.bf16.mxu1 %v742_v14  ;;  %v559_v13 = vld [vmem:[%s886_s3 + $0x8] sm:$0xff] }
  0x1e   : > { %406 = vmatpush1.bf16.msra.mxu0 %v744_v15  ;;  %449 = vmatpush1.bf16.msra.mxu1 %v745_v16 }
  0x1f   : > { %407 = vmatprep.subr.bf16.mxu0 %v746_v17  ;;  %450 = vmatprep.subr.bf16.mxu1 %v748_v18 }
  0x22   : > { %408 = vmatpush1.bf16.msra.mxu0 %v750_v19  ;;  %451 = vmatpush1.bf16.msra.mxu1 %v751_v20 }
  0x23   : > { %409 = vmatprep.subr.bf16.mxu0 %v752_v21  ;;  %452 = vmatprep.subr.bf16.mxu1 %v754_v22 }
  0x26   : > { %410 = vmatpush1.bf16.msra.mxu0 %v756_v23  ;;  %453 = vmatpush1.bf16.msra.mxu1 %v757_v24 }
  0x27   : > { %411 = vmatprep.subr.bf16.mxu0 %v758_v25  ;;  %454 = vmatprep.subr.bf16.mxu1 %v760_v26 }
  0x2a   : > { %412 = vmatpush1.bf16.msra.mxu0 %v762_v27  ;;  %455 = vmatpush1.bf16.msra.mxu1 %v763_v28 }
  0x2b   : > { %413 = vmatprep.subr.bf16.mxu0 %v764_v29  ;;  %456 = vmatprep.subr.bf16.mxu1 %v766_v30 }
  0x2e   : > { %414 = vmatpush1.bf16.msra.mxu0 %v768_v31  ;;  %457 = vmatpush1.bf16.msra.mxu1 %v769_v32 }
  0x31   : > { %432 = vmatmul.mubr.bf16.vlgmr.msra.gmra.mrb[0].mxu0 %v770_v33  ;;  %475 = vmatmul.mubr.bf16.vlgmr.msra.gmra.mrb[0].mxu1 %v770_v33 }
  0x87   : > { %v548_v14 = vpop.permute.xlu1 %547 }
  0x8b   : > { %v563_v15 = vpop.permute.xlu1 %562 }
 0x104   : > { %v433_v36 = vpop.f32.mrb[0].mxu0  ;;  %v476_v37 = vpop.f32.mrb[0].mxu1 }
 0x105   : > { %v435_v38 = vpop.f32.mrb[1].mxu0  ;;  %v478_v39 = vpop.f32.mrb[1].mxu1 }
 0x106   : > { %v485_v40 = vadd.f32 %v435_v38, %v433_v36  ;;  %v437_v41 = vpop.f32.mrb[2].mxu0  ;;  %v480_v42 = vpop.f32.mrb[2].mxu1 }
 0x107   : > { %v439_v43 = vpop.f32.mrb[3].mxu0  ;;  %v482_v44 = vpop.f32.mrb[3].mxu1 }
 0x108   : > { %v490_v45 = vadd.f32 %v439_v43, %v437_v41  ;;  %v486_v46 = vadd.f32 %v485_v40, %v476_v37 }
 0x10a   : > { %v491_v47 = vadd.f32 %v490_v45, %v480_v42  ;;  %v487_v48 = vadd.f32 %v486_v46, %v478_v39 }
 0x10c   : > { %v492_v49 = vadd.f32 %v491_v47, %v482_v44  ;;  %488 = vadd.xlane.f32.xlu0 %v487_v48 }
 0x110   : > { %493 = vadd.xlane.f32.xlu0 %v492_v49 }
 0x126   : > { %542 = vperm.xlu0 %720, %v538_v50  }
 0x199   : > { %v489_v51 = vpop.xlane.xlu0 %488 }
 0x19a   : > { %v496_v52 = vmul.f32 0.001953125, %v489_v51 }
 0x19c   : > { %v498_v53 = vsub.f32 %v433_v36, %v496_v52  ;;  %v499_v54 = vsub.f32 %v435_v38, %v496_v52  ;;  %v500_v55 = vsub.f32 %v476_v37, %v496_v52  ;;  %v501_v57 = vsub.f32 %v478_v39, %v496_v52 }
 0x19d   : > { %v494_v56 = vpop.xlane.xlu0 %493 }
 0x19e   : > { %v497_v58 = vmul.f32 0.001953125, %v494_v56  ;;  %v506_v59 = vmul.f32 %v498_v53, %v498_v53  ;;  %v507_v60 = vmul.f32 %v499_v54, %v499_v54  ;;  %v508_v61 = vmul.f32 %v500_v55, %v500_v55 }
 0x19f   : > { %v509_v2 = vmul.f32 %v501_v57, %v501_v57 }
 0x1a0   : > { %v502_v62 = vsub.f32 %v437_v41, %v497_v58  ;;  %v503_v63 = vsub.f32 %v439_v43, %v497_v58  ;;  %v514_v0 = vadd.f32 %v507_v60, %v506_v59  ;;  %v504_v1 = vsub.f32 %v480_v42, %v497_v58 }
 0x1a1   : > { %v505_v4 = vsub.f32 %v482_v44, %v497_v58 }
 0x1a2   : > { %v515_v3 = vadd.f32 %v514_v0, %v508_v61  ;;  %v510_v5 = vmul.f32 %v502_v62, %v502_v62  ;;  %v511_v6 = vmul.f32 %v503_v63, %v503_v63  ;;  %v512_v8 = vmul.f32 %v504_v1, %v504_v1 }
 0x1a3   : > { %v513_v10 = vmul.f32 %v505_v4, %v505_v4 }
 0x1a4   : > { %v516_v7 = vadd.f32 %v515_v3, %v509_v2  ;;  %v519_v9 = vadd.f32 %v511_v6, %v510_v5 }
 0x1a5   : > { %v543_v23 = vpop.permute.xlu0 %542 }
 0x1a6   : > { %517 = vadd.xlane.f32.xlu1 %v516_v7  ;;  %v520_v11 = vadd.f32 %v519_v9, %v512_v8 }
 0x1a8   : > { %v521_v12 = vadd.f32 %v520_v11, %v513_v10 }
 0x1aa   : > { %522 = vadd.xlane.f32.xlu1 %v521_v12 }
 0x1bb   : > { %567 = vperm.xlu1 %721, %v559_v13  }
 0x233   : > { %v518_v16 = vpop.xlane.xlu1 %517 }
 0x234   : > { %v524_v17 = vmul.f32 0.001953125, %v518_v16 }
 0x236   : > { %v526_v18 = vadd.f32 1e-05, %v524_v17 }
 0x237   : > { %v523_v19 = vpop.xlane.xlu1 %522 }
 0x238   : > { %771 = vrsqrt.f32 %v526_v18  ;;  %v525_v20 = vmul.f32 0.001953125, %v523_v19 }
 0x23a   : > { %v527_v21 = vadd.f32 1e-05, %v525_v20 }
 0x23b   : > { %v568_v45 = vpop.permute.xlu1 %567 }
 0x23c   : > { %773 = vrsqrt.f32 %v527_v21 }
 0x242   : > { %v772_v22 = vpop.eup %771 }
 0x243   : > { %v530_v24 = vmul.f32 %v772_v22, %v498_v53  ;;  %v531_v25 = vmul.f32 %v772_v22, %v499_v54  ;;  %v532_v26 = vmul.f32 %v772_v22, %v500_v55  ;;  %v533_v27 = vmul.f32 %v772_v22, %v501_v57 }
 0x245   : > { %v550_v28 = vmul.f32 %v543_v23, %v530_v24  ;;  %v551_v29 = vmul.f32 %v543_v23, %v531_v25  ;;  %v552_v30 = vmul.f32 %v543_v23, %v532_v26  ;;  %v553_v31 = vmul.f32 %v543_v23, %v533_v27 }
 0x246   : > { %v774_v32 = vpop.eup %773 }
 0x247   : > { %v534_v33 = vmul.f32 %v774_v32, %v502_v62  ;;  %v535_v34 = vmul.f32 %v774_v32, %v503_v63  ;;  %v536_v35 = vmul.f32 %v774_v32, %v504_v1  ;;  %v537_v36 = vmul.f32 %v774_v32, %v505_v4 }
 0x248   : > { %v570_v37 = vadd.f32 %v563_v15, %v550_v28  ;;  %v571_v38 = vadd.f32 %v563_v15, %v551_v29  ;;  %v572_v39 = vadd.f32 %v563_v15, %v552_v30  ;;  %v573_v40 = vadd.f32 %v563_v15, %v553_v31 }
 0x249   : > { %v554_v41 = vmul.f32 %v548_v14, %v534_v33  ;;  %v555_v42 = vmul.f32 %v548_v14, %v535_v34  ;;  %v556_v43 = vmul.f32 %v548_v14, %v536_v35  ;;  %v557_v44 = vmul.f32 %v548_v14, %v537_v36 }
 0x24a   : > { %vm578_vm0 = vcmp.ge.f32.partialorder %v570_v37, 0.0  ;;  %vm579_vm1 = vcmp.ge.f32.partialorder %v571_v38, 0.0  ;;  %vm580_vm2 = vcmp.ge.f32.partialorder %v572_v39, 0.0  ;;  %vm581_vm3 = vcmp.ge.f32.partialorder %v573_v40, 0.0 }
 0x24b   : > { %v574_v46 = vadd.f32 %v568_v45, %v554_v41  ;;  %v575_v47 = vadd.f32 %v568_v45, %v555_v42  ;;  %v576_v48 = vadd.f32 %v568_v45, %v556_v43  ;;  %v577_v49 = vadd.f32 %v568_v45, %v557_v44 }
 0x24c   : > { %v586_v50 = vmul.f32 0.01, %v570_v37  ;;  %v587_v51 = vmul.f32 0.01, %v571_v38  ;;  %v588_v52 = vmul.f32 0.01, %v572_v39 }
 0x24d   : > { %vm582_vm4 = vcmp.ge.f32.partialorder %v574_v46, 0.0  ;;  %vm583_vm5 = vcmp.ge.f32.partialorder %v575_v47, 0.0  ;;  %vm584_vm6 = vcmp.ge.f32.partialorder %v576_v48, 0.0  ;;  %vm585_vm7 = vcmp.ge.f32.partialorder %v577_v49, 0.0 }
 0x24e   : > { %v590_v53 = vmul.f32 0.01, %v574_v46  ;;  %v591_v54 = vmul.f32 0.01, %v575_v47  ;;  %v592_v55 = vmul.f32 0.01, %v576_v48  ;;  %v594_v56 = vsel %vm578_vm0, %v570_v37, %v586_v50 }
 0x24f   : > { %v593_v57 = vmul.f32 0.01, %v577_v49  ;;  %v589_v58 = vmul.f32 0.01, %v573_v40  ;;  %v595_v59 = vsel %vm579_vm1, %v571_v38, %v587_v51  ;;  %v596_v60 = vsel %vm580_vm2, %v572_v39, %v588_v52  ;;  %602 = vst [vmem:[%s197_s8] sm:$0xff] %v594_v56 }
 0x250   : > { %v598_v61 = vsel %vm582_vm4, %v574_v46, %v590_v53  ;;  %v599_v62 = vsel %vm583_vm5, %v575_v47, %v591_v54  ;;  %v600_v63 = vsel %vm584_vm6, %v576_v48, %v592_v55  ;;  %603 = vst [vmem:[%s197_s8 + $0x8] sm:$0xff] %v595_v59  ;;  %604 = vst [vmem:[%s197_s8 + $0x10] sm:$0xff] %v596_v60 }
 0x251   : > { %v601_v0 = vsel %vm585_vm7, %v577_v49, %v593_v57  ;;  %606 = vst [vmem:[%s197_s8 + $0x20] sm:$0xff] %v598_v61  ;;  %607 = vst [vmem:[%s197_s8 + $0x28] sm:$0xff] %v599_v62  ;;  %v597_v1 = vsel %vm581_vm3, %v573_v40, %v589_v58 }
 0x252   : > { %608 = vst [vmem:[%s197_s8 + $0x30] sm:$0xff] %v600_v63  ;;  %609 = vst [vmem:[%s197_s8 + $0x38] sm:$0xff] %v601_v0 }
 0x253   : > { %605 = vst [vmem:[%s197_s8 + $0x18] sm:$0xff] %v597_v1 }
 0x254 PF: > { %s14_s15 = sadd.s32 1, %s781_s15  }
 0x255   : > { %p11_p4 = scmp.ge.s32.totalorder %s14_s15, 4  }
 0x257   :  { %13 = sbr.rel (!%p11_p4) target bundleno = 1 (0x1), region = 66 }

// kernel: forward.8
= control target key start
LH: loop header
LB: loop body
LE: loop exit
PB: predicated region body
PF: predicated region fallthrough
CT: control target
= control target key end

     0   :  { %s1278_s18 = smov 0   ;;  %s1503_s0 = inlined_call_operand.vmem [shape: f32[2,8,16,64], index: 0, kind: input, shape index: {}]   ;;  %s1504_s1 = inlined_call_operand.vmem [shape: f32[8,128], index: 1, kind: input, shape index: {}]   ;;  %s1505_s2 = inlined_call_operand.vmem [shape: f32[128,8], index: 2, kind: input, shape index: {}]   ;;  %s1506_s3 = inlined_call_operand.vmem [shape: bf16[16,128], index: 3, kind: input, shape index: {}]   ;;  %s1507_s4 = inlined_call_operand.vmem [shape: f32[16,1], index: 4, kind: input, shape index: {}]   ;;  %s1508_s5 = inlined_call_operand.vmem [shape: f32[2,16,64], index: 5, kind: output, shape index: {}]  }
   0x1 LB: > { %s965_s19 = sadd.s32 4294967295, %s1242_s18   ;;  %p969_p0 = scmp.ge.s32.totalorder %s1242_s18, 1  ;;  %s1242_s18 = sphi %s1278_s18, %s15_s18  }
   0x2   : > { %p187_p1 = scmp.lt.s32.totalorder %s1242_s18, 3 }
   0x4   : > { %p188_p2 = pnand %p969_p0, %p187_p1 }
   0x5   : > { %p215_p3 = scmp.lt.s32.totalorder (!%p188_p2), %s965_s19, 1  ;;  %vm313_vm0 = vcmask (!%p188_p2), 523264   ;;  %vm1245_vm1 = vmmov (!%p188_p2), 0   ;;  %vm467_vm2 = vcmask (!%p188_p2), 64512  }
   0x6   : > { %191 = sbr.rel (%p188_p2) target bundleno = 1060 (0x424), region = 40 }
   0xd   : > { %s1510_s19 = smov (!%p215_p3, %s965_s19), 1 }
   0xe   : > { %s1007_s20 = sshll.u32 %s1510_s19, 7  ;;  %s1008_s16 = sshll.u32 %s1510_s19, 4 }
   0xf   : > { %s1292_s23 = scalar_lea.vmem %s1503_s0, %s1007_s20  ;;  %s224_s21 = scalar_lea.vmem %s1508_s5, %s1008_s16 }
  0x10   : > { %v226_v0 = vld [vmem:[%s1292_s23] sm:$0xff]  ;;  %v974_v1 = vld [vmem:[%s1292_s23 + $0x10] sm:$0xff]  ;;  %v227_v14 = vld [vmem:[%s1292_s23 + $0x8] sm:$0xff] }
  0x11   : > { %v976_v2 = vld [vmem:[%s1292_s23 + $0x20] sm:$0xff]  ;;  %v978_v3 = vld [vmem:[%s1292_s23 + $0x30] sm:$0xff]  ;;  %v257_v6 = vsub.f32 %v226_v0, %v974_v1  ;;  %v249_v7 = vadd.f32 %v974_v1, %v226_v0  ;;  %v975_v17 = vld [vmem:[%s1292_s23 + $0x18] sm:$0xff] }
  0x12   : > { %v980_v4 = vld [vmem:[%s1292_s23 + $0x40] sm:$0xff]  ;;  %v982_v5 = vld [vmem:[%s1292_s23 + $0x50] sm:$0xff]  ;;  %v259_v10 = vsub.f32 %v976_v2, %v978_v3  ;;  %v251_v12 = vadd.f32 %v978_v3, %v976_v2  ;;  %v977_v18 = vld [vmem:[%s1292_s23 + $0x28] sm:$0xff]  ;;  %v258_v25 = vsub.f32 %v227_v14, %v975_v17  ;;  %v250_v31 = vadd.f32 %v975_v17, %v227_v14 }
  0x13   : > { %v984_v8 = vld [vmem:[%s1292_s23 + $0x60] sm:$0xff]  ;;  %v986_v9 = vld [vmem:[%s1292_s23 + $0x70] sm:$0xff]  ;;  %v261_v11 = vsub.f32 %v980_v4, %v982_v5  ;;  %v253_v13 = vadd.f32 %v982_v5, %v980_v4  ;;  %v979_v19 = vld [vmem:[%s1292_s23 + $0x38] sm:$0xff] }
  0x14   : > { %v263_v15 = vsub.f32 %v984_v8, %v986_v9  ;;  %v255_v16 = vadd.f32 %v986_v9, %v984_v8  ;;  %v1306_v20 = vadd.f32 %v259_v10, %v257_v6  ;;  %v265_v21 = vadd.f32 %v251_v12, %v249_v7  ;;  %v981_v22 = vld [vmem:[%s1292_s23 + $0x48] sm:$0xff]  ;;  %v983_v23 = vld [vmem:[%s1292_s23 + $0x58] sm:$0xff] }
  0x15   : > { %v985_v24 = vld [vmem:[%s1292_s23 + $0x68] sm:$0xff]  ;;  %v260_v26 = vsub.f32 %v977_v18, %v979_v19  ;;  %v987_v29 = vld [vmem:[%s1292_s23 + $0x78] sm:$0xff]  ;;  %v262_v30 = vsub.f32 %v981_v22, %v983_v23  ;;  %v252_v34 = vadd.f32 %v979_v19, %v977_v18  ;;  %v254_v35 = vadd.f32 %v983_v23, %v981_v22 }
  0x16   : > { %v1311_v27 = vadd.f32 %v263_v15, %v261_v11  ;;  %v267_v28 = vadd.f32 %v255_v16, %v253_v13  ;;  %v264_v32 = vsub.f32 %v985_v24, %v987_v29  ;;  %v256_v38 = vadd.f32 %v987_v29, %v985_v24 }
  0x17   : > { %v274_v33 = vadd.f32 %v260_v26, %v258_v25  ;;  %v269_v39 = vsub.f32 %v249_v7, %v251_v12  ;;  %v266_v41 = vadd.f32 %v252_v34, %v250_v31  ;;  %v270_v42 = vsub.f32 %v250_v31, %v252_v34 }
  0x18   : > { %v285_v36 = vadd.f32 %v1311_v27, %v1306_v20  ;;  %v281_v37 = vadd.f32 %v267_v28, %v265_v21  ;;  %v276_v40 = vadd.f32 %v264_v32, %v262_v30  ;;  %v271_v43 = vsub.f32 %v253_v13, %v255_v16 }
  0x19   : > { %v268_v46 = vadd.f32 %v256_v38, %v254_v35  ;;  %v272_v47 = vsub.f32 %v254_v35, %v256_v38  ;;  %v278_v50 = vsub.f32 %v258_v25, %v260_v26  ;;  %v280_v51 = vsub.f32 %v262_v30, %v264_v32 }
  0x1a   : > { %v1316_v44 = vmul.f32 0.35355338, %v285_v36  ;;  %v1318_v45 = vmul.f32 0.35355338, %v281_v37  ;;  %v286_v48 = vadd.f32 %v276_v40, %v274_v33  ;;  %v289_v49 = vadd.f32 %v271_v43, %v269_v39 }
  0x1b   : > { %v282_v54 = vadd.f32 %v268_v46, %v266_v41  ;;  %v290_v55 = vadd.f32 %v272_v47, %v270_v42  ;;  %v294_v57 = vadd.f32 %v280_v51, %v278_v50  ;;  %v277_v58 = vsub.f32 %v257_v6, %v259_v10 }
  0x1c   : > { %v320_v52 = vsel %vm313_vm0, %v1316_v44, 0.0  ;;  %v314_v53 = vsel %vm313_vm0, %v1318_v45, 0.0  ;;  %v1324_v56 = vmul.f32 0.35355338, %v286_v48  ;;  %v1330_v61 = vmul.f32 0.35355338, %v289_v49 }
  0x1d   : > { %321 = vadd.xlane.f32.xlu1 %v320_v52  ;;  %315 = vadd.xlane.f32.xlu0 %v314_v53  ;;  %v1326_v59 = vmul.f32 0.35355338, %v282_v54  ;;  %v1328_v60 = vmul.f32 0.35355338, %v290_v55  ;;  %v279_v62 = vsub.f32 %v261_v11, %v263_v15  ;;  %v1336_v2 = vmul.f32 0.35355338, %v294_v57 }
  0x1e   : > { %v323_v63 = vsel %vm313_vm0, %v1324_v56, 0.0  ;;  %v298_v3 = vsub.f32 %v266_v41, %v268_v46  ;;  %v326_v5 = vsel %vm313_vm0, %v1330_v61, 0.0  ;;  %v297_v7 = vsub.f32 %v265_v21, %v267_v28 }
  0x1f   : > { %v317_v0 = vsel %vm313_vm0, %v1326_v59, 0.0  ;;  %v293_v1 = vadd.f32 %v279_v62, %v277_v58  ;;  %v329_v4 = vsel %vm313_vm0, %v1328_v60, 0.0  ;;  %v335_v8 = vsel %vm313_vm0, %v1336_v2, 0.0 }
  0x20   : > { %v1346_v9 = vmul.f32 0.35355338, %v298_v3  ;;  %v1350_v11 = vmul.f32 0.35355338, %v297_v7  ;;  %v302_v12 = vsub.f32 %v274_v33, %v276_v40  ;;  %v301_v13 = vsub.f32 %v1306_v20, %v1311_v27 }
  0x21   : > { %324 = vadd.xlane.f32.xlu1 %v323_v63  ;;  %318 = vadd.xlane.f32.xlu0 %v317_v0  ;;  %v1342_v6 = vmul.f32 0.35355338, %v293_v1  ;;  %v306_v15 = vsub.f32 %v270_v42, %v272_v47  ;;  %v305_v19 = vsub.f32 %v269_v39, %v271_v43  ;;  %v310_v22 = vsub.f32 %v278_v50, %v280_v51 }
  0x22   : > { %v341_v14 = vsel %vm313_vm0, %v1346_v9, 0.0  ;;  %v338_v16 = vsel %vm313_vm0, %v1350_v11, 0.0  ;;  %v1358_v17 = vmul.f32 0.35355338, %v302_v12  ;;  %v1360_v18 = vmul.f32 0.35355338, %v301_v13 }
  0x23   : > { %v332_v10 = vsel %vm313_vm0, %v1342_v6, 0.0  ;;  %v1362_v21 = vmul.f32 0.35355338, %v306_v15  ;;  %v1368_v24 = vmul.f32 0.35355338, %v305_v19  ;;  %v309_v25 = vsub.f32 %v277_v58, %v279_v62 }
  0x24   : > { %v347_v20 = vsel %vm313_vm0, %v1358_v17, 0.0  ;;  %v344_v23 = vsel %vm313_vm0, %v1360_v18, 0.0  ;;  %v1374_v28 = vmul.f32 0.35355338, %v310_v22  ;;  %v1244_v30 = vmov 0.0|0.0  }
  0x25   : > { %330 = vadd.xlane.f32.xlu1 %v329_v4  ;;  %327 = vadd.xlane.f32.xlu0 %v326_v5  ;;  %v353_v26 = vsel %vm313_vm0, %v1362_v21, 0.0  ;;  %v350_v27 = vsel %vm313_vm0, %v1368_v24, 0.0  ;;  %v1376_v29 = vmul.f32 0.35355338, %v309_v25  ;;  %v1246_v33 = vmov 0.0   ;;  %v451_v25 = vld [vmem:[%s1505_s2] sm:$0xff] }
  0x26   : > { %1133 = vmatprep.subr.bf16.mxu0 %v1244_v30  ;;  %v359_v31 = vsel %vm313_vm0, %v1374_v28, 0.0  ;;  %1084 = vmatprep.mubr.msk.f32.mxu0 %vm1245_vm1, %v1246_v33 }
  0x27   : > { %v356_v32 = vsel %vm313_vm0, %v1376_v29, 0.0  ;;  %1089 = vmatprep.mubr.msk.f32.mxu1 %vm467_vm2, %v451_v25 }
  0x29   : > { %336 = vadd.xlane.f32.xlu1 %v335_v8  ;;  %333 = vadd.xlane.f32.xlu0 %v332_v10 }
  0x2d   : > { %342 = vadd.xlane.f32.xlu1 %v341_v14  ;;  %339 = vadd.xlane.f32.xlu0 %v338_v16 }
  0x31   : > { %348 = vadd.xlane.f32.xlu1 %v347_v20  ;;  %345 = vadd.xlane.f32.xlu0 %v344_v23  ;;  %v379_v23 = vld [vmem:[%s1504_s1] sm:$0xff] }
  0x35   : > { %354 = vadd.xlane.f32.xlu1 %v353_v26  ;;  %351 = vadd.xlane.f32.xlu0 %v350_v27 }
  0x39   : > { %360 = vadd.xlane.f32.xlu1 %v359_v31  ;;  %357 = vadd.xlane.f32.xlu0 %v356_v32  ;;  %v453_v32 = vld [vmem:[%s1505_s2 + $0x10] sm:$0xff] }
  0xaa   : > { %v322_v34 = vpop.xlane.xlu1 %321  ;;  %v316_v35 = vpop.xlane.xlu0 %315 }
  0xab   : > { %v363_v38 = vmul.f32 0.015625, %v316_v35  ;;  %v365_v40 = vmul.f32 0.015625, %v322_v34  ;;  %v454_v34 = vld [vmem:[%s1505_s2 + $0x18] sm:$0xff]  ;;  %v455_v35 = vld [vmem:[%s1505_s2 + $0x20] sm:$0xff] }
  0xae   : > { %v325_v36 = vpop.xlane.xlu1 %324  ;;  %v319_v37 = vpop.xlane.xlu0 %318 }
  0xaf   : > { %v364_v39 = vmul.f32 0.015625, %v319_v37  ;;  %v366_v41 = vmul.f32 0.015625, %v325_v36  ;;  %v456_v36 = vld [vmem:[%s1505_s2 + $0x28] sm:$0xff]  ;;  %v457_v37 = vld [vmem:[%s1505_s2 + $0x30] sm:$0xff] }
  0xb1   : > { %v1134_v42 = vpack.c.bf16 %v364_v39, %v363_v38  ;;  %v1137_v49 = vpack.c.bf16 %v366_v41, %v365_v40  ;;  %v458_v38 = vld [vmem:[%s1505_s2 + $0x38] sm:$0xff]  ;;  %v459_v39 = vld [vmem:[%s1505_s2 + $0x40] sm:$0xff]  ;;  %v460_v40 = vld [vmem:[%s1505_s2 + $0x48] sm:$0xff] }
  0xb2   : > { %v331_v43 = vpop.xlane.xlu1 %330  ;;  %v328_v46 = vpop.xlane.xlu0 %327  ;;  %v461_v41 = vld [vmem:[%s1505_s2 + $0x50] sm:$0xff] }
  0xb3   : > { %1135 = vmatpush3.bf16.msra.mxu0 %v1134_v42  ;;  %v368_v47 = vmul.f32 0.015625, %v331_v43  ;;  %v367_v48 = vmul.f32 0.015625, %v328_v46  ;;  %v462_v42 = vld [vmem:[%s1505_s2 + $0x58] sm:$0xff]  ;;  %v463_v43 = vld [vmem:[%s1505_s2 + $0x60] sm:$0xff]  ;;  %v464_v46 = vld [vmem:[%s1505_s2 + $0x68] sm:$0xff] }
  0xb4   : > { %1136 = vmatprep.subr.bf16.mxu0 %v1244_v30 }
  0xb5   : > { %v1140_v52 = vpack.c.bf16 %v368_v47, %v367_v48  ;;  %v465_v47 = vld [vmem:[%s1505_s2 + $0x70] sm:$0xff]  ;;  %v466_v48 = vld [vmem:[%s1505_s2 + $0x78] sm:$0xff] }
  0xb6   : > { %v337_v50 = vpop.xlane.xlu1 %336  ;;  %v334_v51 = vpop.xlane.xlu0 %333 }
  0xb7   : > { %1138 = vmatpush3.bf16.msra.mxu0 %v1137_v49  ;;  %v370_v53 = vmul.f32 0.015625, %v337_v50  ;;  %v369_v54 = vmul.f32 0.015625, %v334_v51  ;;  %v1247_v49 = vmov 0  }
  0xb8   : > { %1139 = vmatprep.subr.bf16.mxu0 %v1244_v30  ;;  %1170 = vset.pattern.permute.xlu1 %v1247_v49 }
  0xb9   : > { %v1143_v58 = vpack.c.bf16 %v370_v53, %v369_v54  ;;  %1169 = vset.pattern.permute.xlu0 %v1247_v49 }
  0xba   : > { %v343_v55 = vpop.xlane.xlu1 %342  ;;  %v340_v57 = vpop.xlane.xlu0 %339 }
  0xbb   : > { %1141 = vmatpush3.bf16.msra.mxu0 %v1140_v52  ;;  %v372_v62 = vmul.f32 0.015625, %v343_v55  ;;  %v371_v63 = vmul.f32 0.015625, %v340_v57 }
  0xbc   : > { %1142 = vmatprep.subr.bf16.mxu0 %v1244_v30 }
  0xbd   : > { %v1146_v3 = vpack.c.bf16 %v372_v62, %v371_v63 }
  0xbe   : > { %v349_v0 = vpop.xlane.xlu1 %348  ;;  %v346_v1 = vpop.xlane.xlu0 %345 }
  0xbf   : > { %1144 = vmatpush3.bf16.msra.mxu0 %v1143_v58  ;;  %v374_v4 = vmul.f32 0.015625, %v349_v0  ;;  %v373_v5 = vmul.f32 0.015625, %v346_v1 }
  0xc0   : > { %1145 = vmatprep.subr.bf16.mxu0 %v1244_v30 }
  0xc1   : > { %v1149_v10 = vpack.c.bf16 %v374_v4, %v373_v5 }
  0xc2   : > { %v355_v7 = vpop.xlane.xlu1 %354  ;;  %v352_v8 = vpop.xlane.xlu0 %351 }
  0xc3   : > { %1147 = vmatpush3.bf16.msra.mxu0 %v1146_v3  ;;  %v376_v12 = vmul.f32 0.015625, %v355_v7  ;;  %v375_v13 = vmul.f32 0.015625, %v352_v8 }
  0xc4   : > { %1148 = vmatprep.subr.bf16.mxu0 %v1244_v30 }
  0xc5   : > { %v1152_v16 = vpack.c.bf16 %v376_v12, %v375_v13 }
  0xc6   : > { %v361_v14 = vpop.xlane.xlu1 %360  ;;  %v358_v15 = vpop.xlane.xlu0 %357 }
  0xc7   : > { %1150 = vmatpush3.bf16.msra.mxu0 %v1149_v10  ;;  %v378_v19 = vmul.f32 0.015625, %v361_v14  ;;  %v377_v22 = vmul.f32 0.015625, %v358_v15 }
  0xc8   : > { %1151 = vmatprep.subr.bf16.mxu0 %v1244_v30 }
  0xc9   : > { %v1155_v20 = vpack.c.bf16 %v378_v19, %v377_v22 }
  0xcb   : > { %1153 = vmatpush3.bf16.msra.mxu0 %v1152_v16 }
  0xcc   : > { %1154 = vmatprep.subr.bf16.mxu0 %v1244_v30  ;;  %v452_v30 = vld [vmem:[%s1505_s2 + $0x8] sm:$0xff] }
  0xcf   : > { %1156 = vmatpush3.bf16.msra.mxu0 %v1155_v20 }
  0xd2   : > { %1085 = vmatmul.mubr.f32.vlgmr.msra.gmra.mrb[0].mxu0 %v379_v23 }
 0x1a5   : > { %v446_v26 = vpop.f32.mrb[0].mxu0 }
 0x1a6   : > { %v450_v27 = vmax.f32 %v446_v26, 0.0  ;;  %v1086_v31 = vpop.f32.mrb[1].mxu0 }
 0x1a8   : > { %1087 = vmatprep.subr.mxu1 %v450_v27 }
 0x1a9   : > { %1088 = vmatpush3.msra.mxu1 %v450_v27 }
 0x1aa   : > { %1090 = vmatmul.mubr.msk.f32.vlgmr.msra.gmra.mrb[0].mxu1 %vm467_vm2, %v452_v30  ;;  %1113 = vmatprep.subr.bf16.mxu1 %v1246_v33 }
 0x1ab   : > { %1092 = vmatprep.mubr.msk.f32.mxu1 %vm467_vm2, %v453_v32 }
 0x1ae   : > { %1093 = vmatmul.mubr.msk.f32.gmra.mrb[2].mxu1 %vm467_vm2, %v454_v34 }
 0x1af   : > { %1095 = vmatprep.mubr.msk.f32.mxu1 %vm467_vm2, %v455_v35 }
 0x1b2   : > { %1096 = vmatmul.mubr.msk.f32.gmra.mrb[4].mxu1 %vm467_vm2, %v456_v36 }
 0x1b3   : > { %1098 = vmatprep.mubr.msk.f32.mxu1 %vm467_vm2, %v457_v37 }
 0x1b6   : > { %1099 = vmatmul.mubr.msk.f32.gmra.mrb[6].mxu1 %vm467_vm2, %v458_v38 }
 0x1b7   : > { %1101 = vmatprep.mubr.msk.f32.mxu1 %vm467_vm2, %v459_v39 }
 0x1ba   : > { %1102 = vmatmul.mubr.msk.f32.gmra.mrb[8].mxu1 %vm467_vm2, %v460_v40 }
 0x1bb   : > { %1104 = vmatprep.mubr.msk.f32.mxu1 %vm467_vm2, %v461_v41 }
 0x1be   : > { %1105 = vmatmul.mubr.msk.f32.gmra.mrb[10].mxu1 %vm467_vm2, %v462_v42 }
 0x1bf   : > { %1107 = vmatprep.mubr.msk.f32.mxu1 %vm467_vm2, %v463_v43 }
 0x1c2   : > { %1108 = vmatmul.mubr.msk.f32.gmra.mrb[12].mxu1 %vm467_vm2, %v464_v46 }
 0x1c3   : > { %1110 = vmatprep.mubr.msk.f32.mxu1 %vm467_vm2, %v465_v47 }
 0x1c6   : > { %1111 = vmatmul.mubr.msk.f32.gmra.mrb[14].mxu1 %vm467_vm2, %v466_v48 }
 0x1c7   : > { %1129 = vmatprep.mubr.msk.bf16.mxu1 %vm1245_vm1, %v1246_v33 }
 0x27d   : > { %v1091_v50 = vpop.f32.mrb[0].mxu1 }
 0x27e   : > { %v662_v51 = vsub.f32 0.0, %v1091_v50  ;;  %v582_v52 = vpop.f32.mrb[1].mxu1 }
 0x27f   : > { %v661_v53 = vsub.f32 0.0, %v582_v52 }
 0x280   : > { %v679_v54 = vmul.f32 1.442695, %v662_v51 }
 0x281   : > { %v677_v55 = vmul.f32 1.442695, %v661_v53  ;;  %v1094_v57 = vpop.f32.mrb[2].mxu1 }
 0x282   : > { %1172 = vpow2.f32 %v679_v54  ;;  %v664_v58 = vsub.f32 0.0, %v1094_v57  ;;  %v592_v62 = vpop.f32.mrb[3].mxu1 }
 0x283   : > { %1174 = vpow2.f32 %v677_v55  ;;  %v663_v63 = vsub.f32 0.0, %v592_v62 }
 0x284   : > { %v683_v0 = vmul.f32 1.442695, %v664_v58 }
 0x285   : > { %v681_v1 = vmul.f32 1.442695, %v663_v63  ;;  %v1097_v3 = vpop.f32.mrb[4].mxu1 }
 0x286   : > { %1176 = vpow2.f32 %v683_v0  ;;  %v666_v4 = vsub.f32 0.0, %v1097_v3  ;;  %v602_v5 = vpop.f32.mrb[5].mxu1 }
 0x287   : > { %1178 = vpow2.f32 %v681_v1  ;;  %v665_v7 = vsub.f32 0.0, %v602_v5 }
 0x288   : > { %v687_v8 = vmul.f32 1.442695, %v666_v4 }
 0x289   : > { %v685_v10 = vmul.f32 1.442695, %v665_v7  ;;  %v1100_v12 = vpop.f32.mrb[6].mxu1 }
 0x28a   : > { %1180 = vpow2.f32 %v687_v8  ;;  %v668_v13 = vsub.f32 0.0, %v1100_v12  ;;  %v612_v14 = vpop.f32.mrb[7].mxu1 }
 0x28b   : > { %1182 = vpow2.f32 %v685_v10  ;;  %v667_v20 = vsub.f32 0.0, %v612_v14 }
 0x28c   : > { %v1173_v15 = vpop.eup %1172  ;;  %v691_v16 = vmul.f32 1.442695, %v668_v13 }
 0x28d   : > { %v1175_v19 = vpop.eup %1174  ;;  %v710_v22 = vadd.f32 1.0, %v1173_v15  ;;  %v1103_v23 = vpop.f32.mrb[8].mxu1  ;;  %v689_v36 = vmul.f32 1.442695, %v667_v20 }
 0x28e   : > { %v709_v25 = vadd.f32 1.0, %v1175_v19  ;;  %1184 = vpow2.f32 %v691_v16  ;;  %v670_v26 = vsub.f32 0.0, %v1103_v23  ;;  %v622_v27 = vpop.f32.mrb[9].mxu1 }
 0x28f   : > { %1186 = vrcp.f32 %v710_v22  ;;  %v669_v32 = vsub.f32 0.0, %v622_v27 }
 0x290   : > { %v1177_v31 = vpop.eup %1176  ;;  %1188 = vrcp.f32 %v709_v25  ;;  %v695_v30 = vmul.f32 1.442695, %v670_v26 }
 0x291   : > { %v1179_v34 = vpop.eup %1178  ;;  %v712_v35 = vadd.f32 1.0, %v1177_v31  ;;  %v1106_v37 = vpop.f32.mrb[10].mxu1  ;;  %v693_v43 = vmul.f32 1.442695, %v669_v32 }
 0x292   : > { %1190 = vpow2.f32 %v695_v30  ;;  %v672_v38 = vsub.f32 0.0, %v1106_v37  ;;  %v632_v39 = vpop.f32.mrb[11].mxu1  ;;  %v711_v40 = vadd.f32 1.0, %v1179_v34 }
 0x293   : > { %1192 = vrcp.f32 %v712_v35  ;;  %v671_v41 = vsub.f32 0.0, %v632_v39 }
 0x294   : > { %v1181_v42 = vpop.eup %1180  ;;  %v699_v46 = vmul.f32 1.442695, %v672_v38  ;;  %1194 = vpow2.f32 %v689_v36 }
 0x295   : > { %v714_v47 = vadd.f32 1.0, %v1181_v42  ;;  %v1109_v48 = vpop.f32.mrb[12].mxu1  ;;  %v1183_v49 = vpop.eup %1182  ;;  %v697_v52 = vmul.f32 1.442695, %v671_v41 }
 0x296   : > { %1196 = vpow2.f32 %v699_v46  ;;  %v674_v50 = vsub.f32 0.0, %v1109_v48  ;;  %v642_v51 = vpop.f32.mrb[13].mxu1  ;;  %v713_v58 = vadd.f32 1.0, %v1183_v49 }
 0x297   : > { %1198 = vrcp.f32 %v711_v40  ;;  %v673_v53 = vsub.f32 0.0, %v642_v51 }
 0x298   : > { %v1185_v54 = vpop.eup %1184  ;;  %1200 = vpow2.f32 %v693_v43  ;;  %v703_v55 = vmul.f32 1.442695, %v674_v50  ;;  %v848_v50 = vld [vmem:[%s1507_s4 + $0x8] sm:$0xff] }
 0x299   : > { %v1187_v57 = vpop.eup %1186  ;;  %1202 = vrcp.f32 %v714_v47  ;;  %v1112_v62 = vpop.f32.mrb[14].mxu1  ;;  %v701_v0 = vmul.f32 1.442695, %v673_v53  ;;  %v716_v10 = vadd.f32 1.0, %v1185_v54  ;;  %v847_v53 = vld [vmem:[%s1507_s4] sm:$0xff] }
 0x29a   : > { %v1189_v63 = vpop.eup %1188  ;;  %1204 = vpow2.f32 %v703_v55  ;;  %v676_v1 = vsub.f32 0.0, %v1112_v62  ;;  %748 = vperm.xlu1 %1170, %v1187_v57   ;;  %v652_v3 = vpop.f32.mrb[15].mxu1 }
 0x29b   : > { %1206 = vpow2.f32 %v697_v52  ;;  %743 = vperm.xlu0 %1169, %v1189_v63   ;;  %v675_v7 = vsub.f32 0.0, %v652_v3 }
 0x29c   : > { %v1191_v4 = vpop.eup %1190  ;;  %v707_v5 = vmul.f32 1.442695, %v676_v1  ;;  %1208 = vrcp.f32 %v713_v58 }
 0x29d   : > { %v1193_v8 = vpop.eup %1192  ;;  %v718_v12 = vadd.f32 1.0, %v1191_v4  ;;  %1210 = vpow2.f32 %v701_v0  ;;  %v705_v15 = vmul.f32 1.442695, %v675_v7 }
 0x29e   : > { %758 = vperm.xlu1 %1170, %v1193_v8   ;;  %v1195_v13 = vpop.eup %1194 }
 0x29f   : > { %1212 = vrcp.f32 %v718_v12  ;;  %v715_v20 = vadd.f32 1.0, %v1195_v13 }
 0x2a0   : > { %v1197_v14 = vpop.eup %1196  ;;  %1214 = vpow2.f32 %v707_v5 }
 0x2a1   : > { %v1199_v16 = vpop.eup %1198  ;;  %1216 = vrcp.f32 %v716_v10  ;;  %v720_v19 = vadd.f32 1.0, %v1197_v14 }
 0x2a2   : > { %v1201_v22 = vpop.eup %1200  ;;  %753 = vperm.xlu1 %1170, %v1199_v16  }
 0x2a3   : > { %v1203_v23 = vpop.eup %1202  ;;  %1218 = vrcp.f32 %v720_v19  ;;  %v717_v27 = vadd.f32 1.0, %v1201_v22 }
 0x2a4   : > { %v1205_v25 = vpop.eup %1204  ;;  %1220 = vpow2.f32 %v705_v15 }
 0x2a5   : > { %v1207_v26 = vpop.eup %1206  ;;  %v722_v31 = vadd.f32 1.0, %v1205_v25  ;;  %1222 = vrcp.f32 %v715_v20 }
 0x2a6   : > { %768 = vperm.xlu1 %1170, %v1203_v23   ;;  %v1209_v30 = vpop.eup %1208  ;;  %v719_v34 = vadd.f32 1.0, %v1207_v26 }
 0x2a7   : > { %1224 = vrcp.f32 %v722_v31  ;;  %v1211_v32 = vpop.eup %1210 }
 0x2a8   : > { %1226 = vrcp.f32 %v717_v27  ;;  %v721_v40 = vadd.f32 1.0, %v1211_v32 }
 0x2a9   : > { %v1213_v35 = vpop.eup %1212  ;;  %1228 = vrcp.f32 %v719_v34 }
 0x2aa   : > { %v1215_v36 = vpop.eup %1214  ;;  %763 = vperm.xlu1 %1170, %v1209_v30   ;;  %788 = vperm.xlu0 %1169, %v1213_v35  }
 0x2ab   : > { %v1217_v37 = vpop.eup %1216  ;;  %v724_v38 = vadd.f32 1.0, %v1215_v36 }
 0x2ad   : > { %v1219_v39 = vpop.eup %1218  ;;  %1230 = vrcp.f32 %v724_v38 }
 0x2ae   : > { %v1221_v41 = vpop.eup %1220  ;;  %778 = vperm.xlu1 %1170, %v1217_v37   ;;  %798 = vperm.xlu0 %1169, %v1219_v39   ;;  %1232 = vrcp.f32 %v721_v40 }
 0x2af   : > { %v1223_v42 = vpop.eup %1222  ;;  %v723_v46 = vadd.f32 1.0, %v1221_v41 }
 0x2b1   : > { %v1225_v43 = vpop.eup %1224  ;;  %1234 = vrcp.f32 %v723_v46 }
 0x2b2   : > { %773 = vperm.xlu1 %1170, %v1223_v42   ;;  %808 = vperm.xlu0 %1169, %v1225_v43   ;;  %v1227_v47 = vpop.eup %1226 }
 0x2b3   : > { %v1229_v48 = vpop.eup %1228 }
 0x2b6   : > { %783 = vperm.xlu1 %1170, %v1227_v47  }
 0x2b7   : > { %v1231_v49 = vpop.eup %1230 }
 0x2b8   : > { %818 = vperm.xlu0 %1169, %v1231_v49   ;;  %v1233_v51 = vpop.eup %1232 }
 0x2ba   : > { %793 = vperm.xlu1 %1170, %v1229_v48  }
 0x2bb   : > { %v1235_v52 = vpop.eup %1234 }
 0x2bc   : > { %856 = vperm.xlu0 %1169, %v848_v50  }
 0x2be   : > { %803 = vperm.xlu1 %1170, %v1233_v51  }
 0x2c2   : > { %813 = vperm.xlu1 %1170, %v1235_v52  }
 0x2c6   : > { %851 = vperm.xlu1 %1170, %v847_v53  }
 0x319   : > { %v749_v54 = vpop.permute.xlu1 %748 }
 0x31a   : > { %v822_v55 = vmul.f32 %v749_v54, %v1326_v59  ;;  %v744_v57 = vpop.permute.xlu0 %743 }
 0x31b   : > { %v821_v58 = vmul.f32 %v744_v57, %v1318_v45 }
 0x31d   : > { %v837_v62 = vpack.c.bf16 %v822_v55, %v821_v58  ;;  %v759_v63 = vpop.permute.xlu1 %758 }
 0x31e   : > { %v824_v1 = vmul.f32 %v759_v63, %v1324_v56 }
 0x31f   : > { %1114 = vmatpush3.bf16.msra.mxu1 %v837_v62 }
 0x320   : > { %1115 = vmatprep.subr.bf16.mxu1 %v1246_v33 }
 0x321   : > { %v754_v0 = vpop.permute.xlu1 %753 }
 0x322   : > { %v823_v3 = vmul.f32 %v754_v0, %v1316_v44 }
 0x324   : > { %v838_v4 = vpack.c.bf16 %v824_v1, %v823_v3 }
 0x325   : > { %v769_v5 = vpop.permute.xlu1 %768 }
 0x326   : > { %1116 = vmatpush3.bf16.msra.mxu1 %v838_v4  ;;  %v826_v59 = vmul.f32 %v769_v5, %v1328_v60 }
 0x327   : > { %1117 = vmatprep.subr.bf16.mxu1 %v1246_v33 }
 0x329   : > { %v764_v7 = vpop.permute.xlu1 %763  ;;  %v789_v10 = vpop.permute.xlu0 %788 }
 0x32a   : > { %v825_v45 = vmul.f32 %v764_v7, %v1330_v61  ;;  %v830_v19 = vmul.f32 %v789_v10, %v1346_v9 }
 0x32c   : > { %v839_v8 = vpack.c.bf16 %v826_v59, %v825_v45 }
 0x32d   : > { %v779_v12 = vpop.permute.xlu1 %778  ;;  %v799_v14 = vpop.permute.xlu0 %798 }
 0x32e   : > { %1118 = vmatpush3.bf16.msra.mxu1 %v839_v8  ;;  %v828_v56 = vmul.f32 %v779_v12, %v1336_v2  ;;  %v832_v23 = vmul.f32 %v799_v14, %v1358_v17 }
 0x32f   : > { %1119 = vmatprep.subr.bf16.mxu1 %v1246_v33 }
 0x331   : > { %v774_v13 = vpop.permute.xlu1 %773  ;;  %v809_v22 = vpop.permute.xlu0 %808 }
 0x332   : > { %v827_v44 = vmul.f32 %v774_v13, %v1342_v6  ;;  %v834_v9 = vmul.f32 %v809_v22, %v1362_v21  ;;  %v1171_v21 = vld [vmem:[%s1506_s3] sm:$0xff]  }
 0x334   : > { %v840_v15 = vpack.c.bf16 %v828_v56, %v827_v44 }
 0x335   : > { %v784_v16 = vpop.permute.xlu1 %783 }
 0x336   : > { %v829_v60 = vmul.f32 %v784_v16, %v1350_v11  ;;  %1120 = vmatpush3.bf16.msra.mxu1 %v840_v15 }
 0x337   : > { %1121 = vmatprep.subr.bf16.mxu1 %v1246_v33  ;;  %v819_v26 = vpop.permute.xlu0 %818 }
 0x338   : > { %v841_v61 = vpack.c.bf16 %v830_v19, %v829_v60  ;;  %v836_v17 = vmul.f32 %v819_v26, %v1374_v28 }
 0x339   : > { %v794_v20 = vpop.permute.xlu1 %793 }
 0x33a   : > { %v831_v25 = vmul.f32 %v794_v20, %v1360_v18  ;;  %1122 = vmatpush3.bf16.msra.mxu1 %v841_v61 }
 0x33b   : > { %1123 = vmatprep.subr.bf16.mxu1 %v1246_v33  ;;  %v857_v36 = vpop.permute.xlu0 %856 }
 0x33c   : > { %v842_v2 = vpack.c.bf16 %v832_v23, %v831_v25 }
 0x33d   : > { %v804_v6 = vpop.permute.xlu1 %803 }
 0x33e   : > { %v833_v11 = vmul.f32 %v804_v6, %v1368_v24  ;;  %1124 = vmatpush3.bf16.msra.mxu1 %v842_v2 }
 0x33f   : > { %1125 = vmatprep.subr.bf16.mxu1 %v1246_v33 }
 0x340   : > { %v843_v27 = vpack.c.bf16 %v834_v9, %v833_v11 }
 0x341   : > { %v814_v31 = vpop.permute.xlu1 %813 }
 0x342   : > { %v835_v18 = vmul.f32 %v814_v31, %v1376_v29  ;;  %1126 = vmatpush3.bf16.msra.mxu1 %v843_v27 }
 0x343   : > { %1127 = vmatprep.subr.bf16.mxu1 %v1246_v33 }
 0x344   : > { %v844_v30 = vpack.c.bf16 %v836_v17, %v835_v18 }
 0x345   : > { %v852_v24 = vpop.permute.xlu1 %851 }
 0x346   : > { %1128 = vmatpush3.bf16.msra.mxu1 %v844_v30 }
 0x349   : > { %1130 = vmatmul.mubr.bf16.vlgmr.msra.gmra.mrb[16].mxu1 %v1171_v21 }
 0x41c   : > { %v899_v32 = vpop.f32.mrb[16].mxu1 }
 0x41d   : > { %v900_v34 = vadd.f32 %v899_v32, %v852_v24  ;;  %v1131_v35 = vpop.f32.mrb[17].mxu1 }
 0x41e   : > { %v902_v28 = vpop.f32.mrb[18].mxu1 }
 0x41f   : > { %v906_v29 = vmax.f32 %v900_v34, 0.0  ;;  %v903_v33 = vadd.f32 %v902_v28, %v857_v36  ;;  %v1132_v37 = vpop.f32.mrb[19].mxu1 }
 0x421   : > { %908 = vst.msk [vmem:[%s224_s21] sm:$0xff] %vm313_vm0, %v906_v29  ;;  %v907_v38 = vmax.f32 %v903_v33, 0.0 }
 0x423   : > { %909 = vst.msk [vmem:[%s224_s21 + $0x8] sm:$0xff] %vm313_vm0, %v907_v38 }
 0x424 PF: > { %s15_s18 = sadd.s32 1, %s1242_s18  }
 0x425   : > { %p12_p4 = scmp.ge.s32.totalorder %s15_s18, 4  }
 0x427   :  { %14 = sbr.rel (!%p12_p4) target bundleno = 1 (0x1), region = 77 }

// kernel: forward.7
= control target key start
LH: loop header
LB: loop body
LE: loop exit
PB: predicated region body
PF: predicated region fallthrough
CT: control target
= control target key end

     0   :  { %s988_s15 = smov 0   ;;  %s1109_s0 = inlined_call_operand.vmem [shape: bf16[2,512,64], index: 0, kind: input, shape index: {}]   ;;  %s1110_s1 = inlined_call_operand.vmem [shape: bf16[32,512], index: 1, kind: input, shape index: {}]   ;;  %s1111_s2 = inlined_call_operand.vmem [shape: f32[32,1], index: 2, kind: input, shape index: {}]   ;;  %s1112_s3 = inlined_call_operand.vmem [shape: f32[32,1], index: 3, kind: input, shape index: {}]   ;;  %s1113_s4 = inlined_call_operand.vmem [shape: f32[2,32,64], index: 4, kind: output, shape index: {}]  }
   0x1 LB: > { %s782_s16 = sadd.s32 4294967295, %s960_s15   ;;  %p786_p0 = scmp.ge.s32.totalorder %s960_s15, 1  ;;  %s960_s15 = sphi %s988_s15, %s14_s15  }
   0x2   : > { %p162_p1 = scmp.lt.s32.totalorder %s960_s15, 3 }
   0x4   : > { %p163_p2 = pnand %p786_p0, %p162_p1 }
   0x5   : > { %p188_p3 = scmp.lt.s32.totalorder (!%p163_p2), %s782_s16, 1  ;;  %v936_v0 = vld [vmem:[%s1110_s1 + $0x4] ss:$16 sps:$4 sm:$0xff] (!%p163_p2)   ;;  %v939_v1 = vld [vmem:[%s1110_s1 + $0xc] ss:$16 sps:$4 sm:$0xff] (!%p163_p2)   ;;  %vm601_vm0 = vcmask (!%p163_p2), 523264  }
   0x6   : > { %166 = sbr.rel (%p163_p2) target bundleno = 662 (0x296), region = 36  ;;  %535 = vmatprep.mubr.bf16.mxu0 (!%p163_p2), %v936_v0  ;;  %584 = vmatprep.mubr.bf16.mxu1 (!%p163_p2), %v939_v1  ;;  %v934_v32 = vld [vmem:[%s1110_s1] ss:$16 sps:$4 sm:$0xff] (!%p163_p2)   ;;  %v937_v35 = vld [vmem:[%s1110_s1 + $0x8] ss:$16 sps:$4 sm:$0xff] (!%p163_p2)  }
   0x7   : > { %v940_v36 = vld [vmem:[%s1110_s1 + $0x24] ss:$16 sps:$4 sm:$0xff] (!%p163_p2)   ;;  %v942_v37 = vld [vmem:[%s1110_s1 + $0x2c] ss:$16 sps:$4 sm:$0xff] (!%p163_p2)   ;;  %v944_v38 = vld [vmem:[%s1110_s1 + $0x20] ss:$16 sps:$4 sm:$0xff] (!%p163_p2)  }
   0x8   : > { %v945_v39 = vld [vmem:[%s1110_s1 + $0x28] ss:$16 sps:$4 sm:$0xff] (!%p163_p2)  }
   0xd   : > { %s1115_s16 = smov (!%p188_p3, %s782_s16), 1 }
   0xe   : > { %s833_s21 = sshll.u32 %s1115_s16, 8  ;;  %s834_s29 = sshll.u32 %s1115_s16, 5 }
   0xf   : > { %s1008_s24 = scalar_lea.vmem %s1109_s0, %s833_s21  ;;  %s1096_s6 = scalar_lea.vmem %s1113_s4, %s834_s29 }
  0x10   : > { %v902_v2 = vld [vmem:[%s1008_s24 + $0x40] sm:$0xff]   ;;  %v906_v6 = vld [vmem:[%s1008_s24 + $0x48] sm:$0xff]   ;;  %v910_v10 = vld [vmem:[%s1008_s24 + $0x50] sm:$0xff]  }
  0x11   : > { %v903_v3 = vld [vmem:[%s1008_s24 + $0xc0] sm:$0xff]   ;;  %835 = vmatprep.subr.bf16.mxu0 %v902_v2  ;;  %v907_v7 = vld [vmem:[%s1008_s24 + $0xc8] sm:$0xff]   ;;  %v911_v11 = vld [vmem:[%s1008_s24 + $0xd0] sm:$0xff]  }
  0x12   : > { %v904_v4 = vld [vmem:[%s1008_s24] sm:$0xff]   ;;  %863 = vmatprep.subr.bf16.mxu1 %v903_v3  ;;  %v908_v8 = vld [vmem:[%s1008_s24 + $0x8] sm:$0xff]   ;;  %v912_v12 = vld [vmem:[%s1008_s24 + $0x10] sm:$0xff]  }
  0x13   : > { %v905_v5 = vld [vmem:[%s1008_s24 + $0x80] sm:$0xff]   ;;  %836 = vmatpush3.bf16.msra.mxu0 %v904_v4  ;;  %v909_v9 = vld [vmem:[%s1008_s24 + $0x88] sm:$0xff]   ;;  %v913_v13 = vld [vmem:[%s1008_s24 + $0x90] sm:$0xff]  }
  0x14   : > { %864 = vmatpush3.bf16.msra.mxu1 %v905_v5  ;;  %837 = vmatprep.subr.bf16.mxu0 %v906_v6  ;;  %v914_v14 = vld [vmem:[%s1008_s24 + $0x58] sm:$0xff]   ;;  %v918_v18 = vld [vmem:[%s1008_s24 + $0x60] sm:$0xff]   ;;  %v922_v22 = vld [vmem:[%s1008_s24 + $0x68] sm:$0xff]  }
  0x15   : > { %865 = vmatprep.subr.bf16.mxu1 %v907_v7  ;;  %v915_v15 = vld [vmem:[%s1008_s24 + $0xd8] sm:$0xff]   ;;  %v919_v19 = vld [vmem:[%s1008_s24 + $0xe0] sm:$0xff]   ;;  %v923_v23 = vld [vmem:[%s1008_s24 + $0xe8] sm:$0xff]  }
  0x16   : > { %v916_v16 = vld [vmem:[%s1008_s24 + $0x18] sm:$0xff]   ;;  %v920_v20 = vld [vmem:[%s1008_s24 + $0x20] sm:$0xff]   ;;  %v924_v24 = vld [vmem:[%s1008_s24 + $0x28] sm:$0xff]  }
  0x17   : > { %838 = vmatpush3.bf16.msra.mxu0 %v908_v8  ;;  %v917_v17 = vld [vmem:[%s1008_s24 + $0x98] sm:$0xff]   ;;  %v921_v21 = vld [vmem:[%s1008_s24 + $0xa0] sm:$0xff]   ;;  %v925_v25 = vld [vmem:[%s1008_s24 + $0xa8] sm:$0xff]   ;;  %v962_v8 = vmov 0  }
  0x18   : > { %866 = vmatpush3.bf16.msra.mxu1 %v909_v9  ;;  %839 = vmatprep.subr.bf16.mxu0 %v910_v10  ;;  %v926_v26 = vld [vmem:[%s1008_s24 + $0x70] sm:$0xff]   ;;  %v930_v30 = vld [vmem:[%s1008_s24 + $0x78] sm:$0xff]  }
  0x19   : > { %867 = vmatprep.subr.bf16.mxu1 %v911_v11  ;;  %v927_v27 = vld [vmem:[%s1008_s24 + $0xf0] sm:$0xff]   ;;  %v931_v31 = vld [vmem:[%s1008_s24 + $0xf8] sm:$0xff]   ;;  %901 = vset.pattern.permute.xlu1 %v962_v8 }
  0x1a   : > { %v928_v28 = vld [vmem:[%s1008_s24 + $0x30] sm:$0xff]   ;;  %v932_v33 = vld [vmem:[%s1008_s24 + $0x38] sm:$0xff]   ;;  %900 = vset.pattern.permute.xlu0 %v962_v8 }
  0x1b   : > { %840 = vmatpush3.bf16.msra.mxu0 %v912_v12  ;;  %v929_v29 = vld [vmem:[%s1008_s24 + $0xb0] sm:$0xff]   ;;  %v933_v34 = vld [vmem:[%s1008_s24 + $0xb8] sm:$0xff]  }
  0x1c   : > { %868 = vmatpush3.bf16.msra.mxu1 %v913_v13  ;;  %841 = vmatprep.subr.bf16.mxu0 %v914_v14 }
  0x1d   : > { %869 = vmatprep.subr.bf16.mxu1 %v915_v15 }
  0x1f   : > { %842 = vmatpush3.bf16.msra.mxu0 %v916_v16 }
  0x20   : > { %870 = vmatpush3.bf16.msra.mxu1 %v917_v17  ;;  %843 = vmatprep.subr.bf16.mxu0 %v918_v18 }
  0x21   : > { %871 = vmatprep.subr.bf16.mxu1 %v919_v19 }
  0x23   : > { %844 = vmatpush3.bf16.msra.mxu0 %v920_v20 }
  0x24   : > { %872 = vmatpush3.bf16.msra.mxu1 %v921_v21  ;;  %845 = vmatprep.subr.bf16.mxu0 %v922_v22 }
  0x25   : > { %873 = vmatprep.subr.bf16.mxu1 %v923_v23 }
  0x27   : > { %846 = vmatpush3.bf16.msra.mxu0 %v924_v24  ;;  %v656_v24 = vld [vmem:[%s1111_s2 + $0x8] sm:$0xff] }
  0x28   : > { %874 = vmatpush3.bf16.msra.mxu1 %v925_v25  ;;  %847 = vmatprep.subr.bf16.mxu0 %v926_v26  ;;  %v657_v25 = vld [vmem:[%s1111_s2 + $0x10] sm:$0xff]  ;;  %v658_v26 = vld [vmem:[%s1111_s2 + $0x18] sm:$0xff] }
  0x29   : > { %875 = vmatprep.subr.bf16.mxu1 %v927_v27  ;;  %v655_v27 = vld [vmem:[%s1111_s2] sm:$0xff] }
  0x2b   : > { %848 = vmatpush3.bf16.msra.mxu0 %v928_v28  ;;  %v683_v28 = vld [vmem:[%s1112_s3] sm:$0xff] }
  0x2c   : > { %876 = vmatpush3.bf16.msra.mxu1 %v929_v29  ;;  %849 = vmatprep.subr.bf16.mxu0 %v930_v30  ;;  %v684_v29 = vld [vmem:[%s1112_s3 + $0x8] sm:$0xff]  ;;  %v685_v30 = vld [vmem:[%s1112_s3 + $0x10] sm:$0xff] }
  0x2d   : > { %877 = vmatprep.subr.bf16.mxu1 %v931_v31 }
  0x2f   : > { %850 = vmatpush3.bf16.msra.mxu0 %v932_v33 }
  0x30   : > { %878 = vmatpush3.bf16.msra.mxu1 %v933_v34 }
  0x32   : > { %536 = vmatmul.mubr.bf16.vlgmr.msra.gmra.mrb[0].mxu0 %v934_v32 }
  0x33   : > { %585 = vmatmul.mubr.bf16.vlgmr.msra.gmra.mrb[0].mxu1 %v937_v35  ;;  %543 = vmatprep.mubr.bf16.mxu0 %v940_v36  ;;  %v686_v36 = vld [vmem:[%s1112_s3 + $0x18] sm:$0xff] }
  0x34   : > { %592 = vmatprep.mubr.bf16.mxu1 %v942_v37 }
  0x3a   : > { %544 = vmatmul.mubr.bf16.gmra.mrb[4].mxu0 %v944_v38 }
  0x3b   : > { %593 = vmatmul.mubr.bf16.gmra.mrb[4].mxu1 %v945_v39 }
 0x105   : > { %v851_v40 = vpop.f32.mrb[0].mxu0 }
 0x106   : > { %v879_v41 = vpop.f32.mrb[0].mxu1  ;;  %v852_v42 = vpop.f32.mrb[1].mxu0 }
 0x107   : > { %v853_v43 = vadd.f32 %v852_v42, %v851_v40  ;;  %v880_v44 = vpop.f32.mrb[1].mxu1  ;;  %v854_v45 = vpop.f32.mrb[2].mxu0 }
 0x108   : > { %v881_v46 = vadd.f32 %v880_v44, %v879_v41  ;;  %v882_v47 = vpop.f32.mrb[2].mxu1  ;;  %v855_v48 = vpop.f32.mrb[3].mxu0 }
 0x109   : > { %v856_v49 = vadd.f32 %v855_v48, %v854_v45  ;;  %v883_v50 = vpop.f32.mrb[3].mxu1 }
 0x10a   : > { %v884_v51 = vadd.f32 %v883_v50, %v882_v47  ;;  %v587_v52 = vadd.f32 %v881_v46, %v853_v43 }
 0x10c   : > { %v602_v53 = vsel %vm601_vm0, %v587_v52, 0.0  ;;  %v590_v54 = vadd.f32 %v884_v51, %v856_v49 }
 0x10d   : > { %603 = vadd.xlane.f32.xlu0 %v602_v53  ;;  %v857_v55 = vpop.f32.mrb[4].mxu0 }
 0x10e   : > { %v885_v56 = vpop.f32.mrb[4].mxu1  ;;  %v858_v57 = vpop.f32.mrb[5].mxu0  ;;  %v605_v62 = vsel %vm601_vm0, %v590_v54, 0.0 }
 0x10f   : > { %v859_v58 = vadd.f32 %v858_v57, %v857_v55  ;;  %v886_v59 = vpop.f32.mrb[5].mxu1  ;;  %v860_v60 = vpop.f32.mrb[6].mxu0 }
 0x110   : > { %v887_v61 = vadd.f32 %v886_v59, %v885_v56  ;;  %v888_v63 = vpop.f32.mrb[6].mxu1  ;;  %v861_v0 = vpop.f32.mrb[7].mxu0 }
 0x111   : > { %606 = vadd.xlane.f32.xlu0 %v605_v62  ;;  %v862_v1 = vadd.f32 %v861_v0, %v860_v60  ;;  %v889_v2 = vpop.f32.mrb[7].mxu1 }
 0x112   : > { %v890_v3 = vadd.f32 %v889_v2, %v888_v63  ;;  %v595_v4 = vadd.f32 %v887_v61, %v859_v58 }
 0x114   : > { %v608_v5 = vsel %vm601_vm0, %v595_v4, 0.0  ;;  %v598_v6 = vadd.f32 %v890_v3, %v862_v1 }
 0x115   : > { %609 = vadd.xlane.f32.xlu1 %v608_v5 }
 0x116   : > { %v611_v7 = vsel %vm601_vm0, %v598_v6, 0.0 }
 0x119   : > { %612 = vadd.xlane.f32.xlu1 %v611_v7 }
 0x19a   : > { %v604_v9 = vpop.xlane.xlu0 %603 }
 0x19b   : > { %v615_v10 = vmul.f32 0.015625, %v604_v9 }
 0x19d   : > { %v619_v11 = vsub.f32 %v587_v52, %v615_v10 }
 0x19e   : > { %v607_v12 = vpop.xlane.xlu0 %606 }
 0x19f   : > { %v616_v13 = vmul.f32 0.015625, %v607_v12  ;;  %v623_v14 = vmul.f32 %v619_v11, %v619_v11 }
 0x1a1   : > { %v620_v15 = vsub.f32 %v590_v54, %v616_v13  ;;  %v627_v16 = vsel %vm601_vm0, %v623_v14, 0.0 }
 0x1a2   : > { %v610_v17 = vpop.xlane.xlu1 %609  ;;  %628 = vadd.xlane.f32.xlu0 %v627_v16 }
 0x1a3   : > { %v617_v18 = vmul.f32 0.015625, %v610_v17  ;;  %v624_v19 = vmul.f32 %v620_v15, %v620_v15 }
 0x1a5   : > { %v621_v20 = vsub.f32 %v595_v4, %v617_v18  ;;  %v630_v21 = vsel %vm601_vm0, %v624_v19, 0.0 }
 0x1a6   : > { %631 = vadd.xlane.f32.xlu1 %v630_v21  ;;  %v613_v31 = vpop.xlane.xlu1 %612 }
 0x1a7   : > { %v625_v22 = vmul.f32 %v621_v20, %v621_v20  ;;  %v618_v32 = vmul.f32 0.015625, %v613_v31 }
 0x1a9   : > { %v633_v23 = vsel %vm601_vm0, %v625_v22, 0.0  ;;  %v622_v33 = vsub.f32 %v598_v6, %v618_v32 }
 0x1aa   : > { %634 = vadd.xlane.f32.xlu0 %v633_v23 }
 0x1ab   : > { %v626_v34 = vmul.f32 %v622_v33, %v622_v33 }
 0x1ad   : > { %v636_v35 = vsel %vm601_vm0, %v626_v34, 0.0 }
 0x1b7   : > { %666 = vperm.xlu1 %901, %v656_v24  }
 0x1bb   : > { %671 = vperm.xlu1 %901, %v657_v25  }
 0x1bf   : > { %676 = vperm.xlu1 %901, %v658_v26  }
 0x1c0   : > { %661 = vperm.xlu0 %900, %v655_v27  }
 0x1c3   : > { %689 = vperm.xlu1 %901, %v683_v28  }
 0x1c7   : > { %694 = vperm.xlu1 %901, %v684_v29  }
 0x1cb   : > { %699 = vperm.xlu1 %901, %v685_v30  }
 0x1ef   : > { %637 = vadd.xlane.f32.xlu1 %v636_v35 }
 0x200   : > { %704 = vperm.xlu1 %901, %v686_v36  }
 0x22f   : > { %v629_v37 = vpop.xlane.xlu0 %628 }
 0x230   : > { %v639_v38 = vmul.f32 0.015625, %v629_v37 }
 0x232   : > { %v643_v39 = vadd.f32 1e-05, %v639_v38 }
 0x233   : > { %v632_v40 = vpop.xlane.xlu1 %631 }
 0x234   : > { %946 = vrsqrt.f32 %v643_v39  ;;  %v640_v41 = vmul.f32 0.015625, %v632_v40 }
 0x236   : > { %v644_v42 = vadd.f32 1e-05, %v640_v41 }
 0x237   : > { %v667_v43 = vpop.permute.xlu1 %666  ;;  %v635_v44 = vpop.xlane.xlu0 %634 }
 0x238   : > { %948 = vrsqrt.f32 %v644_v42  ;;  %v641_v45 = vmul.f32 0.015625, %v635_v44 }
 0x23a   : > { %v645_v46 = vadd.f32 1e-05, %v641_v45 }
 0x23b   : > { %v672_v47 = vpop.permute.xlu1 %671 }
 0x23c   : > { %950 = vrsqrt.f32 %v645_v46 }
 0x23e   : > { %v947_v48 = vpop.eup %946 }
 0x23f   : > { %v677_v49 = vpop.permute.xlu1 %676  ;;  %v651_v50 = vmul.f32 %v947_v48, %v619_v11  ;;  %v662_v51 = vpop.permute.xlu0 %661 }
 0x241   : > { %v679_v52 = vmul.f32 %v662_v51, %v651_v50 }
 0x242   : > { %v949_v53 = vpop.eup %948 }
 0x243   : > { %v652_v54 = vmul.f32 %v949_v53, %v620_v15  ;;  %v690_v55 = vpop.permute.xlu1 %689 }
 0x244   : > { %v707_v56 = vadd.f32 %v690_v55, %v679_v52 }
 0x245   : > { %v680_v57 = vmul.f32 %v667_v43, %v652_v54 }
 0x246   : > { %v951_v58 = vpop.eup %950  ;;  %vm711_vm1 = vcmp.ge.f32.partialorder %v707_v56, 0.0  ;;  %v715_v59 = vmul.f32 0.01, %v707_v56 }
 0x247   : > { %v653_v60 = vmul.f32 %v951_v58, %v621_v20  ;;  %v695_v61 = vpop.permute.xlu1 %694 }
 0x248   : > { %v719_v62 = vsel %vm711_vm1, %v707_v56, %v715_v59  ;;  %v708_v63 = vadd.f32 %v695_v61, %v680_v57 }
 0x249   : > { %v681_v0 = vmul.f32 %v672_v47, %v653_v60  ;;  %723 = vst.msk [vmem:[%s1096_s6] sm:$0xff] %vm601_vm0, %v719_v62 }
 0x24a   : > { %vm712_vm2 = vcmp.ge.f32.partialorder %v708_v63, 0.0  ;;  %v716_v1 = vmul.f32 0.01, %v708_v63 }
 0x24b   : > { %v700_v2 = vpop.permute.xlu1 %699 }
 0x24c   : > { %v720_v3 = vsel %vm712_vm2, %v708_v63, %v716_v1  ;;  %v709_v4 = vadd.f32 %v700_v2, %v681_v0 }
 0x24d   : > { %724 = vst.msk [vmem:[%s1096_s6 + $0x8] sm:$0xff] %vm601_vm0, %v720_v3 }
 0x24e   : > { %vm713_vm3 = vcmp.ge.f32.partialorder %v709_v4, 0.0  ;;  %v717_v5 = vmul.f32 0.01, %v709_v4 }
 0x250   : > { %v721_v6 = vsel %vm713_vm3, %v709_v4, %v717_v5 }
 0x251   : > { %725 = vst.msk [vmem:[%s1096_s6 + $0x10] sm:$0xff] %vm601_vm0, %v721_v6 }
 0x27c   : > { %v638_v7 = vpop.xlane.xlu1 %637 }
 0x27d   : > { %v642_v8 = vmul.f32 0.015625, %v638_v7 }
 0x27f   : > { %v646_v9 = vadd.f32 1e-05, %v642_v8 }
 0x280   : > { %v705_v13 = vpop.permute.xlu1 %704 }
 0x281   : > { %952 = vrsqrt.f32 %v646_v9 }
 0x28b   : > { %v953_v10 = vpop.eup %952 }
 0x28c   : > { %v654_v11 = vmul.f32 %v953_v10, %v622_v33 }
 0x28e   : > { %v682_v12 = vmul.f32 %v677_v49, %v654_v11 }
 0x290   : > { %v710_v14 = vadd.f32 %v705_v13, %v682_v12 }
 0x292   : > { %vm714_vm4 = vcmp.ge.f32.partialorder %v710_v14, 0.0  ;;  %v718_v15 = vmul.f32 0.01, %v710_v14 }
 0x294   : > { %v722_v16 = vsel %vm714_vm4, %v710_v14, %v718_v15 }
 0x295   : > { %726 = vst.msk [vmem:[%s1096_s6 + $0x18] sm:$0xff] %vm601_vm0, %v722_v16 }
 0x296 PF: > { %s14_s15 = sadd.s32 1, %s960_s15  }
 0x297   : > { %p11_p4 = scmp.ge.s32.totalorder %s14_s15, 4  }
 0x299   :  { %13 = sbr.rel (!%p11_p4) target bundleno = 1 (0x1), region = 66 }

// kernel: forward.9
= control target key start
LH: loop header
LB: loop body
LE: loop exit
PB: predicated region body
PF: predicated region fallthrough
CT: control target
= control target key end

     0   :  { %s1951_s18 = smov 0   ;;  %s2485_s0 = inlined_call_operand.vmem [shape: f32[2,8,32,8], index: 0, kind: input, shape index: {}]   ;;  %s2486_s1 = inlined_call_operand.vmem [shape: f32[16,256], index: 1, kind: input, shape index: {}]   ;;  %s2487_s2 = inlined_call_operand.vmem [shape: f32[256,16], index: 2, kind: input, shape index: {}]   ;;  %s2488_s3 = inlined_call_operand.vmem [shape: bf16[32,256], index: 3, kind: input, shape index: {}]   ;;  %s2489_s4 = inlined_call_operand.vmem [shape: f32[32,1], index: 4, kind: input, shape index: {}]   ;;  %s2490_s5 = inlined_call_operand.vmem [shape: f32[2,32,8], index: 5, kind: output, shape index: {}]  }
   0x1 LB: > { %s1486_s19 = sadd.s32 4294967295, %s1918_s18   ;;  %p1490_p0 = scmp.ge.s32.totalorder %s1918_s18, 1  ;;  %s1918_s18 = sphi %s1951_s18, %s15_s18  }
   0x2   : > { %p187_p1 = scmp.lt.s32.totalorder %s1918_s18, 3 }
   0x4   : > { %p188_p2 = pnand %p1490_p0, %p187_p1 }
   0x5   : > { %p215_p3 = scmp.lt.s32.totalorder (!%p188_p2), %s1486_s19, 1  ;;  %vm393_vm0 = vcmask (!%p188_p2), 64512   ;;  %vm636_vm1 = vcmask (!%p188_p2), 130048  }
   0x6   : > { %191 = sbr.rel (%p188_p2) target bundleno = 1138 (0x472), region = 40 }
   0xd   : > { %s2492_s19 = smov (!%p215_p3, %s1486_s19), 1 }
   0xe   : > { %s1561_s20 = sshll.u32 %s2492_s19, 8 }
   0xf   : > { %s1965_s23 = scalar_lea.vmem %s2485_s0, %s1561_s20  ;;  %s1562_s20 = sshll.u32 %s2492_s19, 5 }
  0x10   : > { %v226_v0 = vld [vmem:[%s1965_s23] sm:$0xff]  ;;  %v227_v12 = vld [vmem:[%s1965_s23 + $0x8] sm:$0xff]  ;;  %v228_v29 = vld [vmem:[%s1965_s23 + $0x10] sm:$0xff] }
  0x11   : > { %v1495_v1 = vld [vmem:[%s1965_s23 + $0x20] sm:$0xff]  ;;  %v1496_v16 = vld [vmem:[%s1965_s23 + $0x28] sm:$0xff]  ;;  %v1497_v30 = vld [vmem:[%s1965_s23 + $0x30] sm:$0xff] }
  0x12   : > { %v1499_v2 = vld [vmem:[%s1965_s23 + $0x40] sm:$0xff]  ;;  %v1973_v6 = vadd.f32 %v1495_v1, %v226_v0  ;;  %v1975_v7 = vsub.f32 %v226_v0, %v1495_v1  ;;  %v1500_v17 = vld [vmem:[%s1965_s23 + $0x48] sm:$0xff]  ;;  %v2000_v24 = vadd.f32 %v1496_v16, %v227_v12  ;;  %v1501_v35 = vld [vmem:[%s1965_s23 + $0x50] sm:$0xff]  ;;  %v2026_v38 = vadd.f32 %v1497_v30, %v228_v29 }
  0x13   : > { %v1503_v3 = vld [vmem:[%s1965_s23 + $0x60] sm:$0xff]  ;;  %v1504_v18 = vld [vmem:[%s1965_s23 + $0x68] sm:$0xff]  ;;  %v1505_v36 = vld [vmem:[%s1965_s23 + $0x70] sm:$0xff]  ;;  %v2028_v39 = vsub.f32 %v227_v12, %v1496_v16 }
  0x14   : > { %v1507_v4 = vld [vmem:[%s1965_s23 + $0x80] sm:$0xff]  ;;  %v1979_v10 = vadd.f32 %v1503_v3, %v1499_v2  ;;  %v1984_v13 = vsub.f32 %v1499_v2, %v1503_v3  ;;  %v1508_v21 = vld [vmem:[%s1965_s23 + $0x88] sm:$0xff]  ;;  %v2002_v25 = vadd.f32 %v1504_v18, %v1500_v17  ;;  %v1509_v37 = vld [vmem:[%s1965_s23 + $0x90] sm:$0xff]  ;;  %v2033_v45 = vadd.f32 %v1505_v36, %v1501_v35 }
  0x15   : > { %v1511_v5 = vld [vmem:[%s1965_s23 + $0xa0] sm:$0xff]  ;;  %v1512_v22 = vld [vmem:[%s1965_s23 + $0xa8] sm:$0xff]  ;;  %v1513_v42 = vld [vmem:[%s1965_s23 + $0xb0] sm:$0xff]  ;;  %v2035_v46 = vsub.f32 %v1500_v17, %v1504_v18 }
  0x16   : > { %v1515_v8 = vld [vmem:[%s1965_s23 + $0xc0] sm:$0xff]  ;;  %v1981_v11 = vadd.f32 %v1511_v5, %v1507_v4  ;;  %v1986_v14 = vsub.f32 %v1507_v4, %v1511_v5  ;;  %v297_v20 = vadd.f32 %v1979_v10, %v1973_v6  ;;  %v1516_v23 = vld [vmem:[%s1965_s23 + $0xc8] sm:$0xff]  ;;  %v2007_v28 = vadd.f32 %v1512_v22, %v1508_v21  ;;  %v1517_v43 = vld [vmem:[%s1965_s23 + $0xd0] sm:$0xff] }
  0x17   : > { %v1519_v9 = vld [vmem:[%s1965_s23 + $0xe0] sm:$0xff]  ;;  %v1520_v27 = vld [vmem:[%s1965_s23 + $0xe8] sm:$0xff]  ;;  %v2013_v31 = vadd.f32 %v1984_v13, %v1975_v7  ;;  %v298_v34 = vadd.f32 %v2002_v25, %v2000_v24  ;;  %v1521_v44 = vld [vmem:[%s1965_s23 + $0xf0] sm:$0xff]  ;;  %v2039_v48 = vadd.f32 %v1513_v42, %v1509_v37  ;;  %v2046_v53 = vsub.f32 %v1508_v21, %v1512_v22 }
  0x18   : > { %v1988_v15 = vadd.f32 %v1519_v9, %v1515_v8  ;;  %v1993_v19 = vsub.f32 %v1515_v8, %v1519_v9  ;;  %v2019_v33 = vadd.f32 %v1520_v27, %v1516_v23  ;;  %v2041_v49 = vadd.f32 %v1521_v44, %v1517_v43  ;;  %v229_v50 = vld [vmem:[%s1965_s23 + $0x18] sm:$0xff] }
  0x19   : > { %v1498_v51 = vld [vmem:[%s1965_s23 + $0x38] sm:$0xff]  ;;  %v299_v56 = vadd.f32 %v2033_v45, %v2026_v38  ;;  %v2083_v22 = vsub.f32 %v1516_v23, %v1520_v27  ;;  %v2097_v27 = vsub.f32 %v228_v29, %v1497_v30 }
  0x1a   : > { %v301_v26 = vadd.f32 %v1988_v15, %v1981_v11  ;;  %v2017_v32 = vadd.f32 %v1993_v19, %v1986_v14  ;;  %v302_v47 = vadd.f32 %v2019_v33, %v2007_v28  ;;  %v1502_v52 = vld [vmem:[%s1965_s23 + $0x58] sm:$0xff]  ;;  %v2056_v59 = vadd.f32 %v1498_v51, %v229_v50 }
  0x1b   : > { %v1506_v57 = vld [vmem:[%s1965_s23 + $0x78] sm:$0xff]  ;;  %v303_v62 = vadd.f32 %v2041_v49, %v2039_v48  ;;  %v318_v23 = vadd.f32 %v2083_v22, %v2046_v53 }
  0x1c   : > { %v361_v40 = vsub.f32 %v297_v20, %v301_v26  ;;  %v329_v41 = vadd.f32 %v301_v26, %v297_v20  ;;  %v1510_v58 = vld [vmem:[%s1965_s23 + $0x98] sm:$0xff]  ;;  %v362_v60 = vsub.f32 %v298_v34, %v302_v47  ;;  %v330_v61 = vadd.f32 %v302_v47, %v298_v34 }
  0x1d   : > { %v1514_v63 = vld [vmem:[%s1965_s23 + $0xb8] sm:$0xff]  ;;  %v2063_v2 = vadd.f32 %v1506_v57, %v1502_v52  ;;  %v363_v16 = vsub.f32 %v299_v56, %v303_v62  ;;  %v331_v20 = vadd.f32 %v303_v62, %v299_v56  ;;  %v369_v21 = vsub.f32 %v2013_v31, %v2017_v32 }
  0x1e   : > { %v2048_v54 = vmul.f32 0.35355338, %v361_v40  ;;  %v2050_v55 = vmul.f32 0.35355338, %v329_v41  ;;  %v1518_v0 = vld [vmem:[%s1965_s23 + $0xd8] sm:$0xff]  ;;  %v2069_v5 = vadd.f32 %v1514_v63, %v1510_v58  ;;  %v314_v41 = vadd.f32 %v2035_v46, %v2028_v39 }
  0x1f   : > { %v1522_v1 = vld [vmem:[%s1965_s23 + $0xf8] sm:$0xff]  ;;  %v2073_v9 = vmul.f32 0.35355338, %v362_v60  ;;  %v2075_v12 = vmul.f32 0.35355338, %v330_v61  ;;  %v300_v17 = vadd.f32 %v2063_v2, %v2056_v59  ;;  %s224_s23 = scalar_lea.vmem %s2490_s5, %s1562_s20 }
  0x20   : > { %v442_v3 = vsel %vm393_vm0, %v2048_v54, 0.0  ;;  %v394_v4 = vsel %vm393_vm0, %v2050_v55, 0.0  ;;  %v2071_v8 = vadd.f32 %v1522_v1, %v1518_v0  ;;  %v2089_v40 = vmul.f32 0.35355338, %v363_v16 }
  0x21   : > { %443 = vadd.xlane.f32.xlu0 %v442_v3  ;;  %395 = vadd.xlane.f32.xlu1 %v394_v4  ;;  %v445_v26 = vsel %vm393_vm0, %v2073_v9, 0.0  ;;  %v397_v34 = vsel %vm393_vm0, %v2075_v12, 0.0  ;;  %v2093_v60 = vmul.f32 0.35355338, %v331_v20  ;;  %v2105_v4 = vsub.f32 %v1501_v35, %v1505_v36 }
  0x22   : > { %v304_v18 = vadd.f32 %v2071_v8, %v2069_v5  ;;  %v448_v61 = vsel %vm393_vm0, %v2089_v40, 0.0  ;;  %v2107_v16 = vmul.f32 0.35355338, %v369_v21  ;;  %v370_v20 = vsub.f32 %v314_v41, %v318_v23 }
  0x23   : > { %v400_v30 = vsel %vm393_vm0, %v2093_v60, 0.0  ;;  %v2131_v21 = vsub.f32 %v1510_v58, %v1514_v63 }
  0x24   : > { %v364_v47 = vsub.f32 %v300_v17, %v304_v18  ;;  %v332_v56 = vadd.f32 %v304_v18, %v300_v17  ;;  %v337_v17 = vadd.f32 %v2017_v32, %v2013_v31  ;;  %v2111_v18 = vsub.f32 %v1509_v37, %v1513_v42 }
  0x25   : > { %446 = vadd.xlane.f32.xlu0 %v445_v26  ;;  %398 = vadd.xlane.f32.xlu1 %v397_v34  ;;  %v338_v26 = vadd.f32 %v318_v23, %v314_v41  ;;  %v2117_v34 = vsub.f32 %v1517_v43, %v1521_v44  ;;  %v2121_v36 = vmul.f32 0.35355338, %v370_v20  ;;  %v315_v31 = vadd.f32 %v2105_v4, %v2097_v27 }
  0x26   : > { %v2101_v62 = vmul.f32 0.35355338, %v364_v47  ;;  %v2103_v3 = vmul.f32 0.35355338, %v332_v56  ;;  %v2125_v32 = vsub.f32 %v229_v50, %v1498_v51  ;;  %v2129_v42 = vsub.f32 %v1502_v52, %v1506_v57 }
  0x27   : > { %v319_v37 = vadd.f32 %v2117_v34, %v2111_v18  ;;  %v2133_v43 = vsub.f32 %v1518_v0, %v1522_v1  ;;  %v454_v50 = vsel %vm393_vm0, %v2107_v16, 0.0  ;;  %v2141_v51 = vmul.f32 0.35355338, %v337_v17 }
  0x28   : > { %v451_v29 = vsel %vm393_vm0, %v2101_v62, 0.0  ;;  %v403_v35 = vsel %vm393_vm0, %v2103_v3, 0.0  ;;  %v316_v44 = vadd.f32 %v2129_v42, %v2125_v32  ;;  %v457_v52 = vsel %vm393_vm0, %v2121_v36, 0.0 }
  0x29   : > { %449 = vadd.xlane.f32.xlu0 %v448_v61  ;;  %452 = vadd.xlane.f32.xlu1 %v451_v29  ;;  %v320_v41 = vadd.f32 %v2133_v43, %v2131_v21  ;;  %v2145_v57 = vmul.f32 0.35355338, %v338_v26  ;;  %v371_v58 = vsub.f32 %v315_v31, %v319_v37  ;;  %v305_v0 = vsub.f32 %v1973_v6, %v1979_v10 }
  0x2a   : > { %v309_v1 = vsub.f32 %v1981_v11, %v1988_v15  ;;  %v406_v47 = vsel %vm393_vm0, %v2141_v51, 0.0  ;;  %v339_v56 = vadd.f32 %v319_v37, %v315_v31  ;;  %v306_v23 = vsub.f32 %v2000_v24, %v2002_v25 }
  0x2b   : > { %v372_v63 = vsub.f32 %v316_v44, %v320_v41  ;;  %v310_v61 = vsub.f32 %v2007_v28, %v2019_v33  ;;  %v409_v20 = vsel %vm393_vm0, %v2145_v57, 0.0  ;;  %v2159_v17 = vmul.f32 0.35355338, %v371_v58 }
  0x2c   : > { %v340_v10 = vadd.f32 %v320_v41, %v316_v44  ;;  %v377_v11 = vsub.f32 %v305_v0, %v309_v1  ;;  %v2163_v15 = vmul.f32 0.35355338, %v339_v56  ;;  %v307_v37 = vsub.f32 %v2026_v38, %v2033_v45 }
  0x2d   : > { %401 = vadd.xlane.f32.xlu0 %v400_v30  ;;  %404 = vadd.xlane.f32.xlu1 %v403_v35  ;;  %v2161_v6 = vmul.f32 0.35355338, %v372_v63  ;;  %v378_v29 = vsub.f32 %v306_v23, %v310_v61  ;;  %v460_v24 = vsel %vm393_vm0, %v2159_v17, 0.0  ;;  %v345_v30 = vadd.f32 %v309_v1, %v305_v0 }
  0x2e   : > { %v2169_v28 = vmul.f32 0.35355338, %v340_v10  ;;  %v2171_v33 = vmul.f32 0.35355338, %v377_v11  ;;  %v412_v26 = vsel %vm393_vm0, %v2163_v15, 0.0  ;;  %v346_v31 = vadd.f32 %v310_v61, %v306_v23 }
  0x2f   : > { %v463_v25 = vsel %vm393_vm0, %v2161_v6, 0.0  ;;  %v2175_v35 = vmul.f32 0.35355338, %v378_v29  ;;  %v311_v41 = vsub.f32 %v2039_v48, %v2041_v49  ;;  %v2189_v63 = vmul.f32 0.35355338, %v345_v30 }
  0x30   : > { %v415_v44 = vsel %vm393_vm0, %v2169_v28, 0.0  ;;  %v466_v58 = vsel %vm393_vm0, %v2171_v33, 0.0  ;;  %v2193_v45 = vmul.f32 0.35355338, %v346_v31  ;;  %v324_v30 = vsub.f32 %v2125_v32, %v2129_v42 }
  0x31   : > { %455 = vadd.xlane.f32.xlu0 %v454_v50  ;;  %458 = vadd.xlane.f32.xlu1 %v457_v52  ;;  %v308_v50 = vsub.f32 %v2056_v59, %v2063_v2  ;;  %v312_v52 = vsub.f32 %v2069_v5, %v2071_v8  ;;  %v469_v38 = vsel %vm393_vm0, %v2175_v35, 0.0  ;;  %v379_v0 = vsub.f32 %v307_v37, %v311_v41 }
  0x32   : > { %v347_v49 = vadd.f32 %v311_v41, %v307_v37  ;;  %v321_v59 = vsub.f32 %v1975_v7, %v1984_v13  ;;  %v325_v2 = vsub.f32 %v1986_v14, %v1993_v19  ;;  %v322_v5 = vsub.f32 %v2028_v39, %v2035_v46 }
  0x33   : > { %v380_v48 = vsub.f32 %v308_v50, %v312_v52  ;;  %v348_v1 = vadd.f32 %v312_v52, %v308_v50  ;;  %v326_v8 = vsub.f32 %v2046_v53, %v2083_v22  ;;  %v421_v56 = vsel %vm393_vm0, %v2193_v45, 0.0 }
  0x34   : > { %v2207_v23 = vmul.f32 0.35355338, %v379_v0  ;;  %v2211_v13 = vmul.f32 0.35355338, %v347_v49  ;;  %v385_v19 = vsub.f32 %v321_v59, %v325_v2  ;;  %v353_v61 = vadd.f32 %v325_v2, %v321_v59  ;;  %v524_v49 = vld [vmem:[%s2486_s1 + $0x8] sm:$0xff] }
  0x35   : > { %407 = vadd.xlane.f32.xlu0 %v406_v47  ;;  %410 = vadd.xlane.f32.xlu1 %v409_v20  ;;  %v418_v47 = vsel %vm393_vm0, %v2189_v63, 0.0  ;;  %v2209_v7 = vmul.f32 0.35355338, %v380_v48  ;;  %v2213_v14 = vmul.f32 0.35355338, %v348_v1  ;;  %v386_v39 = vsub.f32 %v322_v5, %v326_v8 }
  0x36   : > { %v472_v46 = vsel %vm393_vm0, %v2207_v23, 0.0  ;;  %v424_v22 = vsel %vm393_vm0, %v2211_v13, 0.0  ;;  %v2223_v10 = vmul.f32 0.35355338, %v385_v19  ;;  %v354_v29 = vadd.f32 %v326_v8, %v322_v5  ;;  %591 = vmatprep.mubr.f32.mxu0 %v524_v49 }
  0x37   : > { %v475_v53 = vsel %vm393_vm0, %v2209_v7, 0.0  ;;  %v427_v20 = vsel %vm393_vm0, %v2213_v14, 0.0  ;;  %v2225_v11 = vmul.f32 0.35355338, %v386_v39  ;;  %v2235_v31 = vmul.f32 0.35355338, %v353_v61 }
  0x38   : > { %v2237_v37 = vmul.f32 0.35355338, %v354_v29 }
  0x39   : > { %461 = vadd.xlane.f32.xlu0 %v460_v24  ;;  %464 = vadd.xlane.f32.xlu1 %v463_v25  ;;  %v323_v24 = vsub.f32 %v2097_v27, %v2105_v4  ;;  %v327_v25 = vsub.f32 %v2111_v18, %v2117_v34  ;;  %v481_v27 = vsel %vm393_vm0, %v2225_v11, 0.0  ;;  %v430_v34 = vsel %vm393_vm0, %v2235_v31, 0.0 }
  0x3a   : > { %v433_v32 = vsel %vm393_vm0, %v2237_v37, 0.0 }
  0x3b   : > { %v387_v4 = vsub.f32 %v323_v24, %v327_v25 }
  0x3d   : > { %413 = vadd.xlane.f32.xlu0 %v412_v26  ;;  %416 = vadd.xlane.f32.xlu1 %v415_v44  ;;  %v328_v26 = vsub.f32 %v2131_v21, %v2133_v43  ;;  %v478_v44 = vsel %vm393_vm0, %v2223_v10, 0.0  ;;  %v2247_v42 = vmul.f32 0.35355338, %v387_v4  ;;  %v355_v43 = vadd.f32 %v327_v25, %v323_v24 }
  0x3f   : > { %v388_v18 = vsub.f32 %v324_v30, %v328_v26  ;;  %v356_v41 = vadd.f32 %v328_v26, %v324_v30  ;;  %v484_v50 = vsel %vm393_vm0, %v2247_v42, 0.0 }
  0x41   : > { %467 = vadd.xlane.f32.xlu0 %v466_v58  ;;  %470 = vadd.xlane.f32.xlu1 %v469_v38  ;;  %v2249_v21 = vmul.f32 0.35355338, %v388_v18  ;;  %v2255_v58 = vmul.f32 0.35355338, %v355_v43  ;;  %v2257_v38 = vmul.f32 0.35355338, %v356_v41 }
  0x43   : > { %v487_v52 = vsel %vm393_vm0, %v2249_v21, 0.0  ;;  %v436_v0 = vsel %vm393_vm0, %v2255_v58, 0.0  ;;  %v439_v48 = vsel %vm393_vm0, %v2257_v38, 0.0 }
  0x45   : > { %419 = vadd.xlane.f32.xlu0 %v418_v47  ;;  %422 = vadd.xlane.f32.xlu1 %v421_v56 }
  0x49   : > { %473 = vadd.xlane.f32.xlu0 %v472_v46  ;;  %476 = vadd.xlane.f32.xlu1 %v475_v53 }
  0x4d   : > { %425 = vadd.xlane.f32.xlu0 %v424_v22  ;;  %428 = vadd.xlane.f32.xlu1 %v427_v20 }
  0x51   : > { %479 = vadd.xlane.f32.xlu0 %v478_v44  ;;  %482 = vadd.xlane.f32.xlu1 %v481_v27 }
  0x55   : > { %431 = vadd.xlane.f32.xlu0 %v430_v34  ;;  %434 = vadd.xlane.f32.xlu1 %v433_v32 }
  0x59   : > { %485 = vadd.xlane.f32.xlu0 %v484_v50  ;;  %488 = vadd.xlane.f32.xlu1 %v487_v52 }
  0x5d   : > { %437 = vadd.xlane.f32.xlu0 %v436_v0  ;;  %440 = vadd.xlane.f32.xlu1 %v439_v48 }
  0xae   : > { %v444_v1 = vpop.xlane.xlu0 %443  ;;  %v396_v59 = vpop.xlane.xlu1 %395 }
  0xaf   : > { %v507_v8 = vmul.f32 0.125, %v444_v1  ;;  %v491_v47 = vmul.f32 0.125, %v396_v59 }
  0xb2   : > { %v447_v2 = vpop.xlane.xlu0 %446  ;;  %v399_v5 = vpop.xlane.xlu1 %398 }
  0xb3   : > { %v508_v56 = vmul.f32 0.125, %v447_v2  ;;  %v492_v19 = vmul.f32 0.125, %v399_v5 }
  0xb5   : > { %v1715_v39 = vpack.c.bf16 %v508_v56, %v507_v8  ;;  %v1717_v46 = vpack.c.bf16 %v492_v19, %v491_v47 }
  0xb6   : > { %v450_v53 = vpop.xlane.xlu0 %449  ;;  %v453_v22 = vpop.xlane.xlu1 %452 }
  0xb7   : > { %v509_v61 = vmul.f32 0.125, %v450_v53  ;;  %v510_v20 = vmul.f32 0.125, %v453_v22  ;;  %1716 = vmatprep.subr.bf16.mxu0 %v1715_v39 }
  0xb8   : > { %1718 = vmatpush3.bf16.msra.mxu0 %v1717_v46 }
  0xb9   : > { %v1719_v29 = vpack.c.bf16 %v510_v20, %v509_v61 }
  0xba   : > { %v402_v24 = vpop.xlane.xlu0 %401  ;;  %v405_v25 = vpop.xlane.xlu1 %404 }
  0xbb   : > { %v493_v30 = vmul.f32 0.125, %v402_v24  ;;  %v494_v26 = vmul.f32 0.125, %v405_v25  ;;  %1720 = vmatprep.subr.bf16.mxu0 %v1719_v29 }
  0xbd   : > { %v1721_v44 = vpack.c.bf16 %v494_v26, %v493_v30 }
  0xbe   : > { %v456_v27 = vpop.xlane.xlu0 %455  ;;  %v459_v4 = vpop.xlane.xlu1 %458 }
  0xbf   : > { %v511_v18 = vmul.f32 0.125, %v456_v27  ;;  %v512_v34 = vmul.f32 0.125, %v459_v4  ;;  %1722 = vmatpush3.bf16.msra.mxu0 %v1721_v44 }
  0xc1   : > { %v1723_v32 = vpack.c.bf16 %v512_v34, %v511_v18 }
  0xc2   : > { %v408_v43 = vpop.xlane.xlu0 %407  ;;  %v411_v41 = vpop.xlane.xlu1 %410 }
  0xc3   : > { %v495_v50 = vmul.f32 0.125, %v408_v43  ;;  %v496_v52 = vmul.f32 0.125, %v411_v41  ;;  %1724 = vmatprep.subr.bf16.mxu0 %v1723_v32 }
  0xc5   : > { %v1725_v0 = vpack.c.bf16 %v496_v52, %v495_v50 }
  0xc6   : > { %v462_v48 = vpop.xlane.xlu0 %461  ;;  %v465_v49 = vpop.xlane.xlu1 %464 }
  0xc7   : > { %v513_v1 = vmul.f32 0.125, %v462_v48  ;;  %v514_v59 = vmul.f32 0.125, %v465_v49  ;;  %1726 = vmatpush3.bf16.msra.mxu0 %v1725_v0 }
  0xc9   : > { %v1727_v2 = vpack.c.bf16 %v514_v59, %v513_v1 }
  0xca   : > { %v414_v5 = vpop.xlane.xlu0 %413  ;;  %v417_v8 = vpop.xlane.xlu1 %416 }
  0xcb   : > { %v497_v47 = vmul.f32 0.125, %v414_v5  ;;  %v498_v56 = vmul.f32 0.125, %v417_v8  ;;  %1728 = vmatprep.subr.bf16.mxu0 %v1727_v2 }
  0xcd   : > { %v1729_v19 = vpack.c.bf16 %v498_v56, %v497_v47 }
  0xce   : > { %v468_v39 = vpop.xlane.xlu0 %467  ;;  %v471_v46 = vpop.xlane.xlu1 %470 }
  0xcf   : > { %v515_v53 = vmul.f32 0.125, %v468_v39  ;;  %v516_v22 = vmul.f32 0.125, %v471_v46  ;;  %1730 = vmatpush3.bf16.msra.mxu0 %v1729_v19 }
  0xd1   : > { %v1731_v61 = vpack.c.bf16 %v516_v22, %v515_v53 }
  0xd2   : > { %v420_v20 = vpop.xlane.xlu0 %419  ;;  %v423_v29 = vpop.xlane.xlu1 %422 }
  0xd3   : > { %v499_v24 = vmul.f32 0.125, %v420_v20  ;;  %v500_v25 = vmul.f32 0.125, %v423_v29  ;;  %1732 = vmatprep.subr.bf16.mxu0 %v1731_v61 }
  0xd5   : > { %v1733_v30 = vpack.c.bf16 %v500_v25, %v499_v24  ;;  %v523_v25 = vld [vmem:[%s2486_s1] sm:$0xff] }
  0xd6   : > { %v474_v26 = vpop.xlane.xlu0 %473  ;;  %v477_v44 = vpop.xlane.xlu1 %476 }
  0xd7   : > { %v517_v27 = vmul.f32 0.125, %v474_v26  ;;  %v518_v4 = vmul.f32 0.125, %v477_v44  ;;  %1734 = vmatpush3.bf16.msra.mxu0 %v1733_v30  ;;  %v526_v30 = vld [vmem:[%s2486_s1 + $0x18] sm:$0xff]  ;;  %v525_v26 = vld [vmem:[%s2486_s1 + $0x10] sm:$0xff]  ;;  %v604_v44 = vld [vmem:[%s2487_s2] sm:$0xff] }
  0xd8   : > { %1667 = vmatprep.mubr.msk.f32.mxu1 %vm636_vm1, %v604_v44  ;;  %v627_v44 = vld [vmem:[%s2487_s2 + $0xb8] sm:$0xff] }
  0xd9   : > { %v1735_v18 = vpack.c.bf16 %v518_v4, %v517_v27 }
  0xda   : > { %v426_v34 = vpop.xlane.xlu0 %425  ;;  %v429_v32 = vpop.xlane.xlu1 %428 }
  0xdb   : > { %v501_v43 = vmul.f32 0.125, %v426_v34  ;;  %v502_v41 = vmul.f32 0.125, %v429_v32  ;;  %1736 = vmatprep.subr.bf16.mxu0 %v1735_v18 }
  0xdd   : > { %v1737_v50 = vpack.c.bf16 %v502_v41, %v501_v43 }
  0xde   : > { %v480_v52 = vpop.xlane.xlu0 %479  ;;  %v483_v0 = vpop.xlane.xlu1 %482 }
  0xdf   : > { %v519_v48 = vmul.f32 0.125, %v480_v52  ;;  %v520_v49 = vmul.f32 0.125, %v483_v0  ;;  %1738 = vmatpush3.bf16.msra.mxu0 %v1737_v50  ;;  %v605_v0 = vld [vmem:[%s2487_s2 + $0x8] sm:$0xff] }
  0xe1   : > { %v1739_v1 = vpack.c.bf16 %v520_v49, %v519_v48  ;;  %v606_v48 = vld [vmem:[%s2487_s2 + $0x10] sm:$0xff]  ;;  %v607_v49 = vld [vmem:[%s2487_s2 + $0x18] sm:$0xff] }
  0xe2   : > { %v432_v59 = vpop.xlane.xlu0 %431  ;;  %v435_v2 = vpop.xlane.xlu1 %434 }
  0xe3   : > { %v503_v5 = vmul.f32 0.125, %v432_v59  ;;  %v504_v8 = vmul.f32 0.125, %v435_v2  ;;  %1740 = vmatprep.subr.bf16.mxu0 %v1739_v1  ;;  %v608_v1 = vld [vmem:[%s2487_s2 + $0x20] sm:$0xff]  ;;  %v609_v59 = vld [vmem:[%s2487_s2 + $0x28] sm:$0xff]  ;;  %v610_v2 = vld [vmem:[%s2487_s2 + $0x30] sm:$0xff] }
  0xe5   : > { %v1741_v47 = vpack.c.bf16 %v504_v8, %v503_v5  ;;  %v611_v5 = vld [vmem:[%s2487_s2 + $0x38] sm:$0xff]  ;;  %v612_v8 = vld [vmem:[%s2487_s2 + $0x40] sm:$0xff] }
  0xe6   : > { %v486_v56 = vpop.xlane.xlu0 %485  ;;  %v489_v19 = vpop.xlane.xlu1 %488 }
  0xe7   : > { %v521_v39 = vmul.f32 0.125, %v486_v56  ;;  %v522_v46 = vmul.f32 0.125, %v489_v19  ;;  %1742 = vmatpush3.bf16.msra.mxu0 %v1741_v47  ;;  %v613_v47 = vld [vmem:[%s2487_s2 + $0x48] sm:$0xff]  ;;  %v614_v56 = vld [vmem:[%s2487_s2 + $0x50] sm:$0xff]  ;;  %v615_v19 = vld [vmem:[%s2487_s2 + $0x58] sm:$0xff] }
  0xe9   : > { %v1743_v53 = vpack.c.bf16 %v522_v46, %v521_v39  ;;  %v616_v39 = vld [vmem:[%s2487_s2 + $0x60] sm:$0xff]  ;;  %v617_v46 = vld [vmem:[%s2487_s2 + $0x68] sm:$0xff] }
  0xea   : > { %v438_v22 = vpop.xlane.xlu0 %437  ;;  %v441_v61 = vpop.xlane.xlu1 %440 }
  0xeb   : > { %v505_v20 = vmul.f32 0.125, %v438_v22  ;;  %v506_v29 = vmul.f32 0.125, %v441_v61  ;;  %1744 = vmatprep.subr.bf16.mxu0 %v1743_v53  ;;  %v618_v53 = vld [vmem:[%s2487_s2 + $0x70] sm:$0xff]  ;;  %v619_v22 = vld [vmem:[%s2487_s2 + $0x78] sm:$0xff]  ;;  %v620_v61 = vld [vmem:[%s2487_s2 + $0x80] sm:$0xff] }
  0xed   : > { %v1745_v24 = vpack.c.bf16 %v506_v29, %v505_v20  ;;  %v621_v20 = vld [vmem:[%s2487_s2 + $0x88] sm:$0xff]  ;;  %v622_v29 = vld [vmem:[%s2487_s2 + $0x90] sm:$0xff] }
  0xef   : > { %1746 = vmatpush3.bf16.msra.mxu0 %v1745_v24  ;;  %v623_v24 = vld [vmem:[%s2487_s2 + $0x98] sm:$0xff] }
  0xf2   : > { %592 = vmatmul.mubr.f32.vlgmr.msra.gmra.mrb[0].mxu0 %v523_v25  ;;  %v624_v25 = vld [vmem:[%s2487_s2 + $0xa0] sm:$0xff] }
  0xf3   : > { %596 = vmatprep.mubr.f32.mxu0 %v526_v30  ;;  %v625_v30 = vld [vmem:[%s2487_s2 + $0xa8] sm:$0xff] }
  0xf6   : > { %597 = vmatmul.mubr.f32.gmra.mrb[2].mxu0 %v525_v26  ;;  %v626_v26 = vld [vmem:[%s2487_s2 + $0xb0] sm:$0xff] }
 0x1c5   : > { %v1595_v27 = vpop.f32.mrb[0].mxu0 }
 0x1c6   : > { %v1596_v4 = vpop.f32.mrb[1].mxu0 }
 0x1c7   : > { %v1597_v18 = vadd.f32 %v1596_v4, %v1595_v27  ;;  %v628_v27 = vld [vmem:[%s2487_s2 + $0xc0] sm:$0xff]  ;;  %v629_v4 = vld [vmem:[%s2487_s2 + $0xc8] sm:$0xff] }
 0x1c9   : > { %v1598_v34 = vpop.f32.mrb[2].mxu0  ;;  %v602_v41 = vmax.f32 %v1597_v18, 0.0  ;;  %v630_v18 = vld [vmem:[%s2487_s2 + $0xd0] sm:$0xff] }
 0x1ca   : > { %v1599_v32 = vpop.f32.mrb[3].mxu0 }
 0x1cb   : > { %v1600_v43 = vadd.f32 %v1599_v32, %v1598_v34  ;;  %v631_v34 = vld [vmem:[%s2487_s2 + $0xd8] sm:$0xff]  ;;  %v632_v32 = vld [vmem:[%s2487_s2 + $0xe0] sm:$0xff] }
 0x1cd   : > { %v603_v50 = vmax.f32 %v1600_v43, 0.0  ;;  %v633_v43 = vld [vmem:[%s2487_s2 + $0xe8] sm:$0xff] }
 0x1cf   : > { %v1747_v52 = vpack.c.bf16 %v603_v50, %v602_v41  ;;  %v634_v41 = vld [vmem:[%s2487_s2 + $0xf0] sm:$0xff]  ;;  %v635_v50 = vld [vmem:[%s2487_s2 + $0xf8] sm:$0xff] }
 0x1d1   : > { %1748 = vmatprep.subr.bf16.mxu1 %v1747_v52 }
 0x1d2   : > { %1750 = vmatpush3.bf16.msra.mxu1 %v1747_v52  ;;  %v1920_v52 = vmov 0  }
 0x1d3   : > { %1776 = vset.pattern.permute.xlu1 %v1920_v52  ;;  %1777 = vset.pattern.permute.xlu0 %v1920_v52 }
 0x1d5   : > { %1668 = vmatmul.mubr.msk.f32.vlgmr.msra.gmra.mrb[0].mxu1 %vm636_vm1, %v605_v0 }
 0x1d6   : > { %1670 = vmatprep.mubr.msk.f32.mxu1 %vm636_vm1, %v606_v48 }
 0x1d9   : > { %1671 = vmatmul.mubr.msk.f32.gmra.mrb[2].mxu1 %vm636_vm1, %v607_v49 }
 0x1da   : > { %1673 = vmatprep.mubr.msk.f32.mxu1 %vm636_vm1, %v608_v1 }
 0x1dd   : > { %1674 = vmatmul.mubr.msk.f32.gmra.mrb[4].mxu1 %vm636_vm1, %v609_v59 }
 0x1de   : > { %1676 = vmatprep.mubr.msk.f32.mxu1 %vm636_vm1, %v610_v2 }
 0x1e1   : > { %1677 = vmatmul.mubr.msk.f32.gmra.mrb[6].mxu1 %vm636_vm1, %v611_v5 }
 0x1e2   : > { %1679 = vmatprep.mubr.msk.f32.mxu1 %vm636_vm1, %v612_v8 }
 0x1e5   : > { %1680 = vmatmul.mubr.msk.f32.gmra.mrb[8].mxu1 %vm636_vm1, %v613_v47 }
 0x1e6   : > { %1682 = vmatprep.mubr.msk.f32.mxu1 %vm636_vm1, %v614_v56 }
 0x1e9   : > { %1683 = vmatmul.mubr.msk.f32.gmra.mrb[10].mxu1 %vm636_vm1, %v615_v19 }
 0x1ea   : > { %1685 = vmatprep.mubr.msk.f32.mxu1 %vm636_vm1, %v616_v39 }
 0x1ed   : > { %1686 = vmatmul.mubr.msk.f32.gmra.mrb[12].mxu1 %vm636_vm1, %v617_v46 }
 0x1ee   : > { %1688 = vmatprep.mubr.msk.f32.mxu1 %vm636_vm1, %v618_v53 }
 0x1f1   : > { %1689 = vmatmul.mubr.msk.f32.gmra.mrb[14].mxu1 %vm636_vm1, %v619_v22 }
 0x1f2   : > { %1691 = vmatprep.mubr.msk.f32.mxu1 %vm636_vm1, %v620_v61 }
 0x1f5   : > { %1692 = vmatmul.mubr.msk.f32.gmra.mrb[16].mxu1 %vm636_vm1, %v621_v20 }
 0x1f6   : > { %1694 = vmatprep.mubr.msk.f32.mxu1 %vm636_vm1, %v622_v29 }
 0x1f9   : > { %1695 = vmatmul.mubr.msk.f32.gmra.mrb[18].mxu1 %vm636_vm1, %v623_v24 }
 0x1fa   : > { %1697 = vmatprep.mubr.msk.f32.mxu1 %vm636_vm1, %v624_v25 }
 0x1fd   : > { %1698 = vmatmul.mubr.msk.f32.gmra.mrb[20].mxu1 %vm636_vm1, %v625_v30 }
 0x1fe   : > { %1700 = vmatprep.mubr.msk.f32.mxu1 %vm636_vm1, %v626_v26 }
 0x201   : > { %1701 = vmatmul.mubr.msk.f32.gmra.mrb[22].mxu1 %vm636_vm1, %v627_v44 }
 0x202   : > { %1703 = vmatprep.mubr.msk.f32.mxu1 %vm636_vm1, %v628_v27 }
 0x205   : > { %1704 = vmatmul.mubr.msk.f32.gmra.mrb[24].mxu1 %vm636_vm1, %v629_v4 }
 0x206   : > { %1706 = vmatprep.mubr.msk.f32.mxu1 %vm636_vm1, %v630_v18 }
 0x209   : > { %1707 = vmatmul.mubr.msk.f32.gmra.mrb[26].mxu1 %vm636_vm1, %v631_v34 }
 0x20a   : > { %1709 = vmatprep.mubr.msk.f32.mxu1 %vm636_vm1, %v632_v32 }
 0x20d   : > { %1710 = vmatmul.mubr.msk.f32.gmra.mrb[28].mxu1 %vm636_vm1, %v633_v43 }
 0x20e   : > { %1712 = vmatprep.mubr.msk.f32.mxu1 %vm636_vm1, %v634_v41 }
 0x211   : > { %1713 = vmatmul.mubr.msk.f32.gmra.mrb[30].mxu1 %vm636_vm1, %v635_v50 }
 0x2a8   : > { %v1669_v0 = vpop.f32.mrb[0].mxu1 }
 0x2a9   : > { %v959_v48 = vsub.f32 0.0, %v1669_v0  ;;  %v799_v49 = vpop.f32.mrb[1].mxu1 }
 0x2aa   : > { %v958_v1 = vsub.f32 0.0, %v799_v49 }
 0x2ab   : > { %v992_v59 = vmul.f32 1.442695, %v959_v48 }
 0x2ac   : > { %v990_v2 = vmul.f32 1.442695, %v958_v1  ;;  %v1672_v5 = vpop.f32.mrb[2].mxu1 }
 0x2ad   : > { %1784 = vpow2.f32 %v992_v59  ;;  %v961_v8 = vsub.f32 0.0, %v1672_v5  ;;  %v809_v47 = vpop.f32.mrb[3].mxu1 }
 0x2ae   : > { %1786 = vpow2.f32 %v990_v2  ;;  %v960_v56 = vsub.f32 0.0, %v809_v47 }
 0x2af   : > { %v996_v19 = vmul.f32 1.442695, %v961_v8 }
 0x2b0   : > { %v994_v39 = vmul.f32 1.442695, %v960_v56  ;;  %v1675_v46 = vpop.f32.mrb[4].mxu1 }
 0x2b1   : > { %1788 = vpow2.f32 %v996_v19  ;;  %v963_v53 = vsub.f32 0.0, %v1675_v46  ;;  %v819_v22 = vpop.f32.mrb[5].mxu1 }
 0x2b2   : > { %v962_v61 = vsub.f32 0.0, %v819_v22  ;;  %1790 = vpow2.f32 %v994_v39 }
 0x2b3   : > { %v1000_v20 = vmul.f32 1.442695, %v963_v53 }
 0x2b4   : > { %v998_v29 = vmul.f32 1.442695, %v962_v61  ;;  %v1678_v24 = vpop.f32.mrb[6].mxu1 }
 0x2b5   : > { %1792 = vpow2.f32 %v1000_v20  ;;  %v965_v25 = vsub.f32 0.0, %v1678_v24  ;;  %v829_v30 = vpop.f32.mrb[7].mxu1 }
 0x2b6   : > { %v964_v26 = vsub.f32 0.0, %v829_v30  ;;  %1794 = vpow2.f32 %v998_v29 }
 0x2b7   : > { %v1785_v44 = vpop.eup %1784  ;;  %v1004_v27 = vmul.f32 1.442695, %v965_v25 }
 0x2b8   : > { %v1787_v4 = vpop.eup %1786  ;;  %v1055_v18 = vadd.f32 1.0, %v1785_v44  ;;  %v1002_v34 = vmul.f32 1.442695, %v964_v26  ;;  %v1681_v32 = vpop.f32.mrb[8].mxu1 }
 0x2b9   : > { %1796 = vpow2.f32 %v1004_v27  ;;  %v967_v43 = vsub.f32 0.0, %v1681_v32  ;;  %v839_v41 = vpop.f32.mrb[9].mxu1  ;;  %v1054_v50 = vadd.f32 1.0, %v1787_v4 }
 0x2ba   : > { %1798 = vrcp.f32 %v1055_v18  ;;  %v966_v52 = vsub.f32 0.0, %v839_v41 }
 0x2bb   : > { %v1789_v0 = vpop.eup %1788  ;;  %v1008_v48 = vmul.f32 1.442695, %v967_v43  ;;  %1800 = vpow2.f32 %v1002_v34 }
 0x2bc   : > { %v1057_v49 = vadd.f32 1.0, %v1789_v0  ;;  %v1006_v1 = vmul.f32 1.442695, %v966_v52  ;;  %v1684_v59 = vpop.f32.mrb[10].mxu1  ;;  %v1791_v8 = vpop.eup %1790 }
 0x2bd   : > { %1802 = vpow2.f32 %v1008_v48  ;;  %v969_v2 = vsub.f32 0.0, %v1684_v59  ;;  %v849_v5 = vpop.f32.mrb[11].mxu1  ;;  %v1056_v22 = vadd.f32 1.0, %v1791_v8 }
 0x2be   : > { %1804 = vrcp.f32 %v1054_v50  ;;  %v968_v47 = vsub.f32 0.0, %v849_v5 }
 0x2bf   : > { %v1793_v56 = vpop.eup %1792  ;;  %1806 = vrcp.f32 %v1057_v49  ;;  %v1012_v19 = vmul.f32 1.442695, %v969_v2 }
 0x2c0   : > { %v1059_v39 = vadd.f32 1.0, %v1793_v56  ;;  %1808 = vpow2.f32 %v1006_v1  ;;  %v1010_v46 = vmul.f32 1.442695, %v968_v47  ;;  %v1687_v53 = vpop.f32.mrb[12].mxu1  ;;  %v1795_v29 = vpop.eup %1794 }
 0x2c1   : > { %1810 = vpow2.f32 %v1012_v19  ;;  %v971_v61 = vsub.f32 0.0, %v1687_v53  ;;  %v859_v20 = vpop.f32.mrb[13].mxu1  ;;  %v1058_v18 = vadd.f32 1.0, %v1795_v29 }
 0x2c2   : > { %1812 = vrcp.f32 %v1059_v39  ;;  %v970_v24 = vsub.f32 0.0, %v859_v20 }
 0x2c3   : > { %v1797_v25 = vpop.eup %1796  ;;  %v1016_v30 = vmul.f32 1.442695, %v971_v61  ;;  %1814 = vpow2.f32 %v1010_v46 }
 0x2c4   : > { %v1799_v26 = vpop.eup %1798  ;;  %v1061_v44 = vadd.f32 1.0, %v1797_v25  ;;  %v1014_v27 = vmul.f32 1.442695, %v970_v24  ;;  %v2403_v4 = vpop.f32.mrb[14].mxu1  ;;  %1816 = vrcp.f32 %v1056_v22 }
 0x2c5   : > { %1125 = vperm.xlu1 %1776, %v1799_v26   ;;  %v2405_v34 = vpop.f32.mrb[15].mxu1  ;;  %v1801_v32 = vpop.eup %1800 }
 0x2c6   : > { %1818 = vrcp.f32 %v1061_v44  ;;  %v1060_v48 = vadd.f32 1.0, %v1801_v32 }
 0x2c7   : > { %v1803_v43 = vpop.eup %1802  ;;  %1820 = vpow2.f32 %v1016_v30 }
 0x2c8   : > { %v1805_v41 = vpop.eup %1804  ;;  %v1063_v50 = vadd.f32 1.0, %v1803_v43  ;;  %1822 = vpow2.f32 %v1014_v27  ;;  %v1693_v52 = vpop.f32.mrb[16].mxu1 }
 0x2c9   : > { %v1807_v0 = vpop.eup %1806  ;;  %1824 = vrcp.f32 %v1058_v18  ;;  %v975_v49 = vsub.f32 0.0, %v1693_v52  ;;  %1120 = vperm.xlu1 %1776, %v1805_v41   ;;  %v879_v1 = vpop.f32.mrb[17].mxu1 }
 0x2ca   : > { %v1809_v59 = vpop.eup %1808  ;;  %1826 = vrcp.f32 %v1063_v50  ;;  %v974_v2 = vsub.f32 0.0, %v879_v1 }
 0x2cb   : > { %v1811_v5 = vpop.eup %1810  ;;  %v1024_v8 = vmul.f32 1.442695, %v975_v49  ;;  %1828 = vrcp.f32 %v1060_v48  ;;  %v1062_v61 = vadd.f32 1.0, %v1809_v59 }
 0x2cc   : > { %v1813_v47 = vpop.eup %1812  ;;  %v1065_v56 = vadd.f32 1.0, %v1811_v5  ;;  %v1022_v19 = vmul.f32 1.442695, %v974_v2  ;;  %v1696_v39 = vpop.f32.mrb[18].mxu1 }
 0x2cd   : > { %1135 = vperm.xlu1 %1776, %v1807_v0   ;;  %1145 = vperm.xlu0 %1777, %v1813_v47   ;;  %v977_v46 = vsub.f32 0.0, %v1696_v39  ;;  %v889_v53 = vpop.f32.mrb[19].mxu1  ;;  %v1815_v22 = vpop.eup %1814 }
 0x2ce   : > { %1830 = vrcp.f32 %v1065_v56  ;;  %v976_v20 = vsub.f32 0.0, %v889_v53  ;;  %v1817_v29 = vpop.eup %1816  ;;  %v1064_v30 = vadd.f32 1.0, %v1815_v22 }
 0x2cf   : > { %1832 = vpow2.f32 %v1024_v8  ;;  %v1028_v24 = vmul.f32 1.442695, %v977_v46 }
 0x2d0   : > { %v1819_v25 = vpop.eup %1818  ;;  %1834 = vpow2.f32 %v1022_v19  ;;  %v1699_v26 = vpop.f32.mrb[20].mxu1  ;;  %v1026_v27 = vmul.f32 1.442695, %v976_v20 }
 0x2d1   : > { %v1821_v44 = vpop.eup %1820  ;;  %1130 = vperm.xlu1 %1776, %v1817_v29   ;;  %1155 = vperm.xlu0 %1777, %v1819_v25   ;;  %v979_v18 = vsub.f32 0.0, %v1699_v26  ;;  %v899_v32 = vpop.f32.mrb[21].mxu1  ;;  %1836 = vrcp.f32 %v1062_v61  ;;  %v973_v29 = vsub.f32 0.0, %v2403_v4 }
 0x2d2   : > { %v1823_v43 = vpop.eup %1822  ;;  %v978_v41 = vsub.f32 0.0, %v899_v32  ;;  %1838 = vpow2.f32 %v1028_v24  ;;  %v1067_v48 = vadd.f32 1.0, %v1821_v44 }
 0x2d3   : > { %v1825_v50 = vpop.eup %1824  ;;  %v1032_v52 = vmul.f32 1.442695, %v979_v18  ;;  %1840 = vrcp.f32 %v1064_v30  ;;  %v1066_v59 = vadd.f32 1.0, %v1823_v43 }
 0x2d4   : > { %v1827_v0 = vpop.eup %1826  ;;  %v1030_v49 = vmul.f32 1.442695, %v978_v41  ;;  %v1702_v1 = vpop.f32.mrb[22].mxu1  ;;  %1842 = vpow2.f32 %v1026_v27 }
 0x2d5   : > { %1140 = vperm.xlu1 %1776, %v1825_v50   ;;  %1165 = vperm.xlu0 %1777, %v1827_v0   ;;  %v981_v2 = vsub.f32 0.0, %v1702_v1  ;;  %v909_v5 = vpop.f32.mrb[23].mxu1  ;;  %1844 = vpow2.f32 %v1032_v52  ;;  %v1829_v47 = vpop.eup %1828  ;;  %v1020_v52 = vmul.f32 1.442695, %v973_v29 }
 0x2d6   : > { %v980_v8 = vsub.f32 0.0, %v909_v5  ;;  %1846 = vpow2.f32 %v1030_v49 }
 0x2d7   : > { %v1036_v56 = vmul.f32 1.442695, %v981_v2  ;;  %1848 = vrcp.f32 %v1067_v48 }
 0x2d8   : > { %v1831_v19 = vpop.eup %1830  ;;  %v1034_v39 = vmul.f32 1.442695, %v980_v8  ;;  %v1705_v46 = vpop.f32.mrb[24].mxu1  ;;  %1850 = vrcp.f32 %v1066_v59 }
 0x2d9   : > { %v1833_v53 = vpop.eup %1832  ;;  %1150 = vperm.xlu1 %1776, %v1829_v47   ;;  %1175 = vperm.xlu0 %1777, %v1831_v19   ;;  %v983_v22 = vsub.f32 0.0, %v1705_v46  ;;  %v919_v61 = vpop.f32.mrb[25].mxu1  ;;  %1852 = vpow2.f32 %v1036_v56 }
 0x2da   : > { %v1835_v20 = vpop.eup %1834  ;;  %v1071_v24 = vadd.f32 1.0, %v1833_v53  ;;  %v982_v25 = vsub.f32 0.0, %v919_v61  ;;  %1854 = vpow2.f32 %v1034_v39 }
 0x2db   : > { %v1070_v30 = vadd.f32 1.0, %v1835_v20  ;;  %v1040_v26 = vmul.f32 1.442695, %v983_v22  ;;  %v1837_v44 = vpop.eup %1836 }
 0x2dc   : > { %1856 = vrcp.f32 %v1071_v24  ;;  %v1038_v27 = vmul.f32 1.442695, %v982_v25  ;;  %v1708_v18 = vpop.f32.mrb[26].mxu1  ;;  %v1839_v32 = vpop.eup %1838 }
 0x2dd   : > { %1858 = vrcp.f32 %v1070_v30  ;;  %1160 = vperm.xlu1 %1776, %v1837_v44   ;;  %v985_v43 = vsub.f32 0.0, %v1708_v18  ;;  %v929_v41 = vpop.f32.mrb[27].mxu1  ;;  %v1841_v50 = vpop.eup %1840  ;;  %v1073_v0 = vadd.f32 1.0, %v1839_v32 }
 0x2de   : > { %1860 = vpow2.f32 %v1040_v26  ;;  %v984_v4 = vsub.f32 0.0, %v929_v41  ;;  %v1843_v48 = vpop.eup %1842 }
 0x2df   : > { %1862 = vpow2.f32 %v1038_v27  ;;  %v1044_v49 = vmul.f32 1.442695, %v985_v43  ;;  %v1845_v1 = vpop.eup %1844  ;;  %v1072_v59 = vadd.f32 1.0, %v1843_v48 }
 0x2e0   : > { %1864 = vrcp.f32 %v1073_v0  ;;  %v1711_v2 = vpop.f32.mrb[28].mxu1  ;;  %v1847_v5 = vpop.eup %1846  ;;  %v1075_v8 = vadd.f32 1.0, %v1845_v1  ;;  %v1042_v47 = vmul.f32 1.442695, %v984_v4  ;;  %v972_v0 = vsub.f32 0.0, %v2405_v34 }
 0x2e1   : > { %1866 = vpow2.f32 %v1044_v49  ;;  %1170 = vperm.xlu1 %1776, %v1841_v50   ;;  %v987_v56 = vsub.f32 0.0, %v1711_v2  ;;  %v939_v19 = vpop.f32.mrb[29].mxu1  ;;  %v1849_v39 = vpop.eup %1848  ;;  %v1074_v20 = vadd.f32 1.0, %v1847_v5 }
 0x2e2   : > { %1868 = vpow2.f32 %v1020_v52  ;;  %v986_v46 = vsub.f32 0.0, %v939_v19  ;;  %v1851_v53 = vpop.eup %1850 }
 0x2e3   : > { %1870 = vrcp.f32 %v1075_v8  ;;  %v1048_v22 = vmul.f32 1.442695, %v987_v56  ;;  %v1853_v61 = vpop.eup %1852 }
 0x2e4   : > { %1872 = vrcp.f32 %v1072_v59  ;;  %v1714_v29 = vpop.f32.mrb[30].mxu1  ;;  %v1855_v24 = vpop.eup %1854  ;;  %v1077_v25 = vadd.f32 1.0, %v1853_v61  ;;  %v1046_v30 = vmul.f32 1.442695, %v986_v46 }
 0x2e5   : > { %1874 = vpow2.f32 %v1042_v47  ;;  %1180 = vperm.xlu1 %1776, %v1851_v53   ;;  %v989_v26 = vsub.f32 0.0, %v1714_v29  ;;  %v949_v44 = vpop.f32.mrb[31].mxu1  ;;  %v1076_v50 = vadd.f32 1.0, %v1855_v24  ;;  %v1018_v47 = vmul.f32 1.442695, %v972_v0 }
 0x2e6   : > { %v1857_v27 = vpop.eup %1856  ;;  %1876 = vpow2.f32 %v1048_v22  ;;  %v988_v18 = vsub.f32 0.0, %v949_v44 }
 0x2e7   : > { %v1859_v32 = vpop.eup %1858  ;;  %1878 = vrcp.f32 %v1077_v25  ;;  %v1052_v43 = vmul.f32 1.442695, %v989_v26 }
 0x2e8   : > { %v1861_v41 = vpop.eup %1860  ;;  %1880 = vrcp.f32 %v1074_v20  ;;  %1200 = vperm.xlu0 %1777, %v1859_v32   ;;  %v1050_v48 = vmul.f32 1.442695, %v988_v18 }
 0x2e9   : > { %v1863_v52 = vpop.eup %1862  ;;  %v1079_v4 = vadd.f32 1.0, %v1861_v41  ;;  %1882 = vpow2.f32 %v1046_v30  ;;  %1205 = vperm.xlu1 %1776, %v1857_v27  }
 0x2ea   : > { %v1865_v49 = vpop.eup %1864  ;;  %1884 = vpow2.f32 %v1052_v43  ;;  %v1078_v2 = vadd.f32 1.0, %v1863_v52 }
 0x2eb   : > { %v1867_v1 = vpop.eup %1866  ;;  %1886 = vrcp.f32 %v1079_v4 }
 0x2ec   : > { %v1869_v59 = vpop.eup %1868  ;;  %1888 = vrcp.f32 %v1076_v50  ;;  %v1081_v5 = vadd.f32 1.0, %v1867_v1  ;;  %1185 = vperm.xlu0 %1777, %v1849_v39   ;;  %v1331_v1 = vld [vmem:[%s2489_s4 + $0x8] sm:$0xff] }
 0x2ed   : > { %v1871_v8 = vpop.eup %1870  ;;  %1890 = vpow2.f32 %v1050_v48  ;;  %1215 = vperm.xlu1 %1776, %v1865_v49   ;;  %v1069_v18 = vadd.f32 1.0, %v1869_v59 }
 0x2ee   : > { %v1873_v56 = vpop.eup %1872  ;;  %1892 = vrcp.f32 %v1081_v5  ;;  %v1330_v5 = vld [vmem:[%s2489_s4] sm:$0xff] }
 0x2ef   : > { %v1875_v19 = vpop.eup %1874  ;;  %1894 = vrcp.f32 %v1078_v2  ;;  %v1333_v2 = vld [vmem:[%s2489_s4 + $0x18] sm:$0xff] }
 0x2f0   : > { %v1877_v34 = vpop.eup %1876  ;;  %v1080_v46 = vadd.f32 1.0, %v1875_v19  ;;  %1225 = vperm.xlu0 %1777, %v1871_v8   ;;  %1896 = vpow2.f32 %v1018_v47  ;;  %v1780_v8 = vld [vmem:[%s2488_s3 + $0x4] ss:$8 sps:$4 sm:$0xff]   ;;  %v1332_v47 = vld [vmem:[%s2489_s4 + $0x10] sm:$0xff] }
 0x2f1   : > { %v1879_v53 = vpop.eup %1878  ;;  %v1083_v22 = vadd.f32 1.0, %v1877_v34  ;;  %1210 = vperm.xlu1 %1776, %v1873_v56   ;;  %v1783_v56 = vld [vmem:[%s2488_s3 + $0x14] ss:$8 sps:$4 sm:$0xff]   ;;  %1406 = vmatprep.mubr.bf16.mxu0 %v1780_v8 }
 0x2f2   : > { %v1881_v61 = vpop.eup %1880  ;;  %1414 = vmatprep.mubr.bf16.mxu1 %v1783_v56 }
 0x2f3   : > { %v1883_v20 = vpop.eup %1882  ;;  %1898 = vrcp.f32 %v1083_v22 }
 0x2f4   : > { %v1885_v29 = vpop.eup %1884  ;;  %1900 = vrcp.f32 %v1080_v46  ;;  %v1082_v39 = vadd.f32 1.0, %v1883_v20  ;;  %1235 = vperm.xlu0 %1777, %v1879_v53  }
 0x2f5   : > { %v1887_v24 = vpop.eup %1886  ;;  %v1085_v25 = vadd.f32 1.0, %v1885_v29  ;;  %1220 = vperm.xlu1 %1776, %v1881_v61  }
 0x2f6   : > { %v1889_v30 = vpop.eup %1888 }
 0x2f7   : > { %v1891_v26 = vpop.eup %1890  ;;  %1902 = vrcp.f32 %v1085_v25 }
 0x2f8   : > { %1904 = vrcp.f32 %v1082_v39  ;;  %v1084_v44 = vadd.f32 1.0, %v1891_v26  ;;  %1245 = vperm.xlu0 %1777, %v1887_v24   ;;  %v1893_v27 = vpop.eup %1892 }
 0x2f9   : > { %1230 = vperm.xlu1 %1776, %v1889_v30   ;;  %v1895_v32 = vpop.eup %1894 }
 0x2fa   : > { %v1897_v43 = vpop.eup %1896  ;;  %1906 = vrcp.f32 %v1084_v44 }
 0x2fb   : > { %1908 = vrcp.f32 %v1069_v18  ;;  %v1068_v52 = vadd.f32 1.0, %v1897_v43 }
 0x2fc   : > { %1255 = vperm.xlu0 %1777, %v1893_v27  }
 0x2fd   : > { %v1899_v41 = vpop.eup %1898  ;;  %1240 = vperm.xlu1 %1776, %v1895_v32   ;;  %1910 = vrcp.f32 %v1068_v52 }
 0x2fe   : > { %v1901_v50 = vpop.eup %1900 }
 0x300   : > { %1265 = vperm.xlu0 %1777, %v1899_v41  }
 0x301   : > { %v1903_v0 = vpop.eup %1902  ;;  %1250 = vperm.xlu1 %1776, %v1901_v50  }
 0x302   : > { %v1905_v4 = vpop.eup %1904 }
 0x304   : > { %1275 = vperm.xlu0 %1777, %v1903_v0   ;;  %v1907_v48 = vpop.eup %1906 }
 0x305   : > { %1260 = vperm.xlu1 %1776, %v1905_v4   ;;  %v1909_v49 = vpop.eup %1908 }
 0x307   : > { %v1911_v59 = vpop.eup %1910 }
 0x308   : > { %1195 = vperm.xlu0 %1777, %v1909_v49  }
 0x309   : > { %1270 = vperm.xlu1 %1776, %v1907_v48  }
 0x30c   : > { %1341 = vperm.xlu0 %1777, %v1331_v1  }
 0x30d   : > { %1190 = vperm.xlu1 %1776, %v1911_v59  }
 0x310   : > { %1351 = vperm.xlu0 %1777, %v1333_v2  }
 0x311   : > { %1336 = vperm.xlu1 %1776, %v1330_v5  }
 0x315   : > { %1346 = vperm.xlu1 %1776, %v1332_v47  }
 0x344   : > { %v1126_v19 = vpop.permute.xlu1 %1125 }
 0x345   : > { %v1279_v41 = vmul.f32 %v1126_v19, %v2075_v12 }
 0x348   : > { %v1121_v34 = vpop.permute.xlu1 %1120 }
 0x349   : > { %v1278_v27 = vmul.f32 %v1121_v34, %v2050_v55 }
 0x34b   : > { %v1310_v0 = vpack.c.bf16 %v1279_v41, %v1278_v27 }
 0x34c   : > { %v1136_v46 = vpop.permute.xlu1 %1135  ;;  %v1146_v22 = vpop.permute.xlu0 %1145 }
 0x350   : > { %v1131_v53 = vpop.permute.xlu1 %1130  ;;  %v1156_v20 = vpop.permute.xlu0 %1155 }
 0x351   : > { %v1280_v49 = vmul.f32 %v1131_v53, %v2093_v60  ;;  %v1283_v60 = vmul.f32 %v1146_v22, %v2145_v57 }
 0x354   : > { %v1141_v61 = vpop.permute.xlu1 %1140  ;;  %v1166_v24 = vpop.permute.xlu0 %1165 }
 0x355   : > { %v1282_v5 = vmul.f32 %v1141_v61, %v2141_v51 }
 0x357   : > { %v1312_v19 = vpack.c.bf16 %v1283_v60, %v1282_v5 }
 0x358   : > { %v1151_v29 = vpop.permute.xlu1 %1150  ;;  %v2427_v30 = vpop.permute.xlu0 %1175 }
 0x35c   : > { %v1161_v39 = vpop.permute.xlu1 %1160 }
 0x35d   : > { %v1286_v22 = vmul.f32 %v1161_v39, %v2189_v63 }
 0x360   : > { %v1171_v25 = vpop.permute.xlu1 %1170 }
 0x364   : > { %v2429_v26 = vpop.permute.xlu1 %1180 }
 0x367   : > { %v1201_v44 = vpop.permute.xlu0 %1200 }
 0x368   : > { %v1206_v18 = vpop.permute.xlu1 %1205  ;;  %v1294_v32 = vmul.f32 %v1201_v44, %v2048_v54 }
 0x369   : > { %v1295_v43 = vmul.f32 %v1206_v18, %v2073_v9  ;;  %v1281_v9 = vmul.f32 %v1136_v46, %v2103_v3  ;;  %v1284_v3 = vmul.f32 %v1151_v29, %v2163_v15  ;;  %v1288_v29 = vmul.f32 %v1171_v25, %v2211_v13 }
 0x36b   : > { %v1318_v50 = vpack.c.bf16 %v1295_v43, %v1294_v32  ;;  %v2435_v52 = vpop.permute.xlu0 %1185  ;;  %v1311_v2 = vpack.c.bf16 %v1281_v9, %v1280_v49 }
 0x36c   : > { %v1216_v4 = vpop.permute.xlu1 %1215  ;;  %v1291_v39 = vmul.f32 %v2435_v52, %v2237_v37 }
 0x36d   : > { %1635 = vmatprep.subr.bf16.mxu0 %v1318_v50  ;;  %1751 = vmatprep.subr.bf16.mxu1 %v1318_v50  ;;  %v1297_v1 = vmul.f32 %v1216_v4, %v2101_v62 }
 0x36e   : > { %1636 = vmatpush3.bf16.msra.mxu0 %v1310_v0  ;;  %1759 = vmatpush3.bf16.msra.mxu1 %v1310_v0 }
 0x36f   : > { %v1226_v48 = vpop.permute.xlu0 %1225 }
 0x370   : > { %v1211_v55 = vpop.permute.xlu1 %1210  ;;  %v1299_v47 = vmul.f32 %v1226_v48, %v2121_v36 }
 0x371   : > { %v1296_v54 = vmul.f32 %v1211_v55, %v2089_v40 }
 0x373   : > { %v1319_v12 = vpack.c.bf16 %v1297_v1, %v1296_v54  ;;  %v1236_v59 = vpop.permute.xlu0 %1235 }
 0x374   : > { %v1221_v8 = vpop.permute.xlu1 %1220  ;;  %v1301_v46 = vmul.f32 %v1236_v59, %v2161_v6 }
 0x375   : > { %v1298_v56 = vmul.f32 %v1221_v8, %v2107_v16  ;;  %1637 = vmatprep.subr.bf16.mxu0 %v1319_v12  ;;  %1752 = vmatprep.subr.bf16.mxu1 %v1319_v12  ;;  %v1285_v16 = vmul.f32 %v1156_v20, %v2169_v28 }
 0x376   : > { %1638 = vmatpush3.bf16.msra.mxu0 %v1311_v2  ;;  %1760 = vmatpush3.bf16.msra.mxu1 %v1311_v2 }
 0x377   : > { %v1320_v62 = vpack.c.bf16 %v1299_v47, %v1298_v56  ;;  %v1246_v40 = vpop.permute.xlu0 %1245  ;;  %v1313_v53 = vpack.c.bf16 %v1285_v16, %v1284_v3 }
 0x378   : > { %v1231_v34 = vpop.permute.xlu1 %1230  ;;  %v1303_v44 = vmul.f32 %v1246_v40, %v2175_v35 }
 0x379   : > { %v1300_v51 = vmul.f32 %v1231_v34, %v2159_v17  ;;  %1639 = vmatprep.subr.bf16.mxu0 %v1320_v62  ;;  %1753 = vmatprep.subr.bf16.mxu1 %v1320_v62  ;;  %v1287_v17 = vmul.f32 %v1166_v24, %v2193_v45 }
 0x37a   : > { %1640 = vmatpush3.bf16.msra.mxu0 %v1312_v19  ;;  %1761 = vmatpush3.bf16.msra.mxu1 %v1312_v19 }
 0x37b   : > { %v1321_v36 = vpack.c.bf16 %v1301_v46, %v1300_v51  ;;  %v1256_v57 = vpop.permute.xlu0 %1255  ;;  %v1314_v20 = vpack.c.bf16 %v1287_v17, %v1286_v22 }
 0x37c   : > { %v1241_v61 = vpop.permute.xlu1 %1240  ;;  %v1305_v18 = vmul.f32 %v1256_v57, %v2209_v7 }
 0x37d   : > { %v1302_v15 = vmul.f32 %v1241_v61, %v2171_v33  ;;  %1641 = vmatprep.subr.bf16.mxu0 %v1321_v36  ;;  %1754 = vmatprep.subr.bf16.mxu1 %v1321_v36  ;;  %v1289_v33 = vmul.f32 %v2427_v30, %v2213_v14 }
 0x37e   : > { %1642 = vmatpush3.bf16.msra.mxu0 %v1313_v53  ;;  %1762 = vmatpush3.bf16.msra.mxu1 %v1313_v53 }
 0x37f   : > { %v1322_v6 = vpack.c.bf16 %v1303_v44, %v1302_v15  ;;  %v1266_v28 = vpop.permute.xlu0 %1265  ;;  %v1315_v45 = vpack.c.bf16 %v1289_v33, %v1288_v29 }
 0x380   : > { %v1251_v27 = vpop.permute.xlu1 %1250  ;;  %v1307_v13 = vmul.f32 %v1266_v28, %v2225_v11 }
 0x381   : > { %v1304_v63 = vmul.f32 %v1251_v27, %v2207_v23  ;;  %1643 = vmatprep.subr.bf16.mxu0 %v1322_v6  ;;  %1755 = vmatprep.subr.bf16.mxu1 %v1322_v6  ;;  %v1290_v23 = vmul.f32 %v2429_v26, %v2235_v31 }
 0x382   : > { %1644 = vmatpush3.bf16.msra.mxu0 %v1314_v20  ;;  %1763 = vmatpush3.bf16.msra.mxu1 %v1314_v20 }
 0x383   : > { %v1323_v35 = vpack.c.bf16 %v1305_v18, %v1304_v63  ;;  %v1276_v24 = vpop.permute.xlu0 %1275  ;;  %v1316_v25 = vpack.c.bf16 %v1291_v39, %v1290_v23 }
 0x384   : > { %v1261_v32 = vpop.permute.xlu1 %1260  ;;  %v1309_v43 = vmul.f32 %v1276_v24, %v2249_v21  ;;  %v1778_v21 = vld [vmem:[%s2488_s3] ss:$8 sps:$4 sm:$0xff]  }
 0x385   : > { %v1306_v7 = vmul.f32 %v1261_v32, %v2223_v10  ;;  %1645 = vmatprep.subr.bf16.mxu0 %v1323_v35  ;;  %1756 = vmatprep.subr.bf16.mxu1 %v1323_v35 }
 0x386   : > { %1646 = vmatpush3.bf16.msra.mxu0 %v1315_v45  ;;  %1764 = vmatpush3.bf16.msra.mxu1 %v1315_v45 }
 0x387   : > { %v1324_v14 = vpack.c.bf16 %v1307_v13, %v1306_v7  ;;  %v1196_v41 = vpop.permute.xlu0 %1195 }
 0x388   : > { %v1271_v30 = vpop.permute.xlu1 %1270  ;;  %v1293_v50 = vmul.f32 %v1196_v41, %v2257_v38 }
 0x389   : > { %v1308_v37 = vmul.f32 %v1271_v30, %v2247_v42  ;;  %1647 = vmatprep.subr.bf16.mxu0 %v1324_v14  ;;  %1757 = vmatprep.subr.bf16.mxu1 %v1324_v14  ;;  %v1781_v42 = vld [vmem:[%s2488_s3 + $0x10] ss:$8 sps:$4 sm:$0xff]  }
 0x38a   : > { %1648 = vmatpush3.bf16.msra.mxu0 %v1316_v25  ;;  %1765 = vmatpush3.bf16.msra.mxu1 %v1316_v25 }
 0x38b   : > { %v1325_v10 = vpack.c.bf16 %v1309_v43, %v1308_v37  ;;  %v1342_v38 = vpop.permute.xlu0 %1341 }
 0x38c   : > { %v1191_v11 = vpop.permute.xlu1 %1190 }
 0x38d   : > { %v1292_v31 = vmul.f32 %v1191_v11, %v2255_v58  ;;  %1649 = vmatprep.subr.bf16.mxu0 %v1325_v10  ;;  %1758 = vmatprep.subr.bf16.mxu1 %v1325_v10 }
 0x38f   : > { %v1317_v26 = vpack.c.bf16 %v1293_v50, %v1292_v31  ;;  %v1352_v56 = vpop.permute.xlu0 %1351 }
 0x390   : > { %v1337_v52 = vpop.permute.xlu1 %1336 }
 0x391   : > { %1650 = vmatpush3.bf16.msra.mxu0 %v1317_v26  ;;  %1766 = vmatpush3.bf16.msra.mxu1 %v1317_v26 }
 0x394   : > { %1407 = vmatmul.mubr.bf16.vlgmr.msra.gmra.mrb[4].mxu0 %v1778_v21  ;;  %1415 = vmatmul.mubr.bf16.vlgmr.msra.gmra.mrb[32].mxu1 %v1781_v42  ;;  %v1347_v0 = vpop.permute.xlu1 %1346 }
 0x467   : > { %v1651_v58 = vpop.f32.mrb[4].mxu0  ;;  %v1657_v4 = vpop.f32.mrb[32].mxu1 }
 0x468   : > { %v1652_v48 = vpop.f32.mrb[5].mxu0  ;;  %v1658_v49 = vpop.f32.mrb[33].mxu1 }
 0x469   : > { %v1653_v55 = vadd.f32 %v1652_v48, %v1651_v58  ;;  %v1659_v1 = vadd.f32 %v1658_v49, %v1657_v4  ;;  %v1654_v54 = vpop.f32.mrb[6].mxu0  ;;  %v1660_v9 = vpop.f32.mrb[34].mxu1 }
 0x46a   : > { %v1655_v12 = vpop.f32.mrb[7].mxu0  ;;  %v1661_v59 = vpop.f32.mrb[35].mxu1 }
 0x46b   : > { %v1409_v2 = vadd.f32 %v1653_v55, %v1337_v52  ;;  %v1417_v5 = vadd.f32 %v1659_v1, %v1347_v0  ;;  %v1656_v8 = vadd.f32 %v1655_v12, %v1654_v54  ;;  %v1662_v47 = vadd.f32 %v1661_v59, %v1660_v9 }
 0x46d   : > { %v1423_v60 = vmax.f32 %v1409_v2, 0.0  ;;  %v1425_v62 = vmax.f32 %v1417_v5, 0.0  ;;  %v1412_v40 = vadd.f32 %v1656_v8, %v1342_v38  ;;  %v1420_v19 = vadd.f32 %v1662_v47, %v1352_v56 }
 0x46f   : > { %1427 = vst.msk [vmem:[%s224_s23] sm:$0xff] %vm393_vm0, %v1423_v60  ;;  %1429 = vst.msk [vmem:[%s224_s23 + $0x10] sm:$0xff] %vm393_vm0, %v1425_v62  ;;  %v1424_v3 = vmax.f32 %v1412_v40, 0.0  ;;  %v1426_v34 = vmax.f32 %v1420_v19, 0.0 }
 0x471   : > { %1428 = vst.msk [vmem:[%s224_s23 + $0x8] sm:$0xff] %vm393_vm0, %v1424_v3  ;;  %1430 = vst.msk [vmem:[%s224_s23 + $0x18] sm:$0xff] %vm393_vm0, %v1426_v34 }
 0x472 PF: > { %s15_s18 = sadd.s32 1, %s1918_s18  }
 0x473   : > { %p12_p4 = scmp.ge.s32.totalorder %s15_s18, 4  }
 0x475   :  { %14 = sbr.rel (!%p12_p4) target bundleno = 1 (0x1), region = 77 }

// kernel: forward.10
= control target key start
LH: loop header
LB: loop body
LE: loop exit
PB: predicated region body
PF: predicated region fallthrough
CT: control target
= control target key end

     0   :  { %s517_s9 = smov 0   ;;  %s604_s0 = inlined_call_operand.vmem [shape: bf16[128,32], index: 0, kind: input, shape index: {}]   ;;  %s605_s1 = inlined_call_operand.vmem [shape: bf16[2,32,64], index: 1, kind: input, shape index: {}]   ;;  %s606_s2 = inlined_call_operand.vmem [shape: f32[2,128,64], index: 2, kind: output, shape index: {}]  }
   0x1 LB: > { %s411_s10 = sadd.s32 4294967295, %s500_s9   ;;  %p415_p0 = scmp.ge.s32.totalorder %s500_s9, 1  ;;  %s500_s9 = sphi %s517_s9, %s12_s9  }
   0x2   : > { %p112_p1 = scmp.lt.s32.totalorder %s500_s9, 3 }
   0x4   : > { %p113_p2 = pnand %p415_p0, %p112_p1 }
   0x5   : > { %p134_p3 = scmp.lt.s32.totalorder (!%p113_p2), %s411_s10, 1  ;;  %v486_v0 = vld [vmem:[%s604_s0] sm:$0xff] (!%p113_p2)   ;;  %vm217_vm0 = vcmask (!%p113_p2), 261120   ;;  %v488_v4 = vld [vmem:[%s604_s0 + $0x8] sm:$0xff] (!%p113_p2)   ;;  %v490_v6 = vld [vmem:[%s604_s0 + $0x10] sm:$0xff] (!%p113_p2)   ;;  %vm339_vm1 = vcmask (!%p113_p2), 523264  }
   0x6   : > { %116 = sbr.rel (%p113_p2) target bundleno = 249 (0xf9), region = 28  ;;  %v487_v1 = vld [vmem:[%s604_s0 + $0x20] sm:$0xff] (!%p113_p2)   ;;  %456 = vmatprep.mubr.msk.bf16.mxu0 (!%p113_p2), %vm217_vm0, %v486_v0  ;;  %v489_v5 = vld [vmem:[%s604_s0 + $0x28] sm:$0xff] (!%p113_p2)   ;;  %v491_v7 = vld [vmem:[%s604_s0 + $0x30] sm:$0xff] (!%p113_p2)  }
   0x7   : > { %464 = vmatprep.mubr.msk.bf16.mxu1 (!%p113_p2), %vm217_vm0, %v487_v1  ;;  %v492_v8 = vld [vmem:[%s604_s0 + $0x18] sm:$0xff] (!%p113_p2)  }
   0x8   : > { %v493_v9 = vld [vmem:[%s604_s0 + $0x38] sm:$0xff] (!%p113_p2)  }
   0xd   : > { %s608_s10 = smov (!%p134_p3, %s411_s10), 1 }
   0xe   : > { %s440_s15 = sshll.u32 %s608_s10, 4  ;;  %s441_s3 = sshll.u32 %s608_s10, 7 }
   0xf   : > { %s138_s18 = scalar_lea.vmem %s605_s1, %s440_s15  ;;  %s567_s6 = scalar_lea.vmem %s606_s2, %s441_s3 }
  0x10   : > { %v484_v2 = vld [vmem:[%s138_s18] sm:$0xff]   ;;  %v485_v3 = vld [vmem:[%s138_s18 + $0x8] sm:$0xff]  }
  0x11   : > { %452 = vmatprep.subr.bf16.mxu0 %v484_v2  ;;  %472 = vmatprep.subr.bf16.mxu1 %v484_v2 }
  0x12   : > { %453 = vmatpush3.bf16.msra.mxu0 %v484_v2  ;;  %474 = vmatpush3.bf16.msra.mxu1 %v484_v2 }
  0x13   : > { %454 = vmatprep.subr.bf16.mxu0 %v485_v3  ;;  %473 = vmatprep.subr.bf16.mxu1 %v485_v3 }
  0x16   : > { %455 = vmatpush3.bf16.msra.mxu0 %v485_v3  ;;  %475 = vmatpush3.bf16.msra.mxu1 %v485_v3 }
  0x19   : > { %457 = vmatmul.mubr.msk.bf16.vlgmr.msra.gmra.mrb[0].mxu0 %vm217_vm0, %v488_v4  ;;  %465 = vmatmul.mubr.msk.bf16.vlgmr.msra.gmra.mrb[0].mxu1 %vm217_vm0, %v489_v5 }
  0x1a   : > { %460 = vmatprep.mubr.msk.bf16.mxu0 %vm217_vm0, %v490_v6  ;;  %468 = vmatprep.mubr.msk.bf16.mxu1 %vm217_vm0, %v491_v7 }
  0x21   : > { %461 = vmatmul.mubr.msk.bf16.gmra.mrb[4].mxu0 %vm217_vm0, %v492_v8  ;;  %469 = vmatmul.mubr.msk.bf16.gmra.mrb[4].mxu1 %vm217_vm0, %v493_v9 }
  0xec   : > { %v458_v10 = vpop.f32.mrb[0].mxu0  ;;  %v466_v11 = vpop.f32.mrb[0].mxu1 }
  0xed   : > { %342 = vst.msk [vmem:[%s567_s6 + $0x10] sm:$0xff] %vm339_vm1, %v458_v10  ;;  %350 = vst.msk [vmem:[%s567_s6 + $0x50] sm:$0xff] %vm339_vm1, %v466_v11  ;;  %v276_v12 = vpop.f32.mrb[1].mxu0  ;;  %v308_v13 = vpop.f32.mrb[1].mxu1 }
  0xee   : > { %340 = vst.msk [vmem:[%s567_s6] sm:$0xff] %vm339_vm1, %v276_v12  ;;  %348 = vst.msk [vmem:[%s567_s6 + $0x40] sm:$0xff] %vm339_vm1, %v308_v13  ;;  %v459_v14 = vpop.f32.mrb[2].mxu0  ;;  %v467_v15 = vpop.f32.mrb[2].mxu1 }
  0xef   : > { %343 = vst.msk [vmem:[%s567_s6 + $0x18] sm:$0xff] %vm339_vm1, %v459_v14  ;;  %351 = vst.msk [vmem:[%s567_s6 + $0x58] sm:$0xff] %vm339_vm1, %v467_v15  ;;  %v279_v16 = vpop.f32.mrb[3].mxu0  ;;  %v311_v17 = vpop.f32.mrb[3].mxu1 }
  0xf0   : > { %341 = vst.msk [vmem:[%s567_s6 + $0x8] sm:$0xff] %vm339_vm1, %v279_v16  ;;  %349 = vst.msk [vmem:[%s567_s6 + $0x48] sm:$0xff] %vm339_vm1, %v311_v17 }
  0xf4   : > { %v462_v18 = vpop.f32.mrb[4].mxu0  ;;  %v470_v19 = vpop.f32.mrb[4].mxu1 }
  0xf5   : > { %346 = vst.msk [vmem:[%s567_s6 + $0x30] sm:$0xff] %vm339_vm1, %v462_v18  ;;  %354 = vst.msk [vmem:[%s567_s6 + $0x70] sm:$0xff] %vm339_vm1, %v470_v19  ;;  %v292_v20 = vpop.f32.mrb[5].mxu0  ;;  %v324_v21 = vpop.f32.mrb[5].mxu1 }
  0xf6   : > { %344 = vst.msk [vmem:[%s567_s6 + $0x20] sm:$0xff] %vm339_vm1, %v292_v20  ;;  %352 = vst.msk [vmem:[%s567_s6 + $0x60] sm:$0xff] %vm339_vm1, %v324_v21  ;;  %v463_v22 = vpop.f32.mrb[6].mxu0  ;;  %v471_v23 = vpop.f32.mrb[6].mxu1 }
  0xf7   : > { %347 = vst.msk [vmem:[%s567_s6 + $0x38] sm:$0xff] %vm339_vm1, %v463_v22  ;;  %355 = vst.msk [vmem:[%s567_s6 + $0x78] sm:$0xff] %vm339_vm1, %v471_v23  ;;  %v295_v24 = vpop.f32.mrb[7].mxu0  ;;  %v327_v25 = vpop.f32.mrb[7].mxu1 }
  0xf8   : > { %345 = vst.msk [vmem:[%s567_s6 + $0x28] sm:$0xff] %vm339_vm1, %v295_v24  ;;  %353 = vst.msk [vmem:[%s567_s6 + $0x68] sm:$0xff] %vm339_vm1, %v327_v25 }
  0xf9 PF: > { %s12_s9 = sadd.s32 1, %s500_s9  }
  0xfa   : > { %p9_p4 = scmp.ge.s32.totalorder %s12_s9, 4  }
  0xfc   :  { %11 = sbr.rel (!%p9_p4) target bundleno = 1 (0x1), region = 58 }

// kernel: forward.11
= control target key start
LH: loop header
LB: loop body
LE: loop exit
PB: predicated region body
PF: predicated region fallthrough
CT: control target
= control target key end

     0   :  { %s3382_s27 = smov 0   ;;  %s3714_s0 = inlined_call_operand.vmem [shape: bf16[2,512,512], index: 0, kind: input, shape index: {}]   ;;  %s3715_s1 = inlined_call_operand.vmem [shape: bf16[2,512,512], index: 1, kind: input, shape index: {}]   ;;  %s3716_s2 = inlined_call_operand.vmem [shape: bf16[16,512], index: 2, kind: input, shape index: {}]   ;;  %s3717_s3 = inlined_call_operand.vmem [shape: bf16[16,512], index: 3, kind: input, shape index: {}]   ;;  %s3718_s4 = inlined_call_operand.vmem [shape: f32[16,1], index: 4, kind: input, shape index: {}]   ;;  %s3719_s5 = inlined_call_operand.vmem [shape: f32[16,1], index: 5, kind: input, shape index: {}]   ;;  %s3720_s6 = inlined_call_operand.vmem [shape: f32[3,16], index: 6, kind: input, shape index: {}]   ;;  %s3721_s7 = inlined_call_operand.vmem [shape: f32[3,1], index: 7, kind: input, shape index: {}]   ;;  %s3722_s8 = inlined_call_operand.vmem [shape: f32[2,3,512], index: 8, kind: output, shape index: {}]  }
   0x1 LB: > { %s2601_s28 = sadd.s32 4294967295, %s3333_s27   ;;  %p2605_p0 = scmp.ge.s32.totalorder %s3333_s27, 1  ;;  %s3333_s27 = sphi %s3382_s27, %s18_s27  }
   0x2   : > { %p272_p1 = scmp.lt.s32.totalorder %s3333_s27, 3 }
   0x4   : > { %p273_p2 = pnand %p2605_p0, %p272_p1 }
   0x5   : > { %p311_p3 = scmp.lt.s32.totalorder (!%p273_p2), %s2601_s28, 1  ;;  %v3025_v0 = vld [vmem:[%s3717_s3 + $0x4] ss:$16 sps:$4 sm:$0xff] (!%p273_p2)   ;;  %vm2378_vm8 = vcmask (!%p273_p2), 130048  }
   0x6   : > { %276 = sbr.rel (%p273_p2) target bundleno = 1042 (0x412), region = 52  ;;  %1282 = vmatprep.mubr.bf16.mxu0 (!%p273_p2), %v3025_v0  ;;  %1368 = vmatprep.mubr.bf16.mxu1 (!%p273_p2), %v3025_v0 }
   0xd   : > { %s3724_s28 = smov (!%p311_p3, %s2601_s28), 1 }
   0xe   : > { %s2880_s9 = sshll.u32 %s3724_s28, 10  ;;  %s2882_s22 = sshll.u32 %s3724_s28, 4 }
   0xf   : > { %s3401_s12 = scalar_lea.vmem %s3715_s1, %s2880_s9  ;;  %s3499_s17 = scalar_lea.vmem %s3714_s0, %s2880_s9 }
  0x10   : > { %v2927_v1 = vld [vmem:[%s3401_s12 + $0x4] ss:$16 sps:$4 sm:$0xff]   ;;  %v2929_v2 = vld [vmem:[%s3401_s12 + $0xc] ss:$16 sps:$4 sm:$0xff]   ;;  %v2931_v3 = vld [vmem:[%s3401_s12] ss:$16 sps:$4 sm:$0xff]   ;;  %s325_s25 = scalar_lea.vmem %s3722_s8, %s2882_s22 }
  0x11   : > { %1250 = vmatprep.subr.bf16.mxu0 %v2927_v1  ;;  %v2932_v4 = vld [vmem:[%s3401_s12 + $0x8] ss:$16 sps:$4 sm:$0xff]   ;;  %1336 = vmatprep.subr.bf16.mxu1 %v2929_v2  ;;  %v2933_v5 = vld [vmem:[%s3401_s12 + $0x24] ss:$16 sps:$4 sm:$0xff]   ;;  %v2935_v6 = vld [vmem:[%s3401_s12 + $0x2c] ss:$16 sps:$4 sm:$0xff]  }
  0x12   : > { %1251 = vmatpush1.bf16.msra.mxu0 %v2931_v3  ;;  %1337 = vmatpush1.bf16.msra.mxu1 %v2932_v4  ;;  %v2937_v7 = vld [vmem:[%s3401_s12 + $0x20] ss:$16 sps:$4 sm:$0xff]   ;;  %v2938_v8 = vld [vmem:[%s3401_s12 + $0x28] ss:$16 sps:$4 sm:$0xff]   ;;  %v2939_v9 = vld [vmem:[%s3401_s12 + $0x44] ss:$16 sps:$4 sm:$0xff]  }
  0x13   : > { %1252 = vmatprep.subr.bf16.mxu0 %v2933_v5  ;;  %1338 = vmatprep.subr.bf16.mxu1 %v2935_v6  ;;  %v2941_v10 = vld [vmem:[%s3401_s12 + $0x4c] ss:$16 sps:$4 sm:$0xff]   ;;  %v2943_v11 = vld [vmem:[%s3401_s12 + $0x40] ss:$16 sps:$4 sm:$0xff]   ;;  %v2944_v12 = vld [vmem:[%s3401_s12 + $0x48] ss:$16 sps:$4 sm:$0xff]  }
  0x14   : > { %v2945_v13 = vld [vmem:[%s3401_s12 + $0x64] ss:$16 sps:$4 sm:$0xff]   ;;  %v2947_v14 = vld [vmem:[%s3401_s12 + $0x6c] ss:$16 sps:$4 sm:$0xff]   ;;  %v2949_v15 = vld [vmem:[%s3401_s12 + $0x60] ss:$16 sps:$4 sm:$0xff]  }
  0x15   : > { %v2950_v16 = vld [vmem:[%s3401_s12 + $0x68] ss:$16 sps:$4 sm:$0xff]   ;;  %v2951_v17 = vld [vmem:[%s3401_s12 + $0x84] ss:$16 sps:$4 sm:$0xff]   ;;  %v2953_v18 = vld [vmem:[%s3401_s12 + $0x8c] ss:$16 sps:$4 sm:$0xff]  }
  0x16   : > { %1253 = vmatpush1.bf16.msra.mxu0 %v2937_v7  ;;  %1339 = vmatpush1.bf16.msra.mxu1 %v2938_v8  ;;  %v2955_v19 = vld [vmem:[%s3401_s12 + $0x80] ss:$16 sps:$4 sm:$0xff]   ;;  %v2956_v20 = vld [vmem:[%s3401_s12 + $0x88] ss:$16 sps:$4 sm:$0xff]   ;;  %v2957_v21 = vld [vmem:[%s3401_s12 + $0xa4] ss:$16 sps:$4 sm:$0xff]  }
  0x17   : > { %1254 = vmatprep.subr.bf16.mxu0 %v2939_v9  ;;  %1340 = vmatprep.subr.bf16.mxu1 %v2941_v10  ;;  %v2959_v22 = vld [vmem:[%s3401_s12 + $0xac] ss:$16 sps:$4 sm:$0xff]   ;;  %v2961_v23 = vld [vmem:[%s3401_s12 + $0xa0] ss:$16 sps:$4 sm:$0xff]   ;;  %v2962_v24 = vld [vmem:[%s3401_s12 + $0xa8] ss:$16 sps:$4 sm:$0xff]  }
  0x18   : > { %v2963_v25 = vld [vmem:[%s3401_s12 + $0xc4] ss:$16 sps:$4 sm:$0xff]   ;;  %v2965_v26 = vld [vmem:[%s3401_s12 + $0xcc] ss:$16 sps:$4 sm:$0xff]   ;;  %v2967_v27 = vld [vmem:[%s3401_s12 + $0xc0] ss:$16 sps:$4 sm:$0xff]  }
  0x19   : > { %v2968_v28 = vld [vmem:[%s3401_s12 + $0xc8] ss:$16 sps:$4 sm:$0xff]   ;;  %v2969_v29 = vld [vmem:[%s3401_s12 + $0xe4] ss:$16 sps:$4 sm:$0xff]   ;;  %v2971_v30 = vld [vmem:[%s3401_s12 + $0xec] ss:$16 sps:$4 sm:$0xff]  }
  0x1a   : > { %1255 = vmatpush1.bf16.msra.mxu0 %v2943_v11  ;;  %1341 = vmatpush1.bf16.msra.mxu1 %v2944_v12  ;;  %v2973_v31 = vld [vmem:[%s3401_s12 + $0xe0] ss:$16 sps:$4 sm:$0xff]   ;;  %v2974_v32 = vld [vmem:[%s3401_s12 + $0xe8] ss:$16 sps:$4 sm:$0xff]   ;;  %v2975_v33 = vld [vmem:[%s3401_s12 + $0x104] ss:$16 sps:$4 sm:$0xff]  }
  0x1b   : > { %1256 = vmatprep.subr.bf16.mxu0 %v2945_v13  ;;  %1342 = vmatprep.subr.bf16.mxu1 %v2947_v14  ;;  %v2977_v34 = vld [vmem:[%s3401_s12 + $0x10c] ss:$16 sps:$4 sm:$0xff]   ;;  %v2979_v35 = vld [vmem:[%s3401_s12 + $0x100] ss:$16 sps:$4 sm:$0xff]   ;;  %v2980_v36 = vld [vmem:[%s3401_s12 + $0x108] ss:$16 sps:$4 sm:$0xff]  }
  0x1c   : > { %v2981_v37 = vld [vmem:[%s3401_s12 + $0x124] ss:$16 sps:$4 sm:$0xff]   ;;  %v2983_v38 = vld [vmem:[%s3401_s12 + $0x12c] ss:$16 sps:$4 sm:$0xff]   ;;  %v2985_v39 = vld [vmem:[%s3401_s12 + $0x120] ss:$16 sps:$4 sm:$0xff]  }
  0x1d   : > { %v2986_v40 = vld [vmem:[%s3401_s12 + $0x128] ss:$16 sps:$4 sm:$0xff]   ;;  %v2987_v41 = vld [vmem:[%s3401_s12 + $0x144] ss:$16 sps:$4 sm:$0xff]   ;;  %v2989_v42 = vld [vmem:[%s3401_s12 + $0x14c] ss:$16 sps:$4 sm:$0xff]  }
  0x1e   : > { %1257 = vmatpush1.bf16.msra.mxu0 %v2949_v15  ;;  %1343 = vmatpush1.bf16.msra.mxu1 %v2950_v16  ;;  %v2991_v43 = vld [vmem:[%s3401_s12 + $0x140] ss:$16 sps:$4 sm:$0xff]   ;;  %v2992_v44 = vld [vmem:[%s3401_s12 + $0x148] ss:$16 sps:$4 sm:$0xff]   ;;  %v2993_v45 = vld [vmem:[%s3401_s12 + $0x164] ss:$16 sps:$4 sm:$0xff]  }
  0x1f   : > { %1258 = vmatprep.subr.bf16.mxu0 %v2951_v17  ;;  %1344 = vmatprep.subr.bf16.mxu1 %v2953_v18  ;;  %v2995_v46 = vld [vmem:[%s3401_s12 + $0x16c] ss:$16 sps:$4 sm:$0xff]   ;;  %v2997_v47 = vld [vmem:[%s3401_s12 + $0x160] ss:$16 sps:$4 sm:$0xff]   ;;  %v2998_v48 = vld [vmem:[%s3401_s12 + $0x168] ss:$16 sps:$4 sm:$0xff]  }
  0x20   : > { %v2999_v49 = vld [vmem:[%s3401_s12 + $0x184] ss:$16 sps:$4 sm:$0xff]   ;;  %v3001_v50 = vld [vmem:[%s3401_s12 + $0x18c] ss:$16 sps:$4 sm:$0xff]   ;;  %v3003_v51 = vld [vmem:[%s3401_s12 + $0x180] ss:$16 sps:$4 sm:$0xff]  }
  0x21   : > { %v3004_v52 = vld [vmem:[%s3401_s12 + $0x188] ss:$16 sps:$4 sm:$0xff]   ;;  %v3005_v53 = vld [vmem:[%s3401_s12 + $0x1a4] ss:$16 sps:$4 sm:$0xff]   ;;  %v3007_v54 = vld [vmem:[%s3401_s12 + $0x1ac] ss:$16 sps:$4 sm:$0xff]  }
  0x22   : > { %1259 = vmatpush1.bf16.msra.mxu0 %v2955_v19  ;;  %1345 = vmatpush1.bf16.msra.mxu1 %v2956_v20  ;;  %v3009_v55 = vld [vmem:[%s3401_s12 + $0x1a0] ss:$16 sps:$4 sm:$0xff]   ;;  %v3010_v56 = vld [vmem:[%s3401_s12 + $0x1a8] ss:$16 sps:$4 sm:$0xff]   ;;  %v3011_v57 = vld [vmem:[%s3401_s12 + $0x1c4] ss:$16 sps:$4 sm:$0xff]  }
  0x23   : > { %1260 = vmatprep.subr.bf16.mxu0 %v2957_v21  ;;  %1346 = vmatprep.subr.bf16.mxu1 %v2959_v22  ;;  %v3013_v58 = vld [vmem:[%s3401_s12 + $0x1cc] ss:$16 sps:$4 sm:$0xff]   ;;  %v3015_v59 = vld [vmem:[%s3401_s12 + $0x1c0] ss:$16 sps:$4 sm:$0xff]   ;;  %v3016_v60 = vld [vmem:[%s3401_s12 + $0x1c8] ss:$16 sps:$4 sm:$0xff]  }
  0x24   : > { %v3017_v61 = vld [vmem:[%s3401_s12 + $0x1e4] ss:$16 sps:$4 sm:$0xff]   ;;  %v3019_v62 = vld [vmem:[%s3401_s12 + $0x1ec] ss:$16 sps:$4 sm:$0xff]   ;;  %v3021_v63 = vld [vmem:[%s3401_s12 + $0x1e0] ss:$16 sps:$4 sm:$0xff]  }
  0x25   : > { %v3022_v0 = vld [vmem:[%s3401_s12 + $0x1e8] ss:$16 sps:$4 sm:$0xff]   ;;  %v3028_v1 = vld [vmem:[%s3401_s12 + $0x204] ss:$16 sps:$4 sm:$0xff]   ;;  %v3031_v2 = vld [vmem:[%s3401_s12 + $0x20c] ss:$16 sps:$4 sm:$0xff]  }
  0x26   : > { %1261 = vmatpush1.bf16.msra.mxu0 %v2961_v23  ;;  %1347 = vmatpush1.bf16.msra.mxu1 %v2962_v24  ;;  %v3023_v3 = vld [vmem:[%s3717_s3] ss:$16 sps:$4 sm:$0xff]   ;;  %v3029_v5 = vld [vmem:[%s3401_s12 + $0x208] ss:$16 sps:$4 sm:$0xff]   ;;  %v3034_v6 = vld [vmem:[%s3401_s12 + $0x224] ss:$16 sps:$4 sm:$0xff]  }
  0x27   : > { %1262 = vmatprep.subr.bf16.mxu0 %v2963_v25  ;;  %1348 = vmatprep.subr.bf16.mxu1 %v2965_v26  ;;  %v3026_v4 = vld [vmem:[%s3401_s12 + $0x200] ss:$16 sps:$4 sm:$0xff]   ;;  %v3037_v7 = vld [vmem:[%s3401_s12 + $0x22c] ss:$16 sps:$4 sm:$0xff]   ;;  %v3035_v9 = vld [vmem:[%s3401_s12 + $0x228] ss:$16 sps:$4 sm:$0xff]  }
  0x28   : > { %v3032_v8 = vld [vmem:[%s3401_s12 + $0x220] ss:$16 sps:$4 sm:$0xff]   ;;  %v3040_v10 = vld [vmem:[%s3401_s12 + $0x244] ss:$16 sps:$4 sm:$0xff]   ;;  %v3043_v11 = vld [vmem:[%s3401_s12 + $0x24c] ss:$16 sps:$4 sm:$0xff]  }
  0x29   : > { %v3038_v12 = vld [vmem:[%s3401_s12 + $0x240] ss:$16 sps:$4 sm:$0xff]   ;;  %v3041_v13 = vld [vmem:[%s3401_s12 + $0x248] ss:$16 sps:$4 sm:$0xff]   ;;  %v3046_v14 = vld [vmem:[%s3401_s12 + $0x264] ss:$16 sps:$4 sm:$0xff]  }
  0x2a   : > { %1263 = vmatpush1.bf16.msra.mxu0 %v2967_v27  ;;  %1349 = vmatpush1.bf16.msra.mxu1 %v2968_v28  ;;  %v3049_v15 = vld [vmem:[%s3401_s12 + $0x26c] ss:$16 sps:$4 sm:$0xff]   ;;  %v3044_v16 = vld [vmem:[%s3401_s12 + $0x260] ss:$16 sps:$4 sm:$0xff]   ;;  %v3047_v17 = vld [vmem:[%s3401_s12 + $0x268] ss:$16 sps:$4 sm:$0xff]  }
  0x2b   : > { %1264 = vmatprep.subr.bf16.mxu0 %v2969_v29  ;;  %1350 = vmatprep.subr.bf16.mxu1 %v2971_v30  ;;  %v3052_v18 = vld [vmem:[%s3401_s12 + $0x284] ss:$16 sps:$4 sm:$0xff]   ;;  %v3055_v19 = vld [vmem:[%s3401_s12 + $0x28c] ss:$16 sps:$4 sm:$0xff]   ;;  %v3050_v20 = vld [vmem:[%s3401_s12 + $0x280] ss:$16 sps:$4 sm:$0xff]  }
  0x2c   : > { %v3053_v21 = vld [vmem:[%s3401_s12 + $0x288] ss:$16 sps:$4 sm:$0xff]   ;;  %v3058_v22 = vld [vmem:[%s3401_s12 + $0x2a4] ss:$16 sps:$4 sm:$0xff]   ;;  %v3061_v23 = vld [vmem:[%s3401_s12 + $0x2ac] ss:$16 sps:$4 sm:$0xff]  }
  0x2d   : > { %v3056_v24 = vld [vmem:[%s3401_s12 + $0x2a0] ss:$16 sps:$4 sm:$0xff]   ;;  %v3059_v25 = vld [vmem:[%s3401_s12 + $0x2a8] ss:$16 sps:$4 sm:$0xff]   ;;  %v3064_v26 = vld [vmem:[%s3401_s12 + $0x2c4] ss:$16 sps:$4 sm:$0xff]  }
  0x2e   : > { %1265 = vmatpush1.bf16.msra.mxu0 %v2973_v31  ;;  %1351 = vmatpush1.bf16.msra.mxu1 %v2974_v32  ;;  %v3067_v27 = vld [vmem:[%s3401_s12 + $0x2cc] ss:$16 sps:$4 sm:$0xff]   ;;  %v3062_v29 = vld [vmem:[%s3401_s12 + $0x2c0] ss:$16 sps:$4 sm:$0xff]   ;;  %v3065_v30 = vld [vmem:[%s3401_s12 + $0x2c8] ss:$16 sps:$4 sm:$0xff]  }
  0x2f   : > { %1266 = vmatprep.subr.bf16.mxu0 %v2975_v33  ;;  %1352 = vmatprep.subr.bf16.mxu1 %v2977_v34  ;;  %v3124_v28 = vld [vmem:[%s3717_s3 + $0xc] ss:$16 sps:$4 sm:$0xff]   ;;  %v3070_v31 = vld [vmem:[%s3401_s12 + $0x2e4] ss:$16 sps:$4 sm:$0xff]   ;;  %v3068_v33 = vld [vmem:[%s3401_s12 + $0x2e0] ss:$16 sps:$4 sm:$0xff]  }
  0x30   : > { %v3073_v32 = vld [vmem:[%s3401_s12 + $0x2ec] ss:$16 sps:$4 sm:$0xff]   ;;  %v3071_v34 = vld [vmem:[%s3401_s12 + $0x2e8] ss:$16 sps:$4 sm:$0xff]  }
  0x32   : > { %1267 = vmatpush1.bf16.msra.mxu0 %v2979_v35  ;;  %1353 = vmatpush1.bf16.msra.mxu1 %v2980_v36  ;;  %v3076_v35 = vld [vmem:[%s3401_s12 + $0x304] ss:$16 sps:$4 sm:$0xff]   ;;  %v3079_v36 = vld [vmem:[%s3401_s12 + $0x30c] ss:$16 sps:$4 sm:$0xff]  }
  0x33   : > { %1268 = vmatprep.subr.bf16.mxu0 %v2981_v37  ;;  %1354 = vmatprep.subr.bf16.mxu1 %v2983_v38  ;;  %v3074_v37 = vld [vmem:[%s3401_s12 + $0x300] ss:$16 sps:$4 sm:$0xff]   ;;  %v3077_v38 = vld [vmem:[%s3401_s12 + $0x308] ss:$16 sps:$4 sm:$0xff]  }
  0x36   : > { %1269 = vmatpush1.bf16.msra.mxu0 %v2985_v39  ;;  %1355 = vmatpush1.bf16.msra.mxu1 %v2986_v40  ;;  %v3082_v39 = vld [vmem:[%s3401_s12 + $0x324] ss:$16 sps:$4 sm:$0xff]   ;;  %v3085_v40 = vld [vmem:[%s3401_s12 + $0x32c] ss:$16 sps:$4 sm:$0xff]  }
  0x37   : > { %1270 = vmatprep.subr.bf16.mxu0 %v2987_v41  ;;  %1356 = vmatprep.subr.bf16.mxu1 %v2989_v42  ;;  %v3080_v41 = vld [vmem:[%s3401_s12 + $0x320] ss:$16 sps:$4 sm:$0xff]   ;;  %v3083_v42 = vld [vmem:[%s3401_s12 + $0x328] ss:$16 sps:$4 sm:$0xff]  }
  0x3a   : > { %1271 = vmatpush1.bf16.msra.mxu0 %v2991_v43  ;;  %1357 = vmatpush1.bf16.msra.mxu1 %v2992_v44  ;;  %v3088_v43 = vld [vmem:[%s3401_s12 + $0x344] ss:$16 sps:$4 sm:$0xff]   ;;  %v3091_v44 = vld [vmem:[%s3401_s12 + $0x34c] ss:$16 sps:$4 sm:$0xff]  }
  0x3b   : > { %1272 = vmatprep.subr.bf16.mxu0 %v2993_v45  ;;  %1358 = vmatprep.subr.bf16.mxu1 %v2995_v46  ;;  %v3086_v45 = vld [vmem:[%s3401_s12 + $0x340] ss:$16 sps:$4 sm:$0xff]   ;;  %v3089_v46 = vld [vmem:[%s3401_s12 + $0x348] ss:$16 sps:$4 sm:$0xff]  }
  0x3e   : > { %1273 = vmatpush1.bf16.msra.mxu0 %v2997_v47  ;;  %1359 = vmatpush1.bf16.msra.mxu1 %v2998_v48  ;;  %v3094_v47 = vld [vmem:[%s3401_s12 + $0x364] ss:$16 sps:$4 sm:$0xff]   ;;  %v3097_v48 = vld [vmem:[%s3401_s12 + $0x36c] ss:$16 sps:$4 sm:$0xff]  }
  0x3f   : > { %1274 = vmatprep.subr.bf16.mxu0 %v2999_v49  ;;  %1360 = vmatprep.subr.bf16.mxu1 %v3001_v50  ;;  %v3092_v49 = vld [vmem:[%s3401_s12 + $0x360] ss:$16 sps:$4 sm:$0xff]   ;;  %v3095_v50 = vld [vmem:[%s3401_s12 + $0x368] ss:$16 sps:$4 sm:$0xff]  }
  0x42   : > { %1275 = vmatpush1.bf16.msra.mxu0 %v3003_v51  ;;  %1361 = vmatpush1.bf16.msra.mxu1 %v3004_v52  ;;  %v3100_v51 = vld [vmem:[%s3401_s12 + $0x384] ss:$16 sps:$4 sm:$0xff]   ;;  %v3103_v52 = vld [vmem:[%s3401_s12 + $0x38c] ss:$16 sps:$4 sm:$0xff]  }
  0x43   : > { %1276 = vmatprep.subr.bf16.mxu0 %v3005_v53  ;;  %1362 = vmatprep.subr.bf16.mxu1 %v3007_v54  ;;  %v3098_v53 = vld [vmem:[%s3401_s12 + $0x380] ss:$16 sps:$4 sm:$0xff]   ;;  %v3101_v54 = vld [vmem:[%s3401_s12 + $0x388] ss:$16 sps:$4 sm:$0xff]  }
  0x46   : > { %1277 = vmatpush1.bf16.msra.mxu0 %v3009_v55  ;;  %1363 = vmatpush1.bf16.msra.mxu1 %v3010_v56  ;;  %v3106_v55 = vld [vmem:[%s3401_s12 + $0x3a4] ss:$16 sps:$4 sm:$0xff]   ;;  %v3109_v56 = vld [vmem:[%s3401_s12 + $0x3ac] ss:$16 sps:$4 sm:$0xff]  }
  0x47   : > { %1278 = vmatprep.subr.bf16.mxu0 %v3011_v57  ;;  %1364 = vmatprep.subr.bf16.mxu1 %v3013_v58  ;;  %v3104_v57 = vld [vmem:[%s3401_s12 + $0x3a0] ss:$16 sps:$4 sm:$0xff]   ;;  %v3107_v58 = vld [vmem:[%s3401_s12 + $0x3a8] ss:$16 sps:$4 sm:$0xff]  }
  0x4a   : > { %1279 = vmatpush1.bf16.msra.mxu0 %v3015_v59  ;;  %1365 = vmatpush1.bf16.msra.mxu1 %v3016_v60  ;;  %v3112_v59 = vld [vmem:[%s3401_s12 + $0x3c4] ss:$16 sps:$4 sm:$0xff]   ;;  %v3115_v60 = vld [vmem:[%s3401_s12 + $0x3cc] ss:$16 sps:$4 sm:$0xff]  }
  0x4b   : > { %1280 = vmatprep.subr.bf16.mxu0 %v3017_v61  ;;  %1366 = vmatprep.subr.bf16.mxu1 %v3019_v62  ;;  %v3110_v61 = vld [vmem:[%s3401_s12 + $0x3c0] ss:$16 sps:$4 sm:$0xff]   ;;  %v3113_v62 = vld [vmem:[%s3401_s12 + $0x3c8] ss:$16 sps:$4 sm:$0xff]  }
  0x4e   : > { %1281 = vmatpush1.bf16.msra.mxu0 %v3021_v63  ;;  %1367 = vmatpush1.bf16.msra.mxu1 %v3022_v0  ;;  %v3118_v63 = vld [vmem:[%s3401_s12 + $0x3e4] ss:$16 sps:$4 sm:$0xff]   ;;  %v3121_v0 = vld [vmem:[%s3401_s12 + $0x3ec] ss:$16 sps:$4 sm:$0xff]  }
  0x4f   : > { %1293 = vmatprep.subr.bf16.mxu0 %v3028_v1  ;;  %1379 = vmatprep.subr.bf16.mxu1 %v3031_v2  ;;  %v3116_v1 = vld [vmem:[%s3401_s12 + $0x3e0] ss:$16 sps:$4 sm:$0xff]   ;;  %v3119_v2 = vld [vmem:[%s3401_s12 + $0x3e8] ss:$16 sps:$4 sm:$0xff]  }
  0x51   : > { %1283 = vmatmul.mubr.bf16.vlgmr.msra.gmra.mrb[0].mxu0 %v3023_v3  ;;  %1369 = vmatmul.mubr.bf16.vlgmr.msra.gmra.mrb[0].mxu1 %v3023_v3  ;;  %v3127_v3 = vld [vmem:[%s3499_s17 + $0x4] ss:$16 sps:$4 sm:$0xff]  }
  0x52   : > { %1294 = vmatpush1.bf16.msra.mxu0 %v3026_v4  ;;  %1380 = vmatpush1.bf16.msra.mxu1 %v3029_v5  ;;  %v3130_v4 = vld [vmem:[%s3499_s17 + $0xc] ss:$16 sps:$4 sm:$0xff]   ;;  %v3122_v5 = vld [vmem:[%s3717_s3 + $0x8] ss:$16 sps:$4 sm:$0xff]  }
  0x53   : > { %1295 = vmatprep.subr.bf16.mxu0 %v3034_v6  ;;  %1381 = vmatprep.subr.bf16.mxu1 %v3037_v7  ;;  %v3125_v6 = vld [vmem:[%s3499_s17] ss:$16 sps:$4 sm:$0xff]   ;;  %v3128_v7 = vld [vmem:[%s3499_s17 + $0x8] ss:$16 sps:$4 sm:$0xff]  }
  0x54   : > { %1325 = vmatprep.mubr.bf16.mxu0 %v3124_v28  ;;  %1411 = vmatprep.mubr.bf16.mxu1 %v3124_v28  ;;  %v3158_v28 = vld [vmem:[%s3499_s17 + $0xa8] ss:$16 sps:$4 sm:$0xff]  }
  0x56   : > { %1296 = vmatpush1.bf16.msra.mxu0 %v3032_v8  ;;  %1382 = vmatpush1.bf16.msra.mxu1 %v3035_v9  ;;  %v3133_v8 = vld [vmem:[%s3499_s17 + $0x24] ss:$16 sps:$4 sm:$0xff]   ;;  %v3136_v9 = vld [vmem:[%s3499_s17 + $0x2c] ss:$16 sps:$4 sm:$0xff]  }
  0x57   : > { %1297 = vmatprep.subr.bf16.mxu0 %v3040_v10  ;;  %1383 = vmatprep.subr.bf16.mxu1 %v3043_v11  ;;  %v3223_v10 = vld [vmem:[%s3716_s2 + $0x4] ss:$16 sps:$4 sm:$0xff]   ;;  %v3131_v11 = vld [vmem:[%s3499_s17 + $0x20] ss:$16 sps:$4 sm:$0xff]  }
  0x5a   : > { %1298 = vmatpush1.bf16.msra.mxu0 %v3038_v12  ;;  %1384 = vmatpush1.bf16.msra.mxu1 %v3041_v13  ;;  %v3134_v12 = vld [vmem:[%s3499_s17 + $0x28] ss:$16 sps:$4 sm:$0xff]   ;;  %v3139_v13 = vld [vmem:[%s3499_s17 + $0x44] ss:$16 sps:$4 sm:$0xff]  }
  0x5b   : > { %1299 = vmatprep.subr.bf16.mxu0 %v3046_v14  ;;  %1385 = vmatprep.subr.bf16.mxu1 %v3049_v15  ;;  %v3142_v14 = vld [vmem:[%s3499_s17 + $0x4c] ss:$16 sps:$4 sm:$0xff]   ;;  %v3137_v15 = vld [vmem:[%s3499_s17 + $0x40] ss:$16 sps:$4 sm:$0xff]  }
  0x5e   : > { %1300 = vmatpush1.bf16.msra.mxu0 %v3044_v16  ;;  %1386 = vmatpush1.bf16.msra.mxu1 %v3047_v17  ;;  %v3140_v16 = vld [vmem:[%s3499_s17 + $0x48] ss:$16 sps:$4 sm:$0xff]   ;;  %v3145_v17 = vld [vmem:[%s3499_s17 + $0x64] ss:$16 sps:$4 sm:$0xff]  }
  0x5f   : > { %1301 = vmatprep.subr.bf16.mxu0 %v3052_v18  ;;  %1387 = vmatprep.subr.bf16.mxu1 %v3055_v19  ;;  %v3148_v18 = vld [vmem:[%s3499_s17 + $0x6c] ss:$16 sps:$4 sm:$0xff]   ;;  %v3143_v19 = vld [vmem:[%s3499_s17 + $0x60] ss:$16 sps:$4 sm:$0xff]  }
  0x62   : > { %1302 = vmatpush1.bf16.msra.mxu0 %v3050_v20  ;;  %1388 = vmatpush1.bf16.msra.mxu1 %v3053_v21  ;;  %v3146_v20 = vld [vmem:[%s3499_s17 + $0x68] ss:$16 sps:$4 sm:$0xff]   ;;  %v3151_v21 = vld [vmem:[%s3499_s17 + $0x84] ss:$16 sps:$4 sm:$0xff]  }
  0x63   : > { %1303 = vmatprep.subr.bf16.mxu0 %v3058_v22  ;;  %1389 = vmatprep.subr.bf16.mxu1 %v3061_v23  ;;  %v3154_v22 = vld [vmem:[%s3499_s17 + $0x8c] ss:$16 sps:$4 sm:$0xff]   ;;  %v3149_v23 = vld [vmem:[%s3499_s17 + $0x80] ss:$16 sps:$4 sm:$0xff]  }
  0x66   : > { %1304 = vmatpush1.bf16.msra.mxu0 %v3056_v24  ;;  %1390 = vmatpush1.bf16.msra.mxu1 %v3059_v25  ;;  %v3152_v24 = vld [vmem:[%s3499_s17 + $0x88] ss:$16 sps:$4 sm:$0xff]   ;;  %v3157_v25 = vld [vmem:[%s3499_s17 + $0xa4] ss:$16 sps:$4 sm:$0xff]  }
  0x67   : > { %1305 = vmatprep.subr.bf16.mxu0 %v3064_v26  ;;  %1391 = vmatprep.subr.bf16.mxu1 %v3067_v27  ;;  %v3160_v26 = vld [vmem:[%s3499_s17 + $0xac] ss:$16 sps:$4 sm:$0xff]   ;;  %v3155_v27 = vld [vmem:[%s3499_s17 + $0xa0] ss:$16 sps:$4 sm:$0xff]  }
  0x6a   : > { %1306 = vmatpush1.bf16.msra.mxu0 %v3062_v29  ;;  %1392 = vmatpush1.bf16.msra.mxu1 %v3065_v30  ;;  %v3163_v29 = vld [vmem:[%s3499_s17 + $0xc4] ss:$16 sps:$4 sm:$0xff]   ;;  %v3166_v30 = vld [vmem:[%s3499_s17 + $0xcc] ss:$16 sps:$4 sm:$0xff]  }
  0x6b   : > { %1307 = vmatprep.subr.bf16.mxu0 %v3070_v31  ;;  %1393 = vmatprep.subr.bf16.mxu1 %v3073_v32  ;;  %v3161_v31 = vld [vmem:[%s3499_s17 + $0xc0] ss:$16 sps:$4 sm:$0xff]   ;;  %v3164_v32 = vld [vmem:[%s3499_s17 + $0xc8] ss:$16 sps:$4 sm:$0xff]  }
  0x6e   : > { %1308 = vmatpush1.bf16.msra.mxu0 %v3068_v33  ;;  %1394 = vmatpush1.bf16.msra.mxu1 %v3071_v34  ;;  %v3169_v33 = vld [vmem:[%s3499_s17 + $0xe4] ss:$16 sps:$4 sm:$0xff]   ;;  %v3172_v34 = vld [vmem:[%s3499_s17 + $0xec] ss:$16 sps:$4 sm:$0xff]  }
  0x6f   : > { %1309 = vmatprep.subr.bf16.mxu0 %v3076_v35  ;;  %1395 = vmatprep.subr.bf16.mxu1 %v3079_v36  ;;  %v3167_v35 = vld [vmem:[%s3499_s17 + $0xe0] ss:$16 sps:$4 sm:$0xff]   ;;  %v3170_v36 = vld [vmem:[%s3499_s17 + $0xe8] ss:$16 sps:$4 sm:$0xff]  }
  0x72   : > { %1310 = vmatpush1.bf16.msra.mxu0 %v3074_v37  ;;  %1396 = vmatpush1.bf16.msra.mxu1 %v3077_v38  ;;  %v3175_v37 = vld [vmem:[%s3499_s17 + $0x104] ss:$16 sps:$4 sm:$0xff]   ;;  %v3178_v38 = vld [vmem:[%s3499_s17 + $0x10c] ss:$16 sps:$4 sm:$0xff]  }
  0x73   : > { %1311 = vmatprep.subr.bf16.mxu0 %v3082_v39  ;;  %1397 = vmatprep.subr.bf16.mxu1 %v3085_v40  ;;  %v3173_v39 = vld [vmem:[%s3499_s17 + $0x100] ss:$16 sps:$4 sm:$0xff]   ;;  %v3176_v40 = vld [vmem:[%s3499_s17 + $0x108] ss:$16 sps:$4 sm:$0xff]  }
  0x76   : > { %1312 = vmatpush1.bf16.msra.mxu0 %v3080_v41  ;;  %1398 = vmatpush1.bf16.msra.mxu1 %v3083_v42  ;;  %v3181_v41 = vld [vmem:[%s3499_s17 + $0x124] ss:$16 sps:$4 sm:$0xff]   ;;  %v3184_v42 = vld [vmem:[%s3499_s17 + $0x12c] ss:$16 sps:$4 sm:$0xff]  }
  0x77   : > { %1313 = vmatprep.subr.bf16.mxu0 %v3088_v43  ;;  %1399 = vmatprep.subr.bf16.mxu1 %v3091_v44  ;;  %v3179_v43 = vld [vmem:[%s3499_s17 + $0x120] ss:$16 sps:$4 sm:$0xff]   ;;  %v3182_v44 = vld [vmem:[%s3499_s17 + $0x128] ss:$16 sps:$4 sm:$0xff]  }
  0x7a   : > { %1314 = vmatpush1.bf16.msra.mxu0 %v3086_v45  ;;  %1400 = vmatpush1.bf16.msra.mxu1 %v3089_v46  ;;  %v3187_v45 = vld [vmem:[%s3499_s17 + $0x144] ss:$16 sps:$4 sm:$0xff]   ;;  %v3190_v46 = vld [vmem:[%s3499_s17 + $0x14c] ss:$16 sps:$4 sm:$0xff]  }
  0x7b   : > { %1315 = vmatprep.subr.bf16.mxu0 %v3094_v47  ;;  %1401 = vmatprep.subr.bf16.mxu1 %v3097_v48  ;;  %v3185_v47 = vld [vmem:[%s3499_s17 + $0x140] ss:$16 sps:$4 sm:$0xff]   ;;  %v3188_v48 = vld [vmem:[%s3499_s17 + $0x148] ss:$16 sps:$4 sm:$0xff]  }
  0x7e   : > { %1316 = vmatpush1.bf16.msra.mxu0 %v3092_v49  ;;  %1402 = vmatpush1.bf16.msra.mxu1 %v3095_v50  ;;  %v3193_v49 = vld [vmem:[%s3499_s17 + $0x164] ss:$16 sps:$4 sm:$0xff]   ;;  %v3196_v50 = vld [vmem:[%s3499_s17 + $0x16c] ss:$16 sps:$4 sm:$0xff]  }
  0x7f   : > { %1317 = vmatprep.subr.bf16.mxu0 %v3100_v51  ;;  %1403 = vmatprep.subr.bf16.mxu1 %v3103_v52  ;;  %v3191_v51 = vld [vmem:[%s3499_s17 + $0x160] ss:$16 sps:$4 sm:$0xff]   ;;  %v3194_v52 = vld [vmem:[%s3499_s17 + $0x168] ss:$16 sps:$4 sm:$0xff]  }
  0x82   : > { %1318 = vmatpush1.bf16.msra.mxu0 %v3098_v53  ;;  %1404 = vmatpush1.bf16.msra.mxu1 %v3101_v54  ;;  %v3199_v53 = vld [vmem:[%s3499_s17 + $0x184] ss:$16 sps:$4 sm:$0xff]   ;;  %v3202_v54 = vld [vmem:[%s3499_s17 + $0x18c] ss:$16 sps:$4 sm:$0xff]  }
  0x83   : > { %1319 = vmatprep.subr.bf16.mxu0 %v3106_v55  ;;  %1405 = vmatprep.subr.bf16.mxu1 %v3109_v56  ;;  %v3197_v55 = vld [vmem:[%s3499_s17 + $0x180] ss:$16 sps:$4 sm:$0xff]   ;;  %v3200_v56 = vld [vmem:[%s3499_s17 + $0x188] ss:$16 sps:$4 sm:$0xff]  }
  0x86   : > { %1320 = vmatpush1.bf16.msra.mxu0 %v3104_v57  ;;  %1406 = vmatpush1.bf16.msra.mxu1 %v3107_v58  ;;  %v3205_v57 = vld [vmem:[%s3499_s17 + $0x1a4] ss:$16 sps:$4 sm:$0xff]   ;;  %v3208_v58 = vld [vmem:[%s3499_s17 + $0x1ac] ss:$16 sps:$4 sm:$0xff]  }
  0x87   : > { %1321 = vmatprep.subr.bf16.mxu0 %v3112_v59  ;;  %1407 = vmatprep.subr.bf16.mxu1 %v3115_v60  ;;  %v3203_v59 = vld [vmem:[%s3499_s17 + $0x1a0] ss:$16 sps:$4 sm:$0xff]   ;;  %v3206_v60 = vld [vmem:[%s3499_s17 + $0x1a8] ss:$16 sps:$4 sm:$0xff]  }
  0x8a   : > { %1322 = vmatpush1.bf16.msra.mxu0 %v3110_v61  ;;  %1408 = vmatpush1.bf16.msra.mxu1 %v3113_v62  ;;  %v3211_v61 = vld [vmem:[%s3499_s17 + $0x1c4] ss:$16 sps:$4 sm:$0xff]   ;;  %v3214_v62 = vld [vmem:[%s3499_s17 + $0x1cc] ss:$16 sps:$4 sm:$0xff]  }
  0x8b   : > { %1323 = vmatprep.subr.bf16.mxu0 %v3118_v63  ;;  %1409 = vmatprep.subr.bf16.mxu1 %v3121_v0  ;;  %v3209_v63 = vld [vmem:[%s3499_s17 + $0x1c0] ss:$16 sps:$4 sm:$0xff]   ;;  %v3212_v0 = vld [vmem:[%s3499_s17 + $0x1c8] ss:$16 sps:$4 sm:$0xff]  }
  0x8e   : > { %1324 = vmatpush1.bf16.msra.mxu0 %v3116_v1  ;;  %1410 = vmatpush1.bf16.msra.mxu1 %v3119_v2  ;;  %v3217_v1 = vld [vmem:[%s3499_s17 + $0x1e4] ss:$16 sps:$4 sm:$0xff]   ;;  %v3220_v2 = vld [vmem:[%s3499_s17 + $0x1ec] ss:$16 sps:$4 sm:$0xff]  }
  0x8f   : > { %2082 = vmatprep.subr.bf16.mxu0 %v3127_v3  ;;  %2168 = vmatprep.subr.bf16.mxu1 %v3130_v4  ;;  %v3215_v3 = vld [vmem:[%s3499_s17 + $0x1e0] ss:$16 sps:$4 sm:$0xff]   ;;  %v3218_v4 = vld [vmem:[%s3499_s17 + $0x1e8] ss:$16 sps:$4 sm:$0xff]  }
  0x91   : > { %1326 = vmatmul.mubr.bf16.vlgmr.msra.gmra.mrb[0].mxu0 %v3122_v5  ;;  %1412 = vmatmul.mubr.bf16.vlgmr.msra.gmra.mrb[0].mxu1 %v3122_v5  ;;  %v3226_v5 = vld [vmem:[%s3499_s17 + $0x204] ss:$16 sps:$4 sm:$0xff]  }
  0x92   : > { %2083 = vmatpush1.bf16.msra.mxu0 %v3125_v6  ;;  %2169 = vmatpush1.bf16.msra.mxu1 %v3128_v7  ;;  %v3229_v6 = vld [vmem:[%s3499_s17 + $0x20c] ss:$16 sps:$4 sm:$0xff]   ;;  %v3221_v7 = vld [vmem:[%s3716_s2] ss:$16 sps:$4 sm:$0xff]  }
  0x93   : > { %2084 = vmatprep.subr.bf16.mxu0 %v3133_v8  ;;  %2170 = vmatprep.subr.bf16.mxu1 %v3136_v9  ;;  %v3224_v8 = vld [vmem:[%s3499_s17 + $0x200] ss:$16 sps:$4 sm:$0xff]   ;;  %v3227_v9 = vld [vmem:[%s3499_s17 + $0x208] ss:$16 sps:$4 sm:$0xff]  }
  0x94   : > { %2114 = vmatprep.mubr.bf16.mxu0 %v3223_v10  ;;  %2200 = vmatprep.mubr.bf16.mxu1 %v3223_v10  ;;  %v3232_v10 = vld [vmem:[%s3499_s17 + $0x224] ss:$16 sps:$4 sm:$0xff]  }
  0x96   : > { %2085 = vmatpush1.bf16.msra.mxu0 %v3131_v11  ;;  %2171 = vmatpush1.bf16.msra.mxu1 %v3134_v12  ;;  %v3235_v11 = vld [vmem:[%s3499_s17 + $0x22c] ss:$16 sps:$4 sm:$0xff]  }
  0x97   : > { %2086 = vmatprep.subr.bf16.mxu0 %v3139_v13  ;;  %2172 = vmatprep.subr.bf16.mxu1 %v3142_v14  ;;  %v3322_v12 = vld [vmem:[%s3716_s2 + $0xc] ss:$16 sps:$4 sm:$0xff]   ;;  %v3230_v13 = vld [vmem:[%s3499_s17 + $0x220] ss:$16 sps:$4 sm:$0xff]   ;;  %v3233_v14 = vld [vmem:[%s3499_s17 + $0x228] ss:$16 sps:$4 sm:$0xff]  }
  0x9a   : > { %2087 = vmatpush1.bf16.msra.mxu0 %v3137_v15  ;;  %2173 = vmatpush1.bf16.msra.mxu1 %v3140_v16  ;;  %v3238_v15 = vld [vmem:[%s3499_s17 + $0x244] ss:$16 sps:$4 sm:$0xff]   ;;  %v3241_v16 = vld [vmem:[%s3499_s17 + $0x24c] ss:$16 sps:$4 sm:$0xff]  }
  0x9b   : > { %2088 = vmatprep.subr.bf16.mxu0 %v3145_v17  ;;  %2174 = vmatprep.subr.bf16.mxu1 %v3148_v18  ;;  %v3236_v17 = vld [vmem:[%s3499_s17 + $0x240] ss:$16 sps:$4 sm:$0xff]   ;;  %v3239_v18 = vld [vmem:[%s3499_s17 + $0x248] ss:$16 sps:$4 sm:$0xff]  }
  0x9e   : > { %2089 = vmatpush1.bf16.msra.mxu0 %v3143_v19  ;;  %2175 = vmatpush1.bf16.msra.mxu1 %v3146_v20  ;;  %v3244_v19 = vld [vmem:[%s3499_s17 + $0x264] ss:$16 sps:$4 sm:$0xff]   ;;  %v3247_v20 = vld [vmem:[%s3499_s17 + $0x26c] ss:$16 sps:$4 sm:$0xff]  }
  0x9f   : > { %2090 = vmatprep.subr.bf16.mxu0 %v3151_v21  ;;  %2176 = vmatprep.subr.bf16.mxu1 %v3154_v22  ;;  %v3242_v21 = vld [vmem:[%s3499_s17 + $0x260] ss:$16 sps:$4 sm:$0xff]   ;;  %v3245_v22 = vld [vmem:[%s3499_s17 + $0x268] ss:$16 sps:$4 sm:$0xff]  }
  0xa2   : > { %2091 = vmatpush1.bf16.msra.mxu0 %v3149_v23  ;;  %2177 = vmatpush1.bf16.msra.mxu1 %v3152_v24  ;;  %v3250_v23 = vld [vmem:[%s3499_s17 + $0x284] ss:$16 sps:$4 sm:$0xff]   ;;  %v3253_v24 = vld [vmem:[%s3499_s17 + $0x28c] ss:$16 sps:$4 sm:$0xff]  }
  0xa3   : > { %2092 = vmatprep.subr.bf16.mxu0 %v3157_v25  ;;  %2178 = vmatprep.subr.bf16.mxu1 %v3160_v26  ;;  %v3248_v25 = vld [vmem:[%s3499_s17 + $0x280] ss:$16 sps:$4 sm:$0xff]   ;;  %v3251_v26 = vld [vmem:[%s3499_s17 + $0x288] ss:$16 sps:$4 sm:$0xff]  }
  0xa6   : > { %2093 = vmatpush1.bf16.msra.mxu0 %v3155_v27  ;;  %2179 = vmatpush1.bf16.msra.mxu1 %v3158_v28  ;;  %v3256_v27 = vld [vmem:[%s3499_s17 + $0x2a4] ss:$16 sps:$4 sm:$0xff]   ;;  %v3259_v28 = vld [vmem:[%s3499_s17 + $0x2ac] ss:$16 sps:$4 sm:$0xff]  }
  0xa7   : > { %2094 = vmatprep.subr.bf16.mxu0 %v3163_v29  ;;  %2180 = vmatprep.subr.bf16.mxu1 %v3166_v30  ;;  %v3254_v29 = vld [vmem:[%s3499_s17 + $0x2a0] ss:$16 sps:$4 sm:$0xff]   ;;  %v3257_v30 = vld [vmem:[%s3499_s17 + $0x2a8] ss:$16 sps:$4 sm:$0xff]  }
  0xaa   : > { %2095 = vmatpush1.bf16.msra.mxu0 %v3161_v31  ;;  %2181 = vmatpush1.bf16.msra.mxu1 %v3164_v32  ;;  %v3262_v31 = vld [vmem:[%s3499_s17 + $0x2c4] ss:$16 sps:$4 sm:$0xff]   ;;  %v3265_v32 = vld [vmem:[%s3499_s17 + $0x2cc] ss:$16 sps:$4 sm:$0xff]  }
  0xab   : > { %2096 = vmatprep.subr.bf16.mxu0 %v3169_v33  ;;  %2182 = vmatprep.subr.bf16.mxu1 %v3172_v34  ;;  %v3260_v33 = vld [vmem:[%s3499_s17 + $0x2c0] ss:$16 sps:$4 sm:$0xff]   ;;  %v3263_v34 = vld [vmem:[%s3499_s17 + $0x2c8] ss:$16 sps:$4 sm:$0xff]  }
  0xae   : > { %2097 = vmatpush1.bf16.msra.mxu0 %v3167_v35  ;;  %2183 = vmatpush1.bf16.msra.mxu1 %v3170_v36  ;;  %v3268_v35 = vld [vmem:[%s3499_s17 + $0x2e4] ss:$16 sps:$4 sm:$0xff]   ;;  %v3271_v36 = vld [vmem:[%s3499_s17 + $0x2ec] ss:$16 sps:$4 sm:$0xff]  }
  0xaf   : > { %2098 = vmatprep.subr.bf16.mxu0 %v3175_v37  ;;  %2184 = vmatprep.subr.bf16.mxu1 %v3178_v38  ;;  %v3266_v37 = vld [vmem:[%s3499_s17 + $0x2e0] ss:$16 sps:$4 sm:$0xff]   ;;  %v3269_v38 = vld [vmem:[%s3499_s17 + $0x2e8] ss:$16 sps:$4 sm:$0xff]  }
  0xb2   : > { %2099 = vmatpush1.bf16.msra.mxu0 %v3173_v39  ;;  %2185 = vmatpush1.bf16.msra.mxu1 %v3176_v40  ;;  %v3274_v39 = vld [vmem:[%s3499_s17 + $0x304] ss:$16 sps:$4 sm:$0xff]   ;;  %v3277_v40 = vld [vmem:[%s3499_s17 + $0x30c] ss:$16 sps:$4 sm:$0xff]  }
  0xb3   : > { %2100 = vmatprep.subr.bf16.mxu0 %v3181_v41  ;;  %2186 = vmatprep.subr.bf16.mxu1 %v3184_v42  ;;  %v3272_v41 = vld [vmem:[%s3499_s17 + $0x300] ss:$16 sps:$4 sm:$0xff]   ;;  %v3275_v42 = vld [vmem:[%s3499_s17 + $0x308] ss:$16 sps:$4 sm:$0xff]  }
  0xb6   : > { %2101 = vmatpush1.bf16.msra.mxu0 %v3179_v43  ;;  %2187 = vmatpush1.bf16.msra.mxu1 %v3182_v44  ;;  %v3280_v43 = vld [vmem:[%s3499_s17 + $0x324] ss:$16 sps:$4 sm:$0xff]   ;;  %v3283_v44 = vld [vmem:[%s3499_s17 + $0x32c] ss:$16 sps:$4 sm:$0xff]  }
  0xb7   : > { %2102 = vmatprep.subr.bf16.mxu0 %v3187_v45  ;;  %2188 = vmatprep.subr.bf16.mxu1 %v3190_v46  ;;  %v3278_v45 = vld [vmem:[%s3499_s17 + $0x320] ss:$16 sps:$4 sm:$0xff]   ;;  %v3281_v46 = vld [vmem:[%s3499_s17 + $0x328] ss:$16 sps:$4 sm:$0xff]  }
  0xba   : > { %2103 = vmatpush1.bf16.msra.mxu0 %v3185_v47  ;;  %2189 = vmatpush1.bf16.msra.mxu1 %v3188_v48  ;;  %v3286_v47 = vld [vmem:[%s3499_s17 + $0x344] ss:$16 sps:$4 sm:$0xff]   ;;  %v3289_v48 = vld [vmem:[%s3499_s17 + $0x34c] ss:$16 sps:$4 sm:$0xff]  }
  0xbb   : > { %2104 = vmatprep.subr.bf16.mxu0 %v3193_v49  ;;  %2190 = vmatprep.subr.bf16.mxu1 %v3196_v50  ;;  %v3284_v49 = vld [vmem:[%s3499_s17 + $0x340] ss:$16 sps:$4 sm:$0xff]   ;;  %v3287_v50 = vld [vmem:[%s3499_s17 + $0x348] ss:$16 sps:$4 sm:$0xff]  }
  0xbe   : > { %2105 = vmatpush1.bf16.msra.mxu0 %v3191_v51  ;;  %2191 = vmatpush1.bf16.msra.mxu1 %v3194_v52  ;;  %v3292_v51 = vld [vmem:[%s3499_s17 + $0x364] ss:$16 sps:$4 sm:$0xff]   ;;  %v3295_v52 = vld [vmem:[%s3499_s17 + $0x36c] ss:$16 sps:$4 sm:$0xff]  }
  0xbf   : > { %2106 = vmatprep.subr.bf16.mxu0 %v3199_v53  ;;  %2192 = vmatprep.subr.bf16.mxu1 %v3202_v54  ;;  %v3290_v53 = vld [vmem:[%s3499_s17 + $0x360] ss:$16 sps:$4 sm:$0xff]   ;;  %v3293_v54 = vld [vmem:[%s3499_s17 + $0x368] ss:$16 sps:$4 sm:$0xff]  }
  0xc2   : > { %2107 = vmatpush1.bf16.msra.mxu0 %v3197_v55  ;;  %2193 = vmatpush1.bf16.msra.mxu1 %v3200_v56  ;;  %v3298_v55 = vld [vmem:[%s3499_s17 + $0x384] ss:$16 sps:$4 sm:$0xff]   ;;  %v3301_v56 = vld [vmem:[%s3499_s17 + $0x38c] ss:$16 sps:$4 sm:$0xff]  }
  0xc3   : > { %2108 = vmatprep.subr.bf16.mxu0 %v3205_v57  ;;  %2194 = vmatprep.subr.bf16.mxu1 %v3208_v58  ;;  %v3296_v57 = vld [vmem:[%s3499_s17 + $0x380] ss:$16 sps:$4 sm:$0xff]   ;;  %v3299_v58 = vld [vmem:[%s3499_s17 + $0x388] ss:$16 sps:$4 sm:$0xff]  }
  0xc6   : > { %2109 = vmatpush1.bf16.msra.mxu0 %v3203_v59  ;;  %2195 = vmatpush1.bf16.msra.mxu1 %v3206_v60  ;;  %v3304_v59 = vld [vmem:[%s3499_s17 + $0x3a4] ss:$16 sps:$4 sm:$0xff]   ;;  %v3307_v60 = vld [vmem:[%s3499_s17 + $0x3ac] ss:$16 sps:$4 sm:$0xff]  }
  0xc7   : > { %2110 = vmatprep.subr.bf16.mxu0 %v3211_v61  ;;  %2196 = vmatprep.subr.bf16.mxu1 %v3214_v62  ;;  %v3302_v61 = vld [vmem:[%s3499_s17 + $0x3a0] ss:$16 sps:$4 sm:$0xff]   ;;  %v3305_v62 = vld [vmem:[%s3499_s17 + $0x3a8] ss:$16 sps:$4 sm:$0xff]  }
  0xca   : > { %2111 = vmatpush1.bf16.msra.mxu0 %v3209_v63  ;;  %2197 = vmatpush1.bf16.msra.mxu1 %v3212_v0  ;;  %v3310_v63 = vld [vmem:[%s3499_s17 + $0x3c4] ss:$16 sps:$4 sm:$0xff]   ;;  %v3313_v0 = vld [vmem:[%s3499_s17 + $0x3cc] ss:$16 sps:$4 sm:$0xff]  }
  0xcb   : > { %2112 = vmatprep.subr.bf16.mxu0 %v3217_v1  ;;  %2198 = vmatprep.subr.bf16.mxu1 %v3220_v2  ;;  %v3308_v1 = vld [vmem:[%s3499_s17 + $0x3c0] ss:$16 sps:$4 sm:$0xff]   ;;  %v3311_v2 = vld [vmem:[%s3499_s17 + $0x3c8] ss:$16 sps:$4 sm:$0xff]  }
  0xce   : > { %2113 = vmatpush1.bf16.msra.mxu0 %v3215_v3  ;;  %2199 = vmatpush1.bf16.msra.mxu1 %v3218_v4  ;;  %v3316_v3 = vld [vmem:[%s3499_s17 + $0x3e4] ss:$16 sps:$4 sm:$0xff]   ;;  %v3319_v4 = vld [vmem:[%s3499_s17 + $0x3ec] ss:$16 sps:$4 sm:$0xff]  }
  0xcf   : > { %2125 = vmatprep.subr.bf16.mxu0 %v3226_v5  ;;  %2211 = vmatprep.subr.bf16.mxu1 %v3229_v6  ;;  %v3314_v5 = vld [vmem:[%s3499_s17 + $0x3e0] ss:$16 sps:$4 sm:$0xff]   ;;  %v3317_v6 = vld [vmem:[%s3499_s17 + $0x3e8] ss:$16 sps:$4 sm:$0xff]  }
  0xd1   : > { %2115 = vmatmul.mubr.bf16.vlgmr.msra.gmra.mrb[0].mxu0 %v3221_v7  ;;  %2201 = vmatmul.mubr.bf16.vlgmr.msra.gmra.mrb[0].mxu1 %v3221_v7  ;;  %v3320_v7 = vld [vmem:[%s3716_s2 + $0x8] ss:$16 sps:$4 sm:$0xff]  }
  0xd2   : > { %2126 = vmatpush1.bf16.msra.mxu0 %v3224_v8  ;;  %2212 = vmatpush1.bf16.msra.mxu1 %v3227_v9  ;;  %v2308_v8 = vld [vmem:[%s3718_s4 + $0x8] sm:$0xff]  ;;  %v3335_v9 = vmov 0  }
  0xd3   : > { %2127 = vmatprep.subr.bf16.mxu0 %v3232_v10  ;;  %2213 = vmatprep.subr.bf16.mxu1 %v3235_v11  ;;  %v2327_v10 = vld [vmem:[%s3719_s5] sm:$0xff] }
  0xd4   : > { %2157 = vmatprep.mubr.bf16.mxu0 %v3322_v12  ;;  %2243 = vmatprep.mubr.bf16.mxu1 %v3322_v12 }
  0xd5   : > { %2926 = vset.pattern.permute.xlu1 %v3335_v9  ;;  %2925 = vset.pattern.permute.xlu0 %v3335_v9 }
  0xd6   : > { %2128 = vmatpush1.bf16.msra.mxu0 %v3230_v13  ;;  %2214 = vmatpush1.bf16.msra.mxu1 %v3233_v14 }
  0xd7   : > { %2129 = vmatprep.subr.bf16.mxu0 %v3238_v15  ;;  %2215 = vmatprep.subr.bf16.mxu1 %v3241_v16 }
  0xd8   : > { %2316 = vperm.xlu1 %2926, %v2308_v8  }
  0xda   : > { %2130 = vmatpush1.bf16.msra.mxu0 %v3236_v17  ;;  %2216 = vmatpush1.bf16.msra.mxu1 %v3239_v18 }
  0xdb   : > { %2131 = vmatprep.subr.bf16.mxu0 %v3244_v19  ;;  %2217 = vmatprep.subr.bf16.mxu1 %v3247_v20 }
  0xdc   : > { %2331 = vperm.xlu1 %2926, %v2327_v10  }
  0xde   : > { %2132 = vmatpush1.bf16.msra.mxu0 %v3242_v21  ;;  %2218 = vmatpush1.bf16.msra.mxu1 %v3245_v22 }
  0xdf   : > { %2133 = vmatprep.subr.bf16.mxu0 %v3250_v23  ;;  %2219 = vmatprep.subr.bf16.mxu1 %v3253_v24 }
  0xe2   : > { %2134 = vmatpush1.bf16.msra.mxu0 %v3248_v25  ;;  %2220 = vmatpush1.bf16.msra.mxu1 %v3251_v26  ;;  %v2307_v25 = vld [vmem:[%s3718_s4] sm:$0xff] }
  0xe3   : > { %2135 = vmatprep.subr.bf16.mxu0 %v3256_v27  ;;  %2221 = vmatprep.subr.bf16.mxu1 %v3259_v28 }
  0xe6   : > { %2136 = vmatpush1.bf16.msra.mxu0 %v3254_v29  ;;  %2222 = vmatpush1.bf16.msra.mxu1 %v3257_v30 }
  0xe7   : > { %2137 = vmatprep.subr.bf16.mxu0 %v3262_v31  ;;  %2223 = vmatprep.subr.bf16.mxu1 %v3265_v32 }
  0xea   : > { %2138 = vmatpush1.bf16.msra.mxu0 %v3260_v33  ;;  %2224 = vmatpush1.bf16.msra.mxu1 %v3263_v34 }
  0xeb   : > { %2139 = vmatprep.subr.bf16.mxu0 %v3268_v35  ;;  %2225 = vmatprep.subr.bf16.mxu1 %v3271_v36 }
  0xee   : > { %2140 = vmatpush1.bf16.msra.mxu0 %v3266_v37  ;;  %2226 = vmatpush1.bf16.msra.mxu1 %v3269_v38 }
  0xef   : > { %2141 = vmatprep.subr.bf16.mxu0 %v3274_v39  ;;  %2227 = vmatprep.subr.bf16.mxu1 %v3277_v40 }
  0xf2   : > { %2142 = vmatpush1.bf16.msra.mxu0 %v3272_v41  ;;  %2228 = vmatpush1.bf16.msra.mxu1 %v3275_v42 }
  0xf3   : > { %2143 = vmatprep.subr.bf16.mxu0 %v3280_v43  ;;  %2229 = vmatprep.subr.bf16.mxu1 %v3283_v44 }
  0xf6   : > { %2144 = vmatpush1.bf16.msra.mxu0 %v3278_v45  ;;  %2230 = vmatpush1.bf16.msra.mxu1 %v3281_v46 }
  0xf7   : > { %2145 = vmatprep.subr.bf16.mxu0 %v3286_v47  ;;  %2231 = vmatprep.subr.bf16.mxu1 %v3289_v48 }
  0xfa   : > { %2146 = vmatpush1.bf16.msra.mxu0 %v3284_v49  ;;  %2232 = vmatpush1.bf16.msra.mxu1 %v3287_v50 }
  0xfb   : > { %2147 = vmatprep.subr.bf16.mxu0 %v3292_v51  ;;  %2233 = vmatprep.subr.bf16.mxu1 %v3295_v52  ;;  %v2328_v52 = vld [vmem:[%s3719_s5 + $0x8] sm:$0xff] }
  0xfe   : > { %2148 = vmatpush1.bf16.msra.mxu0 %v3290_v53  ;;  %2234 = vmatpush1.bf16.msra.mxu1 %v3293_v54  ;;  %v2372_v53 = vld [vmem:[%s3721_s7] sm:$0x7]  ;;  %v3336_v54 = vmov 0.0  }
  0xff   : > { %2149 = vmatprep.subr.bf16.mxu0 %v3298_v55  ;;  %2235 = vmatprep.subr.bf16.mxu1 %v3301_v56 }
 0x102   : > { %2150 = vmatpush1.bf16.msra.mxu0 %v3296_v57  ;;  %2236 = vmatpush1.bf16.msra.mxu1 %v3299_v58 }
 0x103   : > { %2151 = vmatprep.subr.bf16.mxu0 %v3304_v59  ;;  %2237 = vmatprep.subr.bf16.mxu1 %v3307_v60 }
 0x106   : > { %2152 = vmatpush1.bf16.msra.mxu0 %v3302_v61  ;;  %2238 = vmatpush1.bf16.msra.mxu1 %v3305_v62 }
 0x107   : > { %2153 = vmatprep.subr.bf16.mxu0 %v3310_v63  ;;  %2239 = vmatprep.subr.bf16.mxu1 %v3313_v0 }
 0x10a   : > { %2154 = vmatpush1.bf16.msra.mxu0 %v3308_v1  ;;  %2240 = vmatpush1.bf16.msra.mxu1 %v3311_v2 }
 0x10b   : > { %2155 = vmatprep.subr.bf16.mxu0 %v3316_v3  ;;  %2241 = vmatprep.subr.bf16.mxu1 %v3319_v4 }
 0x10e   : > { %2156 = vmatpush1.bf16.msra.mxu0 %v3314_v5  ;;  %2242 = vmatpush1.bf16.msra.mxu1 %v3317_v6 }
 0x111   : > { %2158 = vmatmul.mubr.bf16.vlgmr.msra.gmra.mrb[0].mxu0 %v3320_v7  ;;  %2244 = vmatmul.mubr.bf16.vlgmr.msra.gmra.mrb[0].mxu1 %v3320_v7 }
 0x112   : > { %2446 = vmatprep.mubr.f32.mxu0 %v3336_v54  ;;  %2517 = vmatprep.mubr.f32.mxu1 %v3336_v54 }
 0x157   : > { %v2317_v55 = vpop.permute.xlu1 %2316 }
 0x15b   : > { %v2332_v56 = vpop.permute.xlu1 %2331 }
 0x1e4   : > { %v2159_v11 = vpop.f32.mrb[0].mxu0  ;;  %v2245_v12 = vpop.f32.mrb[0].mxu1 }
 0x1e5   : > { %v2161_v13 = vpop.f32.mrb[1].mxu0  ;;  %v2247_v14 = vpop.f32.mrb[1].mxu1 }
 0x1e6   : > { %v2254_v15 = vadd.f32 %v2161_v13, %v2159_v11  ;;  %v2163_v16 = vpop.f32.mrb[2].mxu0  ;;  %v2249_v17 = vpop.f32.mrb[2].mxu1 }
 0x1e7   : > { %v2165_v18 = vpop.f32.mrb[3].mxu0  ;;  %v2251_v19 = vpop.f32.mrb[3].mxu1 }
 0x1e8   : > { %v2259_v20 = vadd.f32 %v2165_v18, %v2163_v16  ;;  %v2255_v21 = vadd.f32 %v2254_v15, %v2245_v12 }
 0x1ea   : > { %v2256_v22 = vadd.f32 %v2255_v21, %v2247_v14  ;;  %v2260_v23 = vadd.f32 %v2259_v20, %v2249_v17 }
 0x1ec   : > { %2257 = vadd.xlane.f32.xlu0 %v2256_v22  ;;  %v2261_v24 = vadd.f32 %v2260_v23, %v2251_v19 }
 0x1f0   : > { %2262 = vadd.xlane.f32.xlu0 %v2261_v24 }
 0x206   : > { %2311 = vperm.xlu0 %2925, %v2307_v25  }
 0x279   : > { %v2258_v26 = vpop.xlane.xlu0 %2257 }
 0x27a   : > { %v2265_v27 = vmul.f32 0.001953125, %v2258_v26 }
 0x27c   : > { %v2267_v28 = vsub.f32 %v2159_v11, %v2265_v27  ;;  %v2268_v29 = vsub.f32 %v2161_v13, %v2265_v27  ;;  %v2269_v30 = vsub.f32 %v2245_v12, %v2265_v27  ;;  %v2270_v32 = vsub.f32 %v2247_v14, %v2265_v27 }
 0x27d   : > { %v2263_v31 = vpop.xlane.xlu0 %2262 }
 0x27e   : > { %v2266_v33 = vmul.f32 0.001953125, %v2263_v31  ;;  %v2275_v34 = vmul.f32 %v2267_v28, %v2267_v28  ;;  %v2276_v35 = vmul.f32 %v2268_v29, %v2268_v29  ;;  %v2277_v36 = vmul.f32 %v2269_v30, %v2269_v30 }
 0x27f   : > { %v2278_v41 = vmul.f32 %v2270_v32, %v2270_v32 }
 0x280   : > { %v2271_v37 = vsub.f32 %v2163_v16, %v2266_v33  ;;  %v2272_v38 = vsub.f32 %v2165_v18, %v2266_v33  ;;  %v2283_v39 = vadd.f32 %v2276_v35, %v2275_v34  ;;  %v2273_v40 = vsub.f32 %v2249_v17, %v2266_v33 }
 0x281   : > { %v2274_v43 = vsub.f32 %v2251_v19, %v2266_v33 }
 0x282   : > { %v2284_v42 = vadd.f32 %v2283_v39, %v2277_v36  ;;  %v2279_v44 = vmul.f32 %v2271_v37, %v2271_v37  ;;  %v2280_v45 = vmul.f32 %v2272_v38, %v2272_v38  ;;  %v2281_v47 = vmul.f32 %v2273_v40, %v2273_v40 }
 0x283   : > { %v2282_v49 = vmul.f32 %v2274_v43, %v2274_v43 }
 0x284   : > { %v2285_v46 = vadd.f32 %v2284_v42, %v2278_v41  ;;  %v2288_v48 = vadd.f32 %v2280_v45, %v2279_v44 }
 0x285   : > { %v2312_v0 = vpop.permute.xlu0 %2311 }
 0x286   : > { %2286 = vadd.xlane.f32.xlu1 %v2285_v46  ;;  %v2289_v50 = vadd.f32 %v2288_v48, %v2281_v47  ;;  %v2371_v47 = vld [vmem:[%s3720_s6] sm:$0x7] }
 0x288   : > { %v2290_v51 = vadd.f32 %v2289_v50, %v2282_v49 }
 0x28a   : > { %2291 = vadd.xlane.f32.xlu1 %v2290_v51 }
 0x29b   : > { %2336 = vperm.xlu1 %2926, %v2328_v52  }
 0x29f   : > { %2375 = vperm.xlu1 %2926, %v2372_v53  }
 0x313   : > { %v2287_v57 = vpop.xlane.xlu1 %2286 }
 0x314   : > { %v2293_v58 = vmul.f32 0.001953125, %v2287_v57 }
 0x316   : > { %v2295_v59 = vadd.f32 1e-05, %v2293_v58 }
 0x317   : > { %v2292_v60 = vpop.xlane.xlu1 %2291 }
 0x318   : > { %3323 = vrsqrt.f32 %v2295_v59  ;;  %v2294_v61 = vmul.f32 0.001953125, %v2292_v60 }
 0x31a   : > { %v2296_v62 = vadd.f32 1e-05, %v2294_v61 }
 0x31b   : > { %v2337_v22 = vpop.permute.xlu1 %2336 }
 0x31c   : > { %3325 = vrsqrt.f32 %v2296_v62 }
 0x31f   : > { %v2376_v48 = vpop.permute.xlu1 %2375 }
 0x322   : > { %v3324_v63 = vpop.eup %3323 }
 0x323   : > { %v2299_v1 = vmul.f32 %v3324_v63, %v2267_v28  ;;  %v2300_v2 = vmul.f32 %v3324_v63, %v2268_v29  ;;  %v2301_v3 = vmul.f32 %v3324_v63, %v2269_v30  ;;  %v2302_v4 = vmul.f32 %v3324_v63, %v2270_v32 }
 0x325   : > { %v2319_v5 = vmul.f32 %v2312_v0, %v2299_v1  ;;  %v2320_v6 = vmul.f32 %v2312_v0, %v2300_v2  ;;  %v2321_v7 = vmul.f32 %v2312_v0, %v2301_v3  ;;  %v2322_v8 = vmul.f32 %v2312_v0, %v2302_v4 }
 0x326   : > { %v3326_v9 = vpop.eup %3325 }
 0x327   : > { %v2303_v10 = vmul.f32 %v3326_v9, %v2271_v37  ;;  %v2304_v11 = vmul.f32 %v3326_v9, %v2272_v38  ;;  %v2305_v12 = vmul.f32 %v3326_v9, %v2273_v40  ;;  %v2306_v13 = vmul.f32 %v3326_v9, %v2274_v43 }
 0x328   : > { %v2339_v14 = vadd.f32 %v2332_v56, %v2319_v5  ;;  %v2340_v15 = vadd.f32 %v2332_v56, %v2320_v6  ;;  %v2341_v16 = vadd.f32 %v2332_v56, %v2321_v7  ;;  %v2342_v17 = vadd.f32 %v2332_v56, %v2322_v8 }
 0x329   : > { %v2323_v18 = vmul.f32 %v2317_v55, %v2303_v10  ;;  %v2324_v19 = vmul.f32 %v2317_v55, %v2304_v11  ;;  %v2325_v20 = vmul.f32 %v2317_v55, %v2305_v12  ;;  %v2326_v21 = vmul.f32 %v2317_v55, %v2306_v13 }
 0x32a   : > { %vm2347_vm0 = vcmp.ge.f32.partialorder %v2339_v14, 0.0  ;;  %v2355_v23 = vmul.f32 0.01, %v2339_v14  ;;  %v2357_v24 = vmul.f32 0.01, %v2341_v16  ;;  %vm2349_vm1 = vcmp.ge.f32.partialorder %v2341_v16, 0.0 }
 0x32b   : > { %v2343_v25 = vadd.f32 %v2337_v22, %v2323_v18  ;;  %v2344_v26 = vadd.f32 %v2337_v22, %v2324_v19  ;;  %v2345_v27 = vadd.f32 %v2337_v22, %v2325_v20  ;;  %v2346_v28 = vadd.f32 %v2337_v22, %v2326_v21 }
 0x32c   : > { %vm2348_vm2 = vcmp.ge.f32.partialorder %v2340_v15, 0.0  ;;  %v2356_v29 = vmul.f32 0.01, %v2340_v15  ;;  %v2358_v30 = vmul.f32 0.01, %v2342_v17  ;;  %vm2350_vm6 = vcmp.ge.f32.partialorder %v2342_v17, 0.0 }
 0x32d   : > { %vm2351_vm3 = vcmp.ge.f32.partialorder %v2343_v25, 0.0  ;;  %vm2353_vm4 = vcmp.ge.f32.partialorder %v2345_v27, 0.0  ;;  %v2359_v31 = vmul.f32 0.01, %v2343_v25  ;;  %v2361_v32 = vmul.f32 0.01, %v2345_v27 }
 0x32e   : > { %vm2352_vm5 = vcmp.ge.f32.partialorder %v2344_v26, 0.0  ;;  %v2360_v33 = vmul.f32 0.01, %v2344_v26  ;;  %vm2354_vm7 = vcmp.ge.f32.partialorder %v2346_v28, 0.0  ;;  %v2364_v34 = vsel %vm2348_vm2, %v2340_v15, %v2356_v29 }
 0x32f   : > { %v2362_v35 = vmul.f32 0.01, %v2346_v28  ;;  %v2363_v36 = vsel %vm2347_vm0, %v2339_v14, %v2355_v23  ;;  %v2367_v37 = vsel %vm2351_vm3, %v2343_v25, %v2359_v31  ;;  %v2365_v40 = vsel %vm2349_vm1, %v2341_v16, %v2357_v24 }
 0x330   : > { %v2368_v38 = vsel %vm2352_vm5, %v2344_v26, %v2360_v33  ;;  %v2885_v39 = vpack.c.bf16 %v2367_v37, %v2363_v36  ;;  %v2369_v41 = vsel %vm2353_vm4, %v2345_v27, %v2361_v32  ;;  %v2366_v43 = vsel %vm2350_vm6, %v2342_v17, %v2358_v30 }
 0x331   : > { %v2883_v42 = vpack.c.bf16 %v2368_v38, %v2364_v34  ;;  %v2370_v44 = vsel %vm2354_vm7, %v2346_v28, %v2362_v35  ;;  %v2889_v45 = vpack.c.bf16 %v2369_v41, %v2365_v40 }
 0x332   : > { %v2887_v46 = vpack.c.bf16 %v2370_v44, %v2366_v43 }
 0x333   : > { %2884 = vmatprep.subr.bf16.mxu0 %v2883_v42 }
 0x334   : > { %2888 = vmatprep.subr.bf16.mxu1 %v2887_v46  ;;  %2886 = vmatpush1.bf16.msra.mxu0 %v2885_v39 }
 0x335   : > { %2890 = vmatpush1.bf16.msra.mxu1 %v2889_v45 }
 0x337   : > { %2876 = vmatmul.mubr.msk.f32.vlgmr.msra.gmra.mrb[4].mxu0 %vm2378_vm8, %v2371_v47 }
 0x338   : > { %2877 = vmatmul.mubr.msk.f32.vlgmr.msra.gmra.mrb[4].mxu1 %vm2378_vm8, %v2371_v47 }
 0x40a   : > { %v2448_v49 = vpop.f32.mrb[4].mxu0 }
 0x40b   : > { %v2449_v50 = vadd.f32 %v2448_v49, %v2376_v48  ;;  %v2519_v51 = vpop.f32.mrb[4].mxu1  ;;  %v2450_v52 = vpop.f32.mrb[5].mxu0 }
 0x40c   : > { %v2520_v53 = vadd.f32 %v2519_v51, %v2376_v48  ;;  %v2451_v54 = vadd.f32 %v2450_v52, %v2376_v48  ;;  %v2521_v55 = vpop.f32.mrb[5].mxu1 }
 0x40d   : > { %v2522_v56 = vadd.f32 %v2521_v55, %v2376_v48 }
 0x40e   : > { %v2528_v57 = vcombine.low %v2449_v50, %v2451_v54 }
 0x40f   : > { %v2529_v58 = vcombine.low %v2520_v53, %v2522_v56 }
 0x410   : > { %2532 = vst [vmem:[%s325_s25] sm:$0x77] %v2528_v57 }
 0x411   : > { %2533 = vst [vmem:[%s325_s25 + $0x8] sm:$0x77] %v2529_v58 }
 0x412 PF: > { %s18_s27 = sadd.s32 1, %s3333_s27  }
 0x413   : > { %p15_p4 = scmp.ge.s32.totalorder %s18_s27, 4  }
 0x415   :  { %17 = sbr.rel (!%p15_p4) target bundleno = 1 (0x1), region = 85 }

</bundles_post_ra>
